<compile_context>
chip_gen: v7x
topology: tpu7x:2x2x1
jax: 0.10.0
libtpu: 0.0.40
codegen_flags: <defaults>
</compile_context>

<pallas_src>
import functools

import jax
import jax.numpy as jnp
import numpy as np
from jax.experimental import pallas as pl
from jax.experimental.pallas import tpu as pltpu


# ----------------------------------- kernel -----------------------------------

def four_layer_bn_kernel(x_ref, y_ref,
                         w1_ref, b1_ref,
                         wf2_ref, bf2_ref,
                         wf3_ref, bf3_ref,
                         wf4_ref, bf4_ref,
                         we4_ref, be4_ref,
                         part_ref):
    """Per-batch-tile forward.

    part_ref[:, 0:4] = per-row sum_c sm*log(sm) for exits 1..4
    part_ref[:, 4:8] = per-row cross-entropy      for exits 1..4
    (both are reduced over the batch in the wrapper).
    """
    TB = x_ref.shape[0]
    C = we4_ref.shape[1]

    y = y_ref[...]                                               # (TB, 1) int32
    classes = jax.lax.broadcasted_iota(jnp.int32, (TB, C), 1)    # (TB, C)
    onehot = (classes == y).astype(jnp.float32)

    def fused_layer(h_bf16, wf_ref, bf_ref):
        # [W_next | We_i] : hidden part in the leading lanes (keeps the matmul
        # chain aligned), exit-i logits in the trailing C lanes.
        t = jnp.dot(h_bf16, wf_ref[...], preferred_element_type=jnp.float32) + bf_ref[...]
        H = wf_ref.shape[1] - C
        h_next = jnp.maximum(t[:, :H], 0.0).astype(jnp.bfloat16)
        logits_prev = t[:, H:]
        return h_next, logits_prev

    def head_stats(logits):
        # softmax(dim=1) stats; the divide goes to the EUP via approx reciprocal.
        m = jnp.max(logits, axis=1, keepdims=True)
        z = logits - m
        ez = jnp.exp(z)
        sez = jnp.sum(ez, axis=1, keepdims=True)
        log_sm = z - jnp.log(sez)                     # log_softmax
        sm = ez * pl.reciprocal(sez, approx=True)     # softmax
        ent = jnp.sum(sm * log_sm, axis=1, keepdims=True)        # (TB, 1)
        ce = -jnp.sum(onehot * log_sm, axis=1, keepdims=True)    # (TB, 1)
        return ent, ce

    # ---- MXU chain (5 matmuls; the sequential dependence is inherent) ----
    h1 = jnp.maximum(
        jnp.dot(x_ref[...], w1_ref[...], preferred_element_type=jnp.float32) + b1_ref[...],
        0.0).astype(jnp.bfloat16)
    h2, logits1 = fused_layer(h1, wf2_ref, bf2_ref)   # [fc2 | exit_1]
    h3, logits2 = fused_layer(h2, wf3_ref, bf3_ref)   # [fc3 | exit_2]
    h4, logits3 = fused_layer(h3, wf4_ref, bf4_ref)   # [fc4 | exit_3]
    logits4 = jnp.dot(h4, we4_ref[...], preferred_element_type=jnp.float32) + be4_ref[...]

    # ---- epilogue (VPU / EUP / XLU, off the MXU chain) ----
    e1, c1 = head_stats(logits1)
    e2, c2 = head_stats(logits2)
    e3, c3 = head_stats(logits3)
    e4, c4 = head_stats(logits4)

    part_ref[...] = jnp.concatenate([e1, e2, e3, e4, c1, c2, c3, c4], axis=1)


# ---------------------------------- wrapper ------------------------------------

def fuse_params(params):
    """Concatenate [W_{i+1} | We_i] along the output (lane) dim; cast matmul operands to bf16."""
    bf16 = lambda a: a.astype(jnp.bfloat16)
    return {
        "w1": bf16(params["w1"]), "b1": params["b1"],
        "wf2": bf16(jnp.concatenate([params["w2"], params["we1"]], axis=1)),
        "bf2": jnp.concatenate([params["b2"], params["be1"]], axis=1),
        "wf3": bf16(jnp.concatenate([params["w3"], params["we2"]], axis=1)),
        "bf3": jnp.concatenate([params["b3"], params["be2"]], axis=1),
        "wf4": bf16(jnp.concatenate([params["w4"], params["we3"]], axis=1)),
        "bf4": jnp.concatenate([params["b4"], params["be3"]], axis=1),
        "we4": bf16(params["we4"]), "be4": params["be4"],
    }


def four_layer_bn_forward(x, y, fused, scale_w, scale_b, *, block_b=128):
    """Returns (loss of shape (1,1), neg_entropies of shape (4,)).

    block_b: batch tile.  128 suits v5e's 4x128 MXU; 256 is also fine on v6e/v7x."""
    B, d_in = x.shape
    if B % block_b != 0:
        block_b = B                      # fallback: single batch block
    grid = (B // block_b,)

    xb = x.astype(jnp.bfloat16)
    y2 = y.reshape(B, 1).astype(jnp.int32)

    weight_args = (fused["w1"], fused["b1"],
                   fused["wf2"], fused["bf2"],
                   fused["wf3"], fused["bf3"],
                   fused["wf4"], fused["bf4"],
                   fused["we4"], fused["be4"])

    in_specs = (
        [pl.BlockSpec((block_b, d_in), lambda i: (i, 0)),   # x: tiled over batch
         pl.BlockSpec((block_b, 1), lambda i: (i, 0))]      # y: tiled over batch
        + [pl.BlockSpec(a.shape, lambda i: (0, 0)) for a in weight_args]  # resident weights
    )

    parts = pl.pallas_call(
        four_layer_bn_kernel,
        out_shape=jax.ShapeDtypeStruct((B, 8), jnp.float32),
        grid_spec=pltpu.PrefetchScalarGridSpec(
            num_scalar_prefetch=0,
            grid=grid,
            in_specs=in_specs,
            out_specs=pl.BlockSpec((block_b, 8), lambda i: (i, 0)),
        ),
        compiler_params=pltpu.CompilerParams(
            dimension_semantics=("parallel",)),
    )(xb, y2, *weight_args)

    # Tiny scalar finalization outside the kernel (keeps the grid axis parallel).
    sums = jnp.sum(parts, axis=0)                  # (8,)
    neg_ent = sums[:4] / B                         # sum_b sum_c sm*log(sm) / B   (exits 1..4)
    ce = sums[4:] / B                              # mean cross-entropy           (exits 1..4)
    loss = jnp.sum(scale_w * ce + scale_b) / 4.0   # (loss_1 + .. + loss_4) / 4
    return loss.reshape(1, 1), neg_ent


# ---------------- parameter init (deterministic, mirrors module __init__) ----------------

def _kaiming(key, in_dim, out_dim):
    # kaiming_normal_ default: fan_in mode, gain sqrt(2)  ->  std = sqrt(2 / fan_in)
    std = np.sqrt(2.0 / in_dim)
    return (std * jax.random.normal(key, (in_dim, out_dim))).astype(jnp.float32)


def _bias(key, in_dim, out_dim):
    # PyTorch Linear default bias init: U(-1/sqrt(fan_in), 1/sqrt(fan_in))
    bound = 1.0 / np.sqrt(in_dim)
    return jax.random.uniform(key, (1, out_dim), jnp.float32, -bound, bound)


def init_params(key, input_dim, output_dim, dimensions, init_exit_weights):
    dims_in = [input_dim] + list(dimensions[:-1])
    dims_out = list(dimensions)
    keys = jax.random.split(key, 16)
    p = {}
    for i in range(4):
        p[f"w{i+1}"] = _kaiming(keys[4 * i + 0], dims_in[i], dims_out[i])
        p[f"b{i+1}"] = _bias(keys[4 * i + 1], dims_in[i], dims_out[i])
        p[f"we{i+1}"] = _kaiming(keys[4 * i + 2], dims_out[i], output_dim)
        p[f"be{i+1}"] = _bias(keys[4 * i + 3], dims_out[i], output_dim)
    p["scale_w"] = jnp.asarray(init_exit_weights, dtype=jnp.float32)
    p["scale_b"] = jnp.zeros((4,), dtype=jnp.float32)
    return p


# ---------- pure-JAX reference (bf16-matmul-emulating, for a sanity check) ----------

def ref_forward(x, y, params):
    B = x.shape[0]
    bf = lambda a: a.astype(jnp.bfloat16).astype(jnp.float32)   # emulate bf16 MXU operands
    C = params["we1"].shape[1]
    onehot = jax.nn.one_hot(y, C, dtype=jnp.float32)
    h = x
    losses, ents = [], []
    for i in range(4):
        h = jax.nn.relu(jnp.dot(bf(h), bf(params[f"w{i+1}"]), precision="highest")
                        + params[f"b{i+1}"])
        logits = jnp.dot(bf(h), bf(params[f"we{i+1}"]), precision="highest") + params[f"be{i+1}"]
        log_sm = jax.nn.log_softmax(logits, axis=1)
        sm = jax.nn.softmax(logits, axis=1)
        ents.append(jnp.sum(sm * log_sm) / B)
        ce = -jnp.sum(onehot * log_sm) / B
        losses.append(params["scale_w"][i] * ce + params["scale_b"][i])
    return (losses[0] + losses[1] + losses[2] + losses[3]) / 4.0, jnp.stack(ents)


if __name__ == "__main__":
    # Small-but-real shapes: batch tiled over a 2-step grid (TB=128).
    B, input_dim, output_dim = 256, 32, 16
    dimensions = (32, 32, 32, 32)
    init_exit_weights = (0.25, 0.5, 0.75, 1.0)

    key = jax.random.PRNGKey(0)
    kx, ky, kp = jax.random.split(key, 3)
    x = jax.random.normal(kx, (B, input_dim), jnp.float32)
    y = jax.random.randint(ky, (B,), 0, output_dim, jnp.int32)
    params = init_params(kp, input_dim, output_dim, dimensions, init_exit_weights)
    fused = fuse_params(params)

    fwd = jax.jit(functools.partial(four_layer_bn_forward, block_b=128))
    loss, neg_entropies = fwd(x, y, fused, params["scale_w"], params["scale_b"])
    loss = jax.block_until_ready(loss)
    neg_entropies = jax.block_until_ready(neg_entropies)

    ref_loss, ref_ents = ref_forward(x, y, params)
    assert np.allclose(np.asarray(loss)[0, 0], float(ref_loss), rtol=1e-2, atol=1e-2), \
        (np.asarray(loss)[0, 0], float(ref_loss))
    assert np.allclose(np.asarray(neg_entropies), np.asarray(ref_ents), rtol=1e-2, atol=1e-2), \
        (np.asarray(neg_entropies), np.asarray(ref_ents))

    print("KERNEL_OK")
</pallas_src>

<mosaic_0001>
module attributes {stable_mosaic.version = 11 : i64} {
  func.func @four_layer_bn_kernel(%arg0: i32, %arg1: memref<128x32xbf16, #tpu.memory_space<vmem>>, %arg2: memref<128x1xi32, #tpu.memory_space<vmem>>, %arg3: memref<32x32xbf16, #tpu.memory_space<vmem>>, %arg4: memref<1x32xf32, #tpu.memory_space<vmem>>, %arg5: memref<32x48xbf16, #tpu.memory_space<vmem>>, %arg6: memref<1x48xf32, #tpu.memory_space<vmem>>, %arg7: memref<32x48xbf16, #tpu.memory_space<vmem>>, %arg8: memref<1x48xf32, #tpu.memory_space<vmem>>, %arg9: memref<32x48xbf16, #tpu.memory_space<vmem>>, %arg10: memref<1x48xf32, #tpu.memory_space<vmem>>, %arg11: memref<32x16xbf16, #tpu.memory_space<vmem>>, %arg12: memref<1x16xf32, #tpu.memory_space<vmem>>, %arg13: memref<128x8xf32, #tpu.memory_space<vmem>>) attributes {dimension_semantics = [#tpu.dimension_semantics<parallel>], iteration_bounds = array<i64: 2>, scalar_prefetch = 0 : i64, scratch_operands = 0 : i64, tpu.core_type = #tpu.core_type<tc>, window_params = [{transform_indices = @transform_0, window_bounds = array<i64: 128, 32>}, {transform_indices = @transform_1, window_bounds = array<i64: 128, 1>}, {pipeline_mode = #tpu.pipeline_mode<synchronous>, transform_indices = @transform_2, window_bounds = array<i64: 32, 32>}, {pipeline_mode = #tpu.pipeline_mode<synchronous>, transform_indices = @transform_3, window_bounds = array<i64: 1, 32>}, {pipeline_mode = #tpu.pipeline_mode<synchronous>, transform_indices = @transform_4, window_bounds = array<i64: 32, 48>}, {pipeline_mode = #tpu.pipeline_mode<synchronous>, transform_indices = @transform_5, window_bounds = array<i64: 1, 48>}, {pipeline_mode = #tpu.pipeline_mode<synchronous>, transform_indices = @transform_6, window_bounds = array<i64: 32, 48>}, {pipeline_mode = #tpu.pipeline_mode<synchronous>, transform_indices = @transform_7, window_bounds = array<i64: 1, 48>}, {pipeline_mode = #tpu.pipeline_mode<synchronous>, transform_indices = @transform_8, window_bounds = array<i64: 32, 48>}, {pipeline_mode = #tpu.pipeline_mode<synchronous>, transform_indices = @transform_9, window_bounds = array<i64: 1, 48>}, {pipeline_mode = #tpu.pipeline_mode<synchronous>, transform_indices = @transform_10, window_bounds = array<i64: 32, 16>}, {pipeline_mode = #tpu.pipeline_mode<synchronous>, transform_indices = @transform_11, window_bounds = array<i64: 1, 16>}, {transform_indices = @transform_12, window_bounds = array<i64: 128, 8>}]} {
    %c0 = arith.constant 0 : index
    %c0_0 = arith.constant 0 : index
    %0 = vector.load %arg2[%c0, %c0_0] : memref<128x1xi32, #tpu.memory_space<vmem>>, vector<128x1xi32>
    %1 = tpu.iota {dimensions = array<i32: 1>} : vector<128x16xi32>
    %2 = vector.broadcast %0 : vector<128x1xi32> to vector<128x16xi32>
    %3 = arith.cmpi eq, %1, %2 : vector<128x16xi32>
    %4 = arith.extui %3 : vector<128x16xi1> to vector<128x16xi32>
    %5 = arith.sitofp %4 : vector<128x16xi32> to vector<128x16xf32>
    %c0_1 = arith.constant 0 : index
    %c0_2 = arith.constant 0 : index
    %6 = vector.load %arg1[%c0_1, %c0_2] : memref<128x32xbf16, #tpu.memory_space<vmem>>, vector<128x32xbf16>
    %c0_3 = arith.constant 0 : index
    %c0_4 = arith.constant 0 : index
    %7 = vector.load %arg3[%c0_3, %c0_4] : memref<32x32xbf16, #tpu.memory_space<vmem>>, vector<32x32xbf16>
    %cst = arith.constant dense<0.000000e+00> : vector<128x32xf32>
    %8 = tpu.matmul %6, %7, %cst {dimension_numbers = #tpu.dot_dimension_numbers<[1], [0], [0], [1], [0, 0, 1, 1], [], []>} : vector<128x32xbf16>, vector<32x32xbf16>, vector<128x32xf32> -> vector<128x32xf32>
    %c0_5 = arith.constant 0 : index
    %c0_6 = arith.constant 0 : index
    %9 = vector.load %arg4[%c0_5, %c0_6] : memref<1x32xf32, #tpu.memory_space<vmem>>, vector<1x32xf32>
    %10 = vector.broadcast %9 : vector<1x32xf32> to vector<128x32xf32>
    %11 = arith.addf %8, %10 : vector<128x32xf32>
    %cst_7 = arith.constant 0.000000e+00 : f32
    %12 = vector.broadcast %cst_7 : f32 to vector<128x32xf32>
    %13 = arith.maximumf %11, %12 : vector<128x32xf32>
    %14 = arith.truncf %13 : vector<128x32xf32> to vector<128x32xbf16>
    %c0_8 = arith.constant 0 : index
    %c0_9 = arith.constant 0 : index
    %15 = vector.load %arg5[%c0_8, %c0_9] : memref<32x48xbf16, #tpu.memory_space<vmem>>, vector<32x48xbf16>
    %cst_10 = arith.constant dense<0.000000e+00> : vector<128x48xf32>
    %16 = tpu.matmul %14, %15, %cst_10 {dimension_numbers = #tpu.dot_dimension_numbers<[1], [0], [0], [1], [0, 0, 1, 1], [], []>} : vector<128x32xbf16>, vector<32x48xbf16>, vector<128x48xf32> -> vector<128x48xf32>
    %c0_11 = arith.constant 0 : index
    %c0_12 = arith.constant 0 : index
    %17 = vector.load %arg6[%c0_11, %c0_12] : memref<1x48xf32, #tpu.memory_space<vmem>>, vector<1x48xf32>
    %18 = vector.broadcast %17 : vector<1x48xf32> to vector<128x48xf32>
    %19 = arith.addf %16, %18 : vector<128x48xf32>
    %20 = vector.extract_strided_slice %19 {offsets = [0, 0], sizes = [128, 32], strides = [1, 1]} : vector<128x48xf32> to vector<128x32xf32>
    %cst_13 = arith.constant 0.000000e+00 : f32
    %21 = vector.broadcast %cst_13 : f32 to vector<128x32xf32>
    %22 = arith.maximumf %20, %21 : vector<128x32xf32>
    %23 = arith.truncf %22 : vector<128x32xf32> to vector<128x32xbf16>
    %24 = vector.extract_strided_slice %19 {offsets = [0, 32], sizes = [128, 16], strides = [1, 1]} : vector<128x48xf32> to vector<128x16xf32>
    %c0_14 = arith.constant 0 : index
    %c0_15 = arith.constant 0 : index
    %25 = vector.load %arg7[%c0_14, %c0_15] : memref<32x48xbf16, #tpu.memory_space<vmem>>, vector<32x48xbf16>
    %cst_16 = arith.constant dense<0.000000e+00> : vector<128x48xf32>
    %26 = tpu.matmul %23, %25, %cst_16 {dimension_numbers = #tpu.dot_dimension_numbers<[1], [0], [0], [1], [0, 0, 1, 1], [], []>} : vector<128x32xbf16>, vector<32x48xbf16>, vector<128x48xf32> -> vector<128x48xf32>
    %c0_17 = arith.constant 0 : index
    %c0_18 = arith.constant 0 : index
    %27 = vector.load %arg8[%c0_17, %c0_18] : memref<1x48xf32, #tpu.memory_space<vmem>>, vector<1x48xf32>
    %28 = vector.broadcast %27 : vector<1x48xf32> to vector<128x48xf32>
    %29 = arith.addf %26, %28 : vector<128x48xf32>
    %30 = vector.extract_strided_slice %29 {offsets = [0, 0], sizes = [128, 32], strides = [1, 1]} : vector<128x48xf32> to vector<128x32xf32>
    %cst_19 = arith.constant 0.000000e+00 : f32
    %31 = vector.broadcast %cst_19 : f32 to vector<128x32xf32>
    %32 = arith.maximumf %30, %31 : vector<128x32xf32>
    %33 = arith.truncf %32 : vector<128x32xf32> to vector<128x32xbf16>
    %34 = vector.extract_strided_slice %29 {offsets = [0, 32], sizes = [128, 16], strides = [1, 1]} : vector<128x48xf32> to vector<128x16xf32>
    %c0_20 = arith.constant 0 : index
    %c0_21 = arith.constant 0 : index
    %35 = vector.load %arg9[%c0_20, %c0_21] : memref<32x48xbf16, #tpu.memory_space<vmem>>, vector<32x48xbf16>
    %cst_22 = arith.constant dense<0.000000e+00> : vector<128x48xf32>
    %36 = tpu.matmul %33, %35, %cst_22 {dimension_numbers = #tpu.dot_dimension_numbers<[1], [0], [0], [1], [0, 0, 1, 1], [], []>} : vector<128x32xbf16>, vector<32x48xbf16>, vector<128x48xf32> -> vector<128x48xf32>
    %c0_23 = arith.constant 0 : index
    %c0_24 = arith.constant 0 : index
    %37 = vector.load %arg10[%c0_23, %c0_24] : memref<1x48xf32, #tpu.memory_space<vmem>>, vector<1x48xf32>
    %38 = vector.broadcast %37 : vector<1x48xf32> to vector<128x48xf32>
    %39 = arith.addf %36, %38 : vector<128x48xf32>
    %40 = vector.extract_strided_slice %39 {offsets = [0, 0], sizes = [128, 32], strides = [1, 1]} : vector<128x48xf32> to vector<128x32xf32>
    %cst_25 = arith.constant 0.000000e+00 : f32
    %41 = vector.broadcast %cst_25 : f32 to vector<128x32xf32>
    %42 = arith.maximumf %40, %41 : vector<128x32xf32>
    %43 = arith.truncf %42 : vector<128x32xf32> to vector<128x32xbf16>
    %44 = vector.extract_strided_slice %39 {offsets = [0, 32], sizes = [128, 16], strides = [1, 1]} : vector<128x48xf32> to vector<128x16xf32>
    %c0_26 = arith.constant 0 : index
    %c0_27 = arith.constant 0 : index
    %45 = vector.load %arg11[%c0_26, %c0_27] : memref<32x16xbf16, #tpu.memory_space<vmem>>, vector<32x16xbf16>
    %cst_28 = arith.constant dense<0.000000e+00> : vector<128x16xf32>
    %46 = tpu.matmul %43, %45, %cst_28 {dimension_numbers = #tpu.dot_dimension_numbers<[1], [0], [0], [1], [0, 0, 1, 1], [], []>} : vector<128x32xbf16>, vector<32x16xbf16>, vector<128x16xf32> -> vector<128x16xf32>
    %c0_29 = arith.constant 0 : index
    %c0_30 = arith.constant 0 : index
    %47 = vector.load %arg12[%c0_29, %c0_30] : memref<1x16xf32, #tpu.memory_space<vmem>>, vector<1x16xf32>
    %48 = vector.broadcast %47 : vector<1x16xf32> to vector<128x16xf32>
    %49 = arith.addf %46, %48 : vector<128x16xf32>
    %cst_31 = arith.constant dense<0xFF800000> : vector<128xf32>
    %50 = vector.multi_reduction <maximumf>, %24, %cst_31 [1] : vector<128x16xf32> to vector<128xf32>
    %51 = vector.shape_cast %50 : vector<128xf32> to vector<128x1xf32>
    %52 = vector.broadcast %51 : vector<128x1xf32> to vector<128x16xf32>
    %53 = arith.subf %24, %52 : vector<128x16xf32>
    %54 = math.exp %53 : vector<128x16xf32>
    %cst_32 = arith.constant dense<0.000000e+00> : vector<128xf32>
    %55 = vector.multi_reduction <add>, %54, %cst_32 [1] : vector<128x16xf32> to vector<128xf32>
    %56 = vector.shape_cast %55 : vector<128xf32> to vector<128x1xf32>
    %57 = math.log %56 : vector<128x1xf32>
    %58 = vector.broadcast %57 : vector<128x1xf32> to vector<128x16xf32>
    %59 = arith.subf %53, %58 : vector<128x16xf32>
    %60 = tpu.reciprocal %56 {approx = true} : vector<128x1xf32> -> vector<128x1xf32>
    %61 = vector.broadcast %60 : vector<128x1xf32> to vector<128x16xf32>
    %62 = arith.mulf %54, %61 : vector<128x16xf32>
    %63 = arith.mulf %62, %59 : vector<128x16xf32>
    %cst_33 = arith.constant dense<0.000000e+00> : vector<128xf32>
    %64 = vector.multi_reduction <add>, %63, %cst_33 [1] : vector<128x16xf32> to vector<128xf32>
    %65 = vector.shape_cast %64 : vector<128xf32> to vector<128x1xf32>
    %66 = arith.mulf %5, %59 : vector<128x16xf32>
    %cst_34 = arith.constant dense<0.000000e+00> : vector<128xf32>
    %67 = vector.multi_reduction <add>, %66, %cst_34 [1] : vector<128x16xf32> to vector<128xf32>
    %68 = vector.shape_cast %67 : vector<128xf32> to vector<128x1xf32>
    %cst_35 = arith.constant 0.000000e+00 : f32
    %69 = vector.broadcast %cst_35 : f32 to vector<128x1xf32>
    %70 = arith.subf %69, %68 : vector<128x1xf32>
    %cst_36 = arith.constant dense<0xFF800000> : vector<128xf32>
    %71 = vector.multi_reduction <maximumf>, %34, %cst_36 [1] : vector<128x16xf32> to vector<128xf32>
    %72 = vector.shape_cast %71 : vector<128xf32> to vector<128x1xf32>
    %73 = vector.broadcast %72 : vector<128x1xf32> to vector<128x16xf32>
    %74 = arith.subf %34, %73 : vector<128x16xf32>
    %75 = math.exp %74 : vector<128x16xf32>
    %cst_37 = arith.constant dense<0.000000e+00> : vector<128xf32>
    %76 = vector.multi_reduction <add>, %75, %cst_37 [1] : vector<128x16xf32> to vector<128xf32>
    %77 = vector.shape_cast %76 : vector<128xf32> to vector<128x1xf32>
    %78 = math.log %77 : vector<128x1xf32>
    %79 = vector.broadcast %78 : vector<128x1xf32> to vector<128x16xf32>
    %80 = arith.subf %74, %79 : vector<128x16xf32>
    %81 = tpu.reciprocal %77 {approx = true} : vector<128x1xf32> -> vector<128x1xf32>
    %82 = vector.broadcast %81 : vector<128x1xf32> to vector<128x16xf32>
    %83 = arith.mulf %75, %82 : vector<128x16xf32>
    %84 = arith.mulf %83, %80 : vector<128x16xf32>
    %cst_38 = arith.constant dense<0.000000e+00> : vector<128xf32>
    %85 = vector.multi_reduction <add>, %84, %cst_38 [1] : vector<128x16xf32> to vector<128xf32>
    %86 = vector.shape_cast %85 : vector<128xf32> to vector<128x1xf32>
    %87 = arith.mulf %5, %80 : vector<128x16xf32>
    %cst_39 = arith.constant dense<0.000000e+00> : vector<128xf32>
    %88 = vector.multi_reduction <add>, %87, %cst_39 [1] : vector<128x16xf32> to vector<128xf32>
    %89 = vector.shape_cast %88 : vector<128xf32> to vector<128x1xf32>
    %cst_40 = arith.constant 0.000000e+00 : f32
    %90 = vector.broadcast %cst_40 : f32 to vector<128x1xf32>
    %91 = arith.subf %90, %89 : vector<128x1xf32>
    %cst_41 = arith.constant dense<0xFF800000> : vector<128xf32>
    %92 = vector.multi_reduction <maximumf>, %44, %cst_41 [1] : vector<128x16xf32> to vector<128xf32>
    %93 = vector.shape_cast %92 : vector<128xf32> to vector<128x1xf32>
    %94 = vector.broadcast %93 : vector<128x1xf32> to vector<128x16xf32>
    %95 = arith.subf %44, %94 : vector<128x16xf32>
    %96 = math.exp %95 : vector<128x16xf32>
    %cst_42 = arith.constant dense<0.000000e+00> : vector<128xf32>
    %97 = vector.multi_reduction <add>, %96, %cst_42 [1] : vector<128x16xf32> to vector<128xf32>
    %98 = vector.shape_cast %97 : vector<128xf32> to vector<128x1xf32>
    %99 = math.log %98 : vector<128x1xf32>
    %100 = vector.broadcast %99 : vector<128x1xf32> to vector<128x16xf32>
    %101 = arith.subf %95, %100 : vector<128x16xf32>
    %102 = tpu.reciprocal %98 {approx = true} : vector<128x1xf32> -> vector<128x1xf32>
    %103 = vector.broadcast %102 : vector<128x1xf32> to vector<128x16xf32>
    %104 = arith.mulf %96, %103 : vector<128x16xf32>
    %105 = arith.mulf %104, %101 : vector<128x16xf32>
    %cst_43 = arith.constant dense<0.000000e+00> : vector<128xf32>
    %106 = vector.multi_reduction <add>, %105, %cst_43 [1] : vector<128x16xf32> to vector<128xf32>
    %107 = vector.shape_cast %106 : vector<128xf32> to vector<128x1xf32>
    %108 = arith.mulf %5, %101 : vector<128x16xf32>
    %cst_44 = arith.constant dense<0.000000e+00> : vector<128xf32>
    %109 = vector.multi_reduction <add>, %108, %cst_44 [1] : vector<128x16xf32> to vector<128xf32>
    %110 = vector.shape_cast %109 : vector<128xf32> to vector<128x1xf32>
    %cst_45 = arith.constant 0.000000e+00 : f32
    %111 = vector.broadcast %cst_45 : f32 to vector<128x1xf32>
    %112 = arith.subf %111, %110 : vector<128x1xf32>
    %cst_46 = arith.constant dense<0xFF800000> : vector<128xf32>
    %113 = vector.multi_reduction <maximumf>, %49, %cst_46 [1] : vector<128x16xf32> to vector<128xf32>
    %114 = vector.shape_cast %113 : vector<128xf32> to vector<128x1xf32>
    %115 = vector.broadcast %114 : vector<128x1xf32> to vector<128x16xf32>
    %116 = arith.subf %49, %115 : vector<128x16xf32>
    %117 = math.exp %116 : vector<128x16xf32>
    %cst_47 = arith.constant dense<0.000000e+00> : vector<128xf32>
    %118 = vector.multi_reduction <add>, %117, %cst_47 [1] : vector<128x16xf32> to vector<128xf32>
    %119 = vector.shape_cast %118 : vector<128xf32> to vector<128x1xf32>
    %120 = math.log %119 : vector<128x1xf32>
    %121 = vector.broadcast %120 : vector<128x1xf32> to vector<128x16xf32>
    %122 = arith.subf %116, %121 : vector<128x16xf32>
    %123 = tpu.reciprocal %119 {approx = true} : vector<128x1xf32> -> vector<128x1xf32>
    %124 = vector.broadcast %123 : vector<128x1xf32> to vector<128x16xf32>
    %125 = arith.mulf %117, %124 : vector<128x16xf32>
    %126 = arith.mulf %125, %122 : vector<128x16xf32>
    %cst_48 = arith.constant dense<0.000000e+00> : vector<128xf32>
    %127 = vector.multi_reduction <add>, %126, %cst_48 [1] : vector<128x16xf32> to vector<128xf32>
    %128 = vector.shape_cast %127 : vector<128xf32> to vector<128x1xf32>
    %129 = arith.mulf %5, %122 : vector<128x16xf32>
    %cst_49 = arith.constant dense<0.000000e+00> : vector<128xf32>
    %130 = vector.multi_reduction <add>, %129, %cst_49 [1] : vector<128x16xf32> to vector<128xf32>
    %131 = vector.shape_cast %130 : vector<128xf32> to vector<128x1xf32>
    %cst_50 = arith.constant 0.000000e+00 : f32
    %132 = vector.broadcast %cst_50 : f32 to vector<128x1xf32>
    %133 = arith.subf %132, %131 : vector<128x1xf32>
    %134 = tpu.concatenate %65, %86, %107, %128, %70, %91, %112, %133 in 1 : vector<128x1xf32>, vector<128x1xf32>, vector<128x1xf32>, vector<128x1xf32>, vector<128x1xf32>, vector<128x1xf32>, vector<128x1xf32>, vector<128x1xf32> -> vector<128x8xf32>
    %c0_51 = arith.constant 0 : index
    %c0_52 = arith.constant 0 : index
    %135 = vector.load %arg13[%c0_51, %c0_52] : memref<128x8xf32, #tpu.memory_space<vmem>>, vector<128x8xf32>
    tpu.vector_store %arg13[%c0_51, %c0_52], %134 {strides = array<i32>} : memref<128x8xf32, #tpu.memory_space<vmem>>, vector<128x8xf32>,
    return
  }
  func.func @transform_0(%arg0: i32) -> (i32, i32) {
    %c0_i32 = arith.constant 0 : i32
    %c0_i32_0 = arith.constant 0 : i32
    return %arg0, %c0_i32 : i32, i32
  }
  func.func @transform_1(%arg0: i32) -> (i32, i32) {
    %c0_i32 = arith.constant 0 : i32
    %c0_i32_0 = arith.constant 0 : i32
    return %arg0, %c0_i32 : i32, i32
  }
  func.func @transform_2(%arg0: i32) -> (i32, i32) {
    %c0_i32 = arith.constant 0 : i32
    %c0_i32_0 = arith.constant 0 : i32
    %c0_i32_1 = arith.constant 0 : i32
    return %c0_i32, %c0_i32_0 : i32, i32
  }
  func.func @transform_3(%arg0: i32) -> (i32, i32) {
    %c0_i32 = arith.constant 0 : i32
    %c0_i32_0 = arith.constant 0 : i32
    %c0_i32_1 = arith.constant 0 : i32
    return %c0_i32, %c0_i32_0 : i32, i32
  }
  func.func @transform_4(%arg0: i32) -> (i32, i32) {
    %c0_i32 = arith.constant 0 : i32
    %c0_i32_0 = arith.constant 0 : i32
    %c0_i32_1 = arith.constant 0 : i32
    return %c0_i32, %c0_i32_0 : i32, i32
  }
  func.func @transform_5(%arg0: i32) -> (i32, i32) {
    %c0_i32 = arith.constant 0 : i32
    %c0_i32_0 = arith.constant 0 : i32
    %c0_i32_1 = arith.constant 0 : i32
    return %c0_i32, %c0_i32_0 : i32, i32
  }
  func.func @transform_6(%arg0: i32) -> (i32, i32) {
    %c0_i32 = arith.constant 0 : i32
    %c0_i32_0 = arith.constant 0 : i32
    %c0_i32_1 = arith.constant 0 : i32
    return %c0_i32, %c0_i32_0 : i32, i32
  }
  func.func @transform_7(%arg0: i32) -> (i32, i32) {
    %c0_i32 = arith.constant 0 : i32
    %c0_i32_0 = arith.constant 0 : i32
    %c0_i32_1 = arith.constant 0 : i32
    return %c0_i32, %c0_i32_0 : i32, i32
  }
  func.func @transform_8(%arg0: i32) -> (i32, i32) {
    %c0_i32 = arith.constant 0 : i32
    %c0_i32_0 = arith.constant 0 : i32
    %c0_i32_1 = arith.constant 0 : i32
    return %c0_i32, %c0_i32_0 : i32, i32
  }
  func.func @transform_9(%arg0: i32) -> (i32, i32) {
    %c0_i32 = arith.constant 0 : i32
    %c0_i32_0 = arith.constant 0 : i32
    %c0_i32_1 = arith.constant 0 : i32
    return %c0_i32, %c0_i32_0 : i32, i32
  }
  func.func @transform_10(%arg0: i32) -> (i32, i32) {
    %c0_i32 = arith.constant 0 : i32
    %c0_i32_0 = arith.constant 0 : i32
    %c0_i32_1 = arith.constant 0 : i32
    return %c0_i32, %c0_i32_0 : i32, i32
  }
  func.func @transform_11(%arg0: i32) -> (i32, i32) {
    %c0_i32 = arith.constant 0 : i32
    %c0_i32_0 = arith.constant 0 : i32
    %c0_i32_1 = arith.constant 0 : i32
    return %c0_i32, %c0_i32_0 : i32, i32
  }
  func.func @transform_12(%arg0: i32) -> (i32, i32) {
    %c0_i32 = arith.constant 0 : i32
    %c0_i32_0 = arith.constant 0 : i32
    return %arg0, %c0_i32 : i32, i32
  }
}

</mosaic_0001>

<bundles_post_ra>
// kernel: four_layer_bn_forward.1
= control target key start
LH: loop header
LB: loop body
LE: loop exit
PB: predicated region body
PF: predicated region fallthrough
CT: control target
= control target key end

     0   :  { %s4418_s21 = smov 0   ;;  %s6612_s0 = inlined_call_operand.vmem [shape: bf16[256,32], index: 0, kind: input, shape index: {}]   ;;  %s6613_s1 = inlined_call_operand.vmem [shape: s32[256,1], index: 1, kind: input, shape index: {}]   ;;  %s6614_s2 = inlined_call_operand.vmem [shape: bf16[32,32], index: 2, kind: input, shape index: {}]   ;;  %s6615_s3 = inlined_call_operand.vmem [shape: f32[1,32], index: 3, kind: input, shape index: {}]   ;;  %s6616_s4 = inlined_call_operand.vmem [shape: bf16[32,48], index: 4, kind: input, shape index: {}]   ;;  %s6617_s5 = inlined_call_operand.vmem [shape: f32[1,48], index: 5, kind: input, shape index: {}]   ;;  %s6618_s6 = inlined_call_operand.vmem [shape: bf16[32,48], index: 6, kind: input, shape index: {}]   ;;  %s6619_s7 = inlined_call_operand.vmem [shape: f32[1,48], index: 7, kind: input, shape index: {}]   ;;  %s6620_s8 = inlined_call_operand.vmem [shape: bf16[32,48], index: 8, kind: input, shape index: {}]   ;;  %s6621_s9 = inlined_call_operand.vmem [shape: f32[1,48], index: 9, kind: input, shape index: {}]   ;;  %s6622_s10 = inlined_call_operand.vmem [shape: bf16[32,16], index: 10, kind: input, shape index: {}]   ;;  %s6623_s11 = inlined_call_operand.vmem [shape: f32[1,16], index: 11, kind: input, shape index: {}]   ;;  %s6624_s12 = inlined_call_operand.vmem [shape: f32[256,8], index: 12, kind: output, shape index: {}]  }
   0x1 LB: > { %s3681_s22 = sadd.s32 4294967295, %s4348_s21   ;;  %p3685_p0 = scmp.ge.s32.totalorder %s4348_s21, 1  ;;  %s4348_s21 = sphi %s4418_s21, %s22_s21  }
   0x2   : > { %p374_p1 = scmp.lt.s32.totalorder %s4348_s21, 3 }
   0x4   : > { %p375_p2 = pnand %p3685_p0, %p374_p1 }
   0x6   : > { %378 = sbr.rel (%p375_p2) target bundleno = 2166 (0x876), region = 68 }
   0xd   : > { %v3940_v0 = vld [vmem:[%s6614_s2] sm:$0xff]   ;;  %s3686_s25 = sshll.u32 %s3681_s22, 4  ;;  %v3941_v1 = vld [vmem:[%s6614_s2 + $0x8] sm:$0xff]   ;;  %vm633_vm0 = vcmask 261120   ;;  %v4350_v12 = vmov 0   ;;  %vm1427_vm12 = vcmask 392448  }
   0xe   : > { %p422_p3 = scmp.lt.s32.totalorder %s3686_s25, 31  ;;  %3823 = vmatprep.subr.bf16.mxu0 %v3940_v0  ;;  %3923 = vmatprep.subr.bf16.mxu1 %v3940_v0  ;;  %v3950_v2 = vld [vmem:[%s6616_s4] sm:$0xff]   ;;  %v3951_v11 = vld [vmem:[%s6616_s4 + $0x8] sm:$0xff]   ;;  %s4352_s19 = smov 96   ;;  %vm1588_vm13 = vcmask 130048  }
   0xf   : > { %3824 = vmatpush3.bf16.msra.mxu0 %v3940_v0  ;;  %3925 = vmatpush3.bf16.msra.mxu1 %v3940_v0  ;;  %v3708_v29 = vld [vmem:[%s6615_s3] ss:$0 sm:$0xff] }
  0x10   : > { %s6969_s25 = smov (!%p422_p3, %s3686_s25), 31  ;;  %3825 = vmatprep.subr.bf16.mxu0 %v3941_v1  ;;  %3924 = vmatprep.subr.bf16.mxu1 %v3941_v1 }
  0x11   : > { %s3687_s30 = sshll.u32 %s6969_s25, 2  ;;  %s3689_s18 = sshll.u32 %s6969_s25, 3  ;;  %3939 = vset.pattern.permute.xlu1 %v4350_v12  ;;  %3938 = vset.pattern.permute.xlu0 %v4350_v12 }
  0x12   : > { %s425_s15 = scalar_lea.vmem %s6612_s0, %s3687_s30  ;;  %s4458_s22 = scalar_lea.vmem %s6613_s1, %s3689_s18 }
  0x13   : > { %3826 = vmatpush3.bf16.msra.mxu0 %v3941_v1  ;;  %v3942_v3 = vld [vmem:[%s425_s15] sm:$0xff]   ;;  %3926 = vmatpush3.bf16.msra.mxu1 %v3941_v1  ;;  %v3943_v4 = vld [vmem:[%s425_s15 + $0x8] sm:$0xff]   ;;  %v3944_v5 = vld [vmem:[%s425_s15 + $0x10] sm:$0xff]   ;;  %s6371_s16 = scalar_lea.vmem %s6624_s12, %s3689_s18 }
  0x14   : > { %3843 = vmatprep.subr.bf16.mxu1 %v3950_v2  ;;  %3827 = vmatprep.mubr.msk.bf16.mxu0 %vm633_vm0, %v3942_v3  ;;  %v3946_v6 = vld [vmem:[%s425_s15 + $0x20] sm:$0xff]   ;;  %v3947_v7 = vld [vmem:[%s425_s15 + $0x28] sm:$0xff]   ;;  %v3948_v8 = vld [vmem:[%s425_s15 + $0x30] sm:$0xff]  }
  0x15   : > { %3835 = vmatprep.mubr.msk.bf16.mxu1 %vm633_vm0, %v3946_v6  ;;  %v3945_v9 = vld [vmem:[%s425_s15 + $0x18] sm:$0xff]   ;;  %v442_v13 = vld [vmem:[%s4458_s22 + $0x10] sm:$0xff]  ;;  %v440_v15 = vld [vmem:[%s4458_s22] sm:$0xff] }
  0x16   : > { %3828 = vmatmul.mubr.msk.bf16.vlgmr.msra.gmra.mrb[0].mxu0 %vm633_vm0, %v3943_v4  ;;  %3836 = vmatmul.mubr.msk.bf16.vlgmr.msra.gmra.mrb[0].mxu1 %vm633_vm0, %v3947_v7  ;;  %v3949_v10 = vld [vmem:[%s425_s15 + $0x38] sm:$0xff]   ;;  %v441_v16 = vld [vmem:[%s4458_s22 + $0x8] sm:$0xff]  ;;  %v444_v18 = vld [vmem:[%s4458_s22 + $0x20] sm:$0xff] }
  0x17   : > { %3831 = vmatprep.mubr.msk.bf16.mxu0 %vm633_vm0, %v3944_v5  ;;  %3839 = vmatprep.mubr.msk.bf16.mxu1 %vm633_vm0, %v3948_v8  ;;  %v443_v14 = vld [vmem:[%s4458_s22 + $0x18] sm:$0xff]  ;;  %v445_v17 = vld [vmem:[%s4458_s22 + $0x28] sm:$0xff]  ;;  %v446_v20 = vld [vmem:[%s4458_s22 + $0x30] sm:$0xff] }
  0x18   : > { %3844 = vmatpush3.bf16.msra.mxu1 %v3950_v2  ;;  %465 = vperm.xlu1 %3939, %v442_v13   ;;  %v447_v19 = vld [vmem:[%s4458_s22 + $0x38] sm:$0xff]  ;;  %v449_v21 = vld [vmem:[%s4458_s22 + $0x48] sm:$0xff]  ;;  %v448_v22 = vld [vmem:[%s4458_s22 + $0x40] sm:$0xff] }
  0x19   : > { %3845 = vmatprep.subr.bf16.mxu1 %v3951_v11  ;;  %459 = vperm.xlu0 %3938, %v440_v15   ;;  %v451_v23 = vld [vmem:[%s4458_s22 + $0x58] sm:$0xff]  ;;  %v450_v24 = vld [vmem:[%s4458_s22 + $0x50] sm:$0xff]  ;;  %v453_v25 = vld [vmem:[%s4458_s22 + $0x68] sm:$0xff] }
  0x1a   : > { %v452_v26 = vld [vmem:[%s4458_s22 + $0x60] sm:$0xff]  ;;  %v455_v27 = vld [vmem:[%s4458_s22 + $0x78] sm:$0xff]  ;;  %v454_v28 = vld [vmem:[%s4458_s22 + $0x70] sm:$0xff] }
  0x1c   : > { %3846 = vmatpush3.bf16.msra.mxu1 %v3951_v11  ;;  %468 = vperm.xlu1 %3939, %v443_v14  }
  0x1d   : > { %462 = vperm.xlu0 %3938, %v441_v16  }
  0x1e   : > { %3832 = vmatmul.mubr.msk.bf16.gmra.mrb[4].mxu0 %vm633_vm0, %v3945_v9  ;;  %3840 = vmatmul.mubr.msk.bf16.gmra.mrb[4].mxu1 %vm633_vm0, %v3949_v10 }
  0x20   : > { %474 = vperm.xlu1 %3939, %v445_v17  }
  0x21   : > { %471 = vperm.xlu0 %3938, %v444_v18  }
  0x24   : > { %480 = vperm.xlu1 %3939, %v447_v19  }
  0x25   : > { %477 = vperm.xlu0 %3938, %v446_v20  }
  0x28   : > { %486 = vperm.xlu1 %3939, %v449_v21  }
  0x29   : > { %483 = vperm.xlu0 %3938, %v448_v22   ;;  %v3952_v22 = vld [vmem:[%s6618_s6] sm:$0xff]  }
  0x2a   : > { %3863 = vmatprep.subr.bf16.mxu0 %v3952_v22 }
  0x2b   : > { %3864 = vmatpush3.bf16.msra.mxu0 %v3952_v22 }
  0x2c   : > { %492 = vperm.xlu1 %3939, %v451_v23   ;;  %v3953_v23 = vld [vmem:[%s6618_s6 + $0x8] sm:$0xff]  }
  0x2d   : > { %489 = vperm.xlu0 %3938, %v450_v24   ;;  %3865 = vmatprep.subr.bf16.mxu0 %v3953_v23  ;;  %v456_v24 = vlaneseq }
  0x2f   : > { %3866 = vmatpush3.bf16.msra.mxu0 %v3953_v23 }
  0x30   : > { %498 = vperm.xlu1 %3939, %v453_v25  }
  0x31   : > { %495 = vperm.xlu0 %3938, %v452_v26  }
  0x34   : > { %504 = vperm.xlu1 %3939, %v455_v27   ;;  %v4493_v27 = vand.u32 127, %v456_v24 }
  0x35   : > { %501 = vperm.xlu0 %3938, %v454_v28  }
  0x97   : > { %v466_v25 = vpop.permute.xlu1 %465 }
  0x98   : > { %v460_v26 = vpop.permute.xlu0 %459  ;;  %vm508_vm1 = vcmp.eq.s32.totalorder %v4493_v27, %v466_v25 }
  0x99   : > { %vm506_vm2 = vcmp.eq.s32.totalorder %v4493_v27, %v460_v26 }
  0x9b   : > { %v469_v28 = vpop.permute.xlu1 %468 }
  0x9c   : > { %vm509_vm3 = vcmp.eq.s32.totalorder %v4493_v27, %v469_v28 }
  0xe9   : > { %v3829_v30 = vpop.f32.mrb[0].mxu0  ;;  %v3837_v38 = vpop.f32.mrb[0].mxu1 }
  0xea   : > { %v701_v31 = vadd.f32 %v3829_v30, %v3708_v29  ;;  %v692_v32 = vpop.f32.mrb[1].mxu0  ;;  %v733_v41 = vadd.f32 %v3837_v38, %v3708_v29  ;;  %v724_v42 = vpop.f32.mrb[1].mxu1  ;;  %v6625_v30 = vmov 0.0  }
  0xeb   : > { %v693_v33 = vadd.f32 %v3708_v29, %v692_v32  ;;  %v3830_v34 = vpop.f32.mrb[2].mxu0  ;;  %v725_v45 = vadd.f32 %v3708_v29, %v724_v42  ;;  %v3838_v46 = vpop.f32.mrb[2].mxu1  ;;  %v4504_v32 = vsel %vm506_vm2, 1.0, %v6625_v30 }
  0xec   : > { %v704_v35 = vadd.f32 %v3830_v34, %v3708_v29  ;;  %v695_v36 = vpop.f32.mrb[3].mxu0  ;;  %v757_v39 = vmax.f32 %v701_v31, 0.0  ;;  %v765_v48 = vmax.f32 %v733_v41, 0.0  ;;  %v736_v49 = vadd.f32 %v3838_v46, %v3708_v29  ;;  %v727_v50 = vpop.f32.mrb[3].mxu1  ;;  %6710 = vst [vmem:[#allocation3_spill] sm:$0xff] %v4504_v32 }
  0xed   : > { %v696_v37 = vadd.f32 %v3708_v29, %v695_v36  ;;  %v755_v43 = vmax.f32 %v693_v33, 0.0  ;;  %v763_v53 = vmax.f32 %v725_v45, 0.0  ;;  %v728_v54 = vadd.f32 %v3708_v29, %v727_v50  ;;  %v475_v34 = vpop.permute.xlu1 %474 }
  0xee   : > { %v758_v40 = vmax.f32 %v704_v35, 0.0  ;;  %v766_v57 = vmax.f32 %v736_v49, 0.0  ;;  %v4500_v31 = vsel %vm508_vm1, 1.0, %v6625_v30  ;;  %v4507_v33 = vsel %vm509_vm3, 1.0, %v6625_v30 }
  0xef   : > { %v756_v44 = vmax.f32 %v696_v37, 0.0  ;;  %v764_v60 = vmax.f32 %v728_v54, 0.0  ;;  %6709 = vst [vmem:[#allocation2_spill] sm:$0xff] %v4500_v31  ;;  %6711 = vst [vmem:[#allocation4_spill] sm:$0xff] %v4507_v33  ;;  %vm511_vm4 = vcmp.eq.s32.totalorder %v4493_v27, %v475_v34  ;;  %v4552_v54 = vld [vmem:[%s6617_s5] ss:$0 sm:$0xff] }
  0xf0   : > { %v772_v47 = vpack.c.bf16 %v758_v40, %v757_v39  ;;  %v776_v0 = vpack.c.bf16 %v766_v57, %v765_v48  ;;  %v4513_v36 = vsel %vm511_vm4, 1.0, %v6625_v30  ;;  %vm3494_vm3 = vcmask 15360  }
  0xf1   : > { %v771_v51 = vpack.c.bf16 %v756_v44, %v755_v43  ;;  %v3833_v52 = vpop.f32.mrb[4].mxu0  ;;  %v775_v3 = vpack.c.bf16 %v764_v60, %v763_v53  ;;  %v3841_v4 = vpop.f32.mrb[4].mxu1  ;;  %6712 = vst [vmem:[#allocation5_spill] sm:$0xff] %v4513_v36  ;;  %vm3477_vm4 = vcmask 7168  }
  0xf2   : > { %v717_v55 = vadd.f32 %v3833_v52, %v3708_v29  ;;  %v708_v56 = vpop.f32.mrb[5].mxu0  ;;  %v749_v6 = vadd.f32 %v3841_v4, %v3708_v29  ;;  %v740_v7 = vpop.f32.mrb[5].mxu1 }
  0xf3   : > { %v709_v58 = vadd.f32 %v3708_v29, %v708_v56  ;;  %v3834_v59 = vpop.f32.mrb[6].mxu0  ;;  %3847 = vmatprep.mubr.msk.bf16.mxu1 %vm633_vm0, %v771_v51  ;;  %v741_v9 = vadd.f32 %v3708_v29, %v740_v7  ;;  %v3842_v10 = vpop.f32.mrb[6].mxu1 }
  0xf4   : > { %v761_v61 = vmax.f32 %v717_v55, 0.0  ;;  %v720_v62 = vadd.f32 %v3834_v59, %v3708_v29  ;;  %v711_v63 = vpop.f32.mrb[7].mxu0  ;;  %3848 = vmatmul.mubr.msk.bf16.vlgmr.msra.gmra.mrb[8].mxu1 %vm633_vm0, %v772_v47  ;;  %v769_v12 = vmax.f32 %v749_v6, 0.0  ;;  %v752_v13 = vadd.f32 %v3842_v10, %v3708_v29  ;;  %v743_v14 = vpop.f32.mrb[7].mxu1 }
  0xf5   : > { %v759_v1 = vmax.f32 %v709_v58, 0.0  ;;  %v712_v2 = vadd.f32 %v3708_v29, %v711_v63  ;;  %v767_v16 = vmax.f32 %v741_v9, 0.0  ;;  %v744_v17 = vadd.f32 %v3708_v29, %v743_v14  ;;  %v4497_v29 = vpop.permute.xlu0 %462  ;;  %v481_v37 = vpop.permute.xlu1 %480 }
  0xf6   : > { %v762_v5 = vmax.f32 %v720_v62, 0.0  ;;  %v770_v18 = vmax.f32 %v752_v13, 0.0  ;;  %vm513_vm5 = vcmp.eq.s32.totalorder %v4493_v27, %v481_v37  ;;  %vm507_vm14 = vcmp.eq.s32.totalorder %v4493_v27, %v4497_v29 }
  0xf7   : > { %v760_v8 = vmax.f32 %v712_v2, 0.0  ;;  %v768_v19 = vmax.f32 %v744_v17, 0.0  ;;  %v4519_v39 = vsel %vm513_vm5, 1.0, %v6625_v30  ;;  %vm3511_vm5 = vcmask 23552  }
  0xf8   : > { %v774_v11 = vpack.c.bf16 %v762_v5, %v761_v61  ;;  %v778_v20 = vpack.c.bf16 %v770_v18, %v769_v12  ;;  %6713 = vst [vmem:[#allocation6_spill] sm:$0xff] %v4519_v39 }
  0xf9   : > { %v773_v15 = vpack.c.bf16 %v760_v8, %v759_v1  ;;  %v777_v21 = vpack.c.bf16 %v768_v19, %v767_v16  ;;  %v4509_v35 = vpop.permute.xlu0 %471  ;;  %v487_v40 = vpop.permute.xlu1 %486 }
  0xfa   : > { %vm515_vm6 = vcmp.eq.s32.totalorder %v4493_v27, %v487_v40 }
  0xfb   : > { %3851 = vmatprep.mubr.msk.bf16.mxu1 %vm633_vm0, %v773_v15  ;;  %v4525_v42 = vsel %vm515_vm6, 1.0, %v6625_v30  ;;  %vm3528_vm6 = vcmask 31744  }
  0xfc   : > { %3852 = vmatmul.mubr.msk.bf16.gmra.mrb[12].mxu1 %vm633_vm0, %v774_v11  ;;  %6715 = vst [vmem:[#allocation8_spill] sm:$0xff] %v4525_v42 }
  0xfd   : > { %3855 = vmatprep.mubr.msk.bf16.mxu1 %vm633_vm0, %v775_v3  ;;  %v4515_v38 = vpop.permute.xlu0 %477  ;;  %v493_v43 = vpop.permute.xlu1 %492 }
  0xfe   : > { %vm517_vm7 = vcmp.eq.s32.totalorder %v4493_v27, %v493_v43  ;;  %vm512_vm15 = vcmp.eq.s32.totalorder %v4493_v27, %v4515_v38 }
  0xff   : > { %v4531_v45 = vsel %vm517_vm7, 1.0, %v6625_v30  ;;  %vm3545_vm7 = vcmask 39936  }
 0x100   : > { %6717 = vst [vmem:[#allocation10_spill] sm:$0xff] %v4531_v45 }
 0x101   : > { %v4521_v41 = vpop.permute.xlu0 %483  ;;  %v499_v46 = vpop.permute.xlu1 %498 }
 0x102   : > { %6714 = vst [vmem:[#allocation7_spill] sm:$0xff] %v4521_v41  ;;  %vm519_vm8 = vcmp.eq.s32.totalorder %v4493_v27, %v499_v46 }
 0x103   : > { %v4536_v48 = vsel %vm519_vm8, 1.0, %v6625_v30  ;;  %vm3562_vm8 = vcmask 48128  }
 0x104   : > { %3856 = vmatmul.mubr.msk.bf16.gmra.mrb[16].mxu1 %vm633_vm0, %v776_v0  ;;  %6718 = vst [vmem:[#allocation11_spill] sm:$0xff] %v4536_v48 }
 0x105   : > { %3859 = vmatprep.mubr.msk.bf16.mxu1 %vm633_vm0, %v777_v21  ;;  %v4527_v44 = vpop.permute.xlu0 %489  ;;  %v505_v50 = vpop.permute.xlu1 %504 }
 0x106   : > { %6716 = vst [vmem:[#allocation9_spill] sm:$0xff] %v4527_v44  ;;  %vm521_vm10 = vcmp.eq.s32.totalorder %v4493_v27, %v505_v50 }
 0x107   : > { %v4544_v52 = vsel %vm521_vm10, 1.0, %v6625_v30  ;;  %vm3596_vm10 = vcmask 64512  }
 0x108   : > { %6720 = vst [vmem:[#allocation13_spill] sm:$0xff] %v4544_v52 }
 0x109   : > { %v496_v47 = vpop.permute.xlu0 %495 }
 0x10a   : > { %vm518_vm9 = vcmp.eq.s32.totalorder %v4493_v27, %v496_v47 }
 0x10b   : > { %v4539_v49 = vsel %vm518_vm9, 1.0, %v6625_v30  ;;  %vm3579_vm9 = vcmask 56320  }
 0x10c   : > { %3860 = vmatmul.mubr.msk.bf16.gmra.mrb[20].mxu1 %vm633_vm0, %v778_v20  ;;  %6719 = vst [vmem:[#allocation12_spill] sm:$0xff] %v4539_v49 }
 0x10d   : > { %v502_v51 = vpop.permute.xlu0 %501 }
 0x10e   : > { %vm520_vm11 = vcmp.eq.s32.totalorder %v4493_v27, %v502_v51 }
 0x10f   : > { %v4547_v53 = vsel %vm520_vm11, 1.0, %v6625_v30 }
 0x110   : > { %6721 = vst [vmem:[#allocation14_spill] sm:$0xff] %v4547_v53 }
 0x1c7   : > { %v3849_v55 = vpop.f32.mrb[8].mxu1 }
 0x1c8   : > { %v4555_v56 = vadd.f32 %v3849_v55, %v4552_v54  ;;  %v860_v57 = vpop.f32.mrb[9].mxu1 }
 0x1c9   : > { %v4558_v58 = vadd.f32 %v4552_v54, %v860_v57  ;;  %v3850_v59 = vpop.f32.mrb[10].mxu1 }
 0x1ca   : > { %v4561_v60 = vadd.f32 %v3850_v59, %v4552_v54  ;;  %v863_v61 = vpop.f32.mrb[11].mxu1  ;;  %v1434_v62 = vsel %vm1427_vm12, %v4555_v56, -inf  ;;  %v925_v4 = vmax.f32 %v4555_v56, 0.0 }
 0x1cb   : > { %v4566_v63 = vadd.f32 %v4552_v54, %v863_v61  ;;  %1435 = vmax.xlane.f32.xlu0 %v1434_v62  ;;  %v923_v1 = vmax.f32 %v4558_v58, 0.0  ;;  %v1428_v5 = vsel %vm1427_vm12, %v4558_v58, -inf }
 0x1cc   : > { %v926_v0 = vmax.f32 %v4561_v60, 0.0  ;;  %v1437_v16 = vsel %vm1427_vm12, %v4561_v60, -inf }
 0x1cd   : > { %v924_v2 = vmax.f32 %v4566_v63, 0.0  ;;  %v1431_v3 = vsel %vm1427_vm12, %v4566_v63, -inf }
 0x1ce   : > { %1432 = vmax.xlane.f32.xlu1 %v1431_v3  ;;  %v940_v8 = vpack.c.bf16 %v926_v0, %v925_v4 }
 0x1cf   : > { %v939_v6 = vpack.c.bf16 %v924_v2, %v923_v1  ;;  %v3853_v7 = vpop.f32.mrb[12].mxu1  ;;  %1429 = vmax.xlane.f32.xlu0 %v1428_v5 }
 0x1d0   : > { %v4577_v9 = vadd.f32 %v3853_v7, %v4552_v54  ;;  %v876_v10 = vpop.f32.mrb[13].mxu1 }
 0x1d1   : > { %v4580_v11 = vadd.f32 %v4552_v54, %v876_v10  ;;  %v3854_v12 = vpop.f32.mrb[14].mxu1  ;;  %3867 = vmatprep.mubr.msk.bf16.mxu0 %vm633_vm0, %v939_v6 }
 0x1d2   : > { %v4584_v13 = vadd.f32 %v3854_v12, %v4552_v54  ;;  %v879_v14 = vpop.f32.mrb[15].mxu1  ;;  %3868 = vmatmul.mubr.msk.bf16.vlgmr.msra.gmra.mrb[8].mxu0 %vm633_vm0, %v940_v8  ;;  %v1446_v15 = vsel %vm1427_vm12, %v4577_v9, -inf  ;;  %v929_v21 = vmax.f32 %v4577_v9, 0.0 }
 0x1d3   : > { %v4592_v17 = vadd.f32 %v4552_v54, %v879_v14  ;;  %1447 = vmax.xlane.f32.xlu1 %v1446_v15  ;;  %1438 = vmax.xlane.f32.xlu0 %v1437_v16  ;;  %v927_v19 = vmax.f32 %v4580_v11, 0.0  ;;  %v1440_v22 = vsel %vm1427_vm12, %v4580_v11, -inf }
 0x1d4   : > { %v930_v18 = vmax.f32 %v4584_v13, 0.0  ;;  %v1449_v23 = vsel %vm1427_vm12, %v4584_v13, -inf }
 0x1d5   : > { %v928_v20 = vmax.f32 %v4592_v17, 0.0  ;;  %v1443_v51 = vsel %vm1427_vm12, %v4592_v17, -inf }
 0x1d6   : > { %v942_v26 = vpack.c.bf16 %v930_v18, %v929_v21 }
 0x1d7   : > { %v941_v24 = vpack.c.bf16 %v928_v20, %v927_v19  ;;  %v3857_v25 = vpop.f32.mrb[16].mxu1  ;;  %1441 = vmax.xlane.f32.xlu1 %v1440_v22  ;;  %1450 = vmax.xlane.f32.xlu0 %v1449_v23 }
 0x1d8   : > { %v4603_v28 = vadd.f32 %v3857_v25, %v4552_v54  ;;  %v892_v34 = vpop.f32.mrb[17].mxu1  ;;  %v3954_v25 = vld [vmem:[%s6620_s8] sm:$0xff]  }
 0x1d9   : > { %v4606_v37 = vadd.f32 %v4552_v54, %v892_v34  ;;  %v3858_v40 = vpop.f32.mrb[18].mxu1  ;;  %3871 = vmatprep.mubr.msk.bf16.mxu0 %vm633_vm0, %v941_v24  ;;  %3883 = vmatprep.subr.bf16.mxu1 %v3954_v25 }
 0x1da   : > { %v933_v43 = vmax.f32 %v4603_v28, 0.0  ;;  %v4611_v46 = vadd.f32 %v3858_v40, %v4552_v54  ;;  %v895_v47 = vpop.f32.mrb[19].mxu1  ;;  %3872 = vmatmul.mubr.msk.bf16.gmra.mrb[12].mxu0 %vm633_vm0, %v942_v26  ;;  %v1458_v50 = vsel %vm1427_vm12, %v4603_v28, -inf  ;;  %3884 = vmatpush3.bf16.msra.mxu1 %v3954_v25  ;;  %v3955_v26 = vld [vmem:[%s6620_s8 + $0x8] sm:$0xff]  }
 0x1db   : > { %v931_v55 = vmax.f32 %v4606_v37, 0.0  ;;  %v4620_v57 = vadd.f32 %v4552_v54, %v895_v47  ;;  %1459 = vmax.xlane.f32.xlu1 %v1458_v50  ;;  %1444 = vmax.xlane.f32.xlu0 %v1443_v51  ;;  %v1452_v61 = vsel %vm1427_vm12, %v4606_v37, -inf }
 0x1dc   : > { %v934_v59 = vmax.f32 %v4611_v46, 0.0  ;;  %v1461_v62 = vsel %vm1427_vm12, %v4611_v46, -inf  ;;  %3885 = vmatprep.subr.bf16.mxu1 %v3955_v26 }
 0x1dd   : > { %v932_v0 = vmax.f32 %v4620_v57, 0.0  ;;  %v1455_v6 = vsel %vm1427_vm12, %v4620_v57, -inf }
 0x1de   : > { %v944_v1 = vpack.c.bf16 %v934_v59, %v933_v43  ;;  %3886 = vmatpush3.bf16.msra.mxu1 %v3955_v26 }
 0x1df   : > { %v943_v2 = vpack.c.bf16 %v932_v0, %v931_v55  ;;  %v3861_v3 = vpop.f32.mrb[20].mxu1  ;;  %1453 = vmax.xlane.f32.xlu1 %v1452_v61  ;;  %1462 = vmax.xlane.f32.xlu0 %v1461_v62 }
 0x1e0   : > { %v4629_v4 = vadd.f32 %v3861_v3, %v4552_v54  ;;  %v908_v5 = vpop.f32.mrb[21].mxu1 }
 0x1e1   : > { %v4634_v7 = vadd.f32 %v4552_v54, %v908_v5  ;;  %v3862_v8 = vpop.f32.mrb[22].mxu1  ;;  %3875 = vmatprep.mubr.msk.bf16.mxu0 %vm633_vm0, %v943_v2 }
 0x1e2   : > { %v937_v10 = vmax.f32 %v4629_v4, 0.0  ;;  %v4639_v12 = vadd.f32 %v3862_v8, %v4552_v54  ;;  %v911_v14 = vpop.f32.mrb[23].mxu1  ;;  %3876 = vmatmul.mubr.msk.bf16.gmra.mrb[16].mxu0 %vm633_vm0, %v944_v1  ;;  %v1470_v15 = vsel %vm1427_vm12, %v4629_v4, -inf }
 0x1e3   : > { %v935_v16 = vmax.f32 %v4634_v7, 0.0  ;;  %v4646_v18 = vadd.f32 %v4552_v54, %v911_v14  ;;  %1471 = vmax.xlane.f32.xlu1 %v1470_v15  ;;  %1456 = vmax.xlane.f32.xlu0 %v1455_v6  ;;  %v1464_v20 = vsel %vm1427_vm12, %v4634_v7, -inf }
 0x1e4   : > { %v938_v19 = vmax.f32 %v4639_v12, 0.0  ;;  %v1473_v21 = vsel %vm1427_vm12, %v4639_v12, -inf }
 0x1e5   : > { %v936_v22 = vmax.f32 %v4646_v18, 0.0  ;;  %v1467_v54 = vsel %vm1427_vm12, %v4646_v18, -inf }
 0x1e6   : > { %v946_v23 = vpack.c.bf16 %v938_v19, %v937_v10 }
 0x1e7   : > { %v945_v24 = vpack.c.bf16 %v936_v22, %v935_v16  ;;  %1465 = vmax.xlane.f32.xlu1 %v1464_v20  ;;  %1474 = vmax.xlane.f32.xlu0 %v1473_v21 }
 0x1e9   : > { %3879 = vmatprep.mubr.msk.bf16.mxu0 %vm633_vm0, %v945_v24 }
 0x1ea   : > { %3880 = vmatmul.mubr.msk.bf16.gmra.mrb[20].mxu0 %vm633_vm0, %v946_v23 }
 0x1eb   : > { %1468 = vmax.xlane.f32.xlu0 %v1467_v54 }
 0x258   : > { %v1436_v34 = vpop.xlane.xlu0 %1435 }
 0x259   : > { %v4665_v40 = vsub.f32 %v4555_v56, %v1436_v34 }
 0x25b   : > { %v1496_v43 = vmul.f32 1.442695, %v4665_v40  ;;  %v1433_v47 = vpop.xlane.xlu1 %1432 }
 0x25c   : > { %v4669_v50 = vsub.f32 %v4566_v63, %v1433_v47  ;;  %v1430_v51 = vpop.xlane.xlu0 %1429 }
 0x25d   : > { %3958 = vpow2.f32 %v1496_v43  ;;  %v4672_v55 = vsub.f32 %v4558_v58, %v1430_v51 }
 0x25e   : > { %v1494_v59 = vmul.f32 1.442695, %v4669_v50 }
 0x25f   : > { %v1492_v61 = vmul.f32 1.442695, %v4672_v55 }
 0x260   : > { %3960 = vpow2.f32 %v1494_v59  ;;  %v1448_v62 = vpop.xlane.xlu1 %1447  ;;  %v1439_v0 = vpop.xlane.xlu0 %1438 }
 0x261   : > { %3962 = vpow2.f32 %v1492_v61  ;;  %v4677_v56 = vsub.f32 %v4577_v9, %v1448_v62  ;;  %v4680_v1 = vsub.f32 %v4561_v60, %v1439_v0 }
 0x263   : > { %v1504_v63 = vmul.f32 1.442695, %v4677_v56  ;;  %v1498_v2 = vmul.f32 1.442695, %v4680_v1 }
 0x264   : > { %v1442_v58 = vpop.xlane.xlu1 %1441  ;;  %v1451_v3 = vpop.xlane.xlu0 %1450 }
 0x265   : > { %3964 = vpow2.f32 %v1504_v63  ;;  %v4685_v5 = vsub.f32 %v4580_v11, %v1442_v58  ;;  %v4688_v6 = vsub.f32 %v4584_v13, %v1451_v3 }
 0x266   : > { %3966 = vpow2.f32 %v1498_v2 }
 0x267   : > { %v4690_v8 = vpop.eup %3958  ;;  %v1500_v9 = vmul.f32 1.442695, %v4685_v5  ;;  %v1506_v60 = vmul.f32 1.442695, %v4688_v6 }
 0x268   : > { %1544 = vrot.lane.b32.xlu1 %v4690_v8, %s4352_s19  ;;  %v1460_v10 = vpop.xlane.xlu1 %1459  ;;  %v1445_v14 = vpop.xlane.xlu0 %1444 }
 0x269   : > { %3968 = vpow2.f32 %v1500_v9  ;;  %v4697_v11 = vsub.f32 %v4603_v28, %v1460_v10  ;;  %v4700_v13 = vsub.f32 %v4592_v17, %v1445_v14 }
 0x26a   : > { %v4702_v15 = vpop.eup %3960  ;;  %3970 = vpow2.f32 %v1506_v60 }
 0x26b   : > { %v4704_v16 = vpop.eup %3962  ;;  %v1512_v19 = vmul.f32 1.442695, %v4697_v11  ;;  %v1502_v20 = vmul.f32 1.442695, %v4700_v13  ;;  %1542 = vrot.lane.b32.xlu0 %v4702_v15, %s4352_s19 }
 0x26c   : > { %v1454_v21 = vpop.xlane.xlu1 %1453  ;;  %1540 = vrot.lane.b32.xlu1 %v4704_v16, %s4352_s19  ;;  %v1463_v28 = vpop.xlane.xlu0 %1462 }
 0x26d   : > { %3972 = vpow2.f32 %v1512_v19  ;;  %v4713_v17 = vsub.f32 %v4606_v37, %v1454_v21  ;;  %v4716_v22 = vsub.f32 %v4611_v46, %v1463_v28  ;;  %v4795_v21 = vld [vmem:[%s6619_s7] ss:$0 sm:$0xff] }
 0x26e   : > { %3974 = vpow2.f32 %v1502_v20 }
 0x26f   : > { %v4718_v23 = vpop.eup %3964  ;;  %v1508_v24 = vmul.f32 1.442695, %v4713_v17  ;;  %v1514_v54 = vmul.f32 1.442695, %v4716_v22 }
 0x270   : > { %v4722_v25 = vpop.eup %3966  ;;  %v1472_v26 = vpop.xlane.xlu1 %1471  ;;  %1552 = vrot.lane.b32.xlu0 %v4718_v23, %s4352_s19 }
 0x271   : > { %v1457_v34 = vpop.xlane.xlu0 %1456  ;;  %3976 = vpow2.f32 %v1508_v24  ;;  %v4727_v37 = vsub.f32 %v4629_v4, %v1472_v26  ;;  %1546 = vrot.lane.b32.xlu1 %v4722_v25, %s4352_s19 }
 0x272   : > { %v4732_v46 = vsub.f32 %v4620_v57, %v1457_v34  ;;  %3978 = vpow2.f32 %v1514_v54 }
 0x273   : > { %v4734_v43 = vpop.eup %3968  ;;  %v1520_v47 = vmul.f32 1.442695, %v4727_v37 }
 0x274   : > { %v1510_v51 = vmul.f32 1.442695, %v4732_v46  ;;  %v4738_v59 = vpop.eup %3970  ;;  %v1466_v61 = vpop.xlane.xlu1 %1465  ;;  %1548 = vrot.lane.b32.xlu0 %v4734_v43, %s4352_s19 }
 0x275   : > { %v1475_v4 = vpop.xlane.xlu0 %1474  ;;  %3980 = vpow2.f32 %v1520_v47  ;;  %v4743_v62 = vsub.f32 %v4634_v7, %v1466_v61  ;;  %1554 = vrot.lane.b32.xlu1 %v4738_v59, %s4352_s19 }
 0x276   : > { %v4748_v57 = vsub.f32 %v4639_v12, %v1475_v4  ;;  %3982 = vpow2.f32 %v1510_v51 }
 0x277   : > { %v4750_v0 = vpop.eup %3972  ;;  %v1516_v63 = vmul.f32 1.442695, %v4743_v62 }
 0x278   : > { %v1522_v2 = vmul.f32 1.442695, %v4748_v57  ;;  %v4754_v58 = vpop.eup %3974  ;;  %1560 = vrot.lane.b32.xlu0 %v4750_v0, %s4352_s19 }
 0x279   : > { %v1469_v7 = vpop.xlane.xlu0 %1468  ;;  %3984 = vpow2.f32 %v1516_v63  ;;  %1550 = vrot.lane.b32.xlu1 %v4754_v58, %s4352_s19 }
 0x27a   : > { %v4761_v12 = vsub.f32 %v4646_v18, %v1469_v7  ;;  %3986 = vpow2.f32 %v1522_v2 }
 0x27b   : > { %v4763_v3 = vpop.eup %3976 }
 0x27c   : > { %v1518_v9 = vmul.f32 1.442695, %v4761_v12  ;;  %v4766_v60 = vpop.eup %3978  ;;  %1556 = vrot.lane.b32.xlu0 %v4763_v3, %s4352_s19 }
 0x27d   : > { %1562 = vrot.lane.b32.xlu1 %v4766_v60, %s4352_s19 }
 0x27e   : > { %3988 = vpow2.f32 %v1518_v9 }
 0x27f   : > { %v4772_v10 = vpop.eup %3980 }
 0x280   : > { %v4774_v14 = vpop.eup %3982  ;;  %1568 = vrot.lane.b32.xlu0 %v4772_v10, %s4352_s19 }
 0x281   : > { %1558 = vrot.lane.b32.xlu1 %v4774_v14, %s4352_s19 }
 0x283   : > { %v4780_v18 = vpop.eup %3984 }
 0x284   : > { %v4782_v19 = vpop.eup %3986  ;;  %1564 = vrot.lane.b32.xlu0 %v4780_v18, %s4352_s19 }
 0x285   : > { %1570 = vrot.lane.b32.xlu1 %v4782_v19, %s4352_s19 }
 0x288   : > { %v4788_v20 = vpop.eup %3988 }
 0x289   : > { %1566 = vrot.lane.b32.xlu1 %v4788_v20, %s4352_s19 }
 0x2a5   : > { %v3869_v28 = vpop.f32.mrb[8].mxu0 }
 0x2a6   : > { %v1028_v24 = vpop.f32.mrb[9].mxu0  ;;  %v4801_v34 = vadd.f32 %v3869_v28, %v4795_v21 }
 0x2a7   : > { %v4798_v54 = vadd.f32 %v4795_v21, %v1028_v24  ;;  %v3870_v26 = vpop.f32.mrb[10].mxu0 }
 0x2a8   : > { %v4804_v47 = vadd.f32 %v3870_v26, %v4795_v21  ;;  %v1031_v51 = vpop.f32.mrb[11].mxu0  ;;  %v1093_v9 = vmax.f32 %v4801_v34, 0.0  ;;  %v1995_v28 = vsel %vm1427_vm12, %v4801_v34, -inf }
 0x2a9   : > { %v4807_v61 = vadd.f32 %v4795_v21, %v1031_v51  ;;  %v1091_v2 = vmax.f32 %v4798_v54, 0.0 }
 0x2aa   : > { %v1094_v4 = vmax.f32 %v4804_v47, 0.0  ;;  %v1998_v63 = vsel %vm1427_vm12, %v4804_v47, -inf }
 0x2ab   : > { %v1092_v7 = vmax.f32 %v4807_v61, 0.0  ;;  %1999 = vmax.xlane.f32.xlu0 %v1998_v63  ;;  %v1992_v48 = vsel %vm1427_vm12, %v4807_v61, -inf }
 0x2ac   : > { %v1108_v51 = vpack.c.bf16 %v1094_v4, %v1093_v9  ;;  %v1989_v4 = vsel %vm1427_vm12, %v4798_v54, -inf }
 0x2ad   : > { %v1107_v24 = vpack.c.bf16 %v1092_v7, %v1091_v2  ;;  %1996 = vmax.xlane.f32.xlu1 %v1995_v28  ;;  %v3873_v26 = vpop.f32.mrb[12].mxu0 }
 0x2ae   : > { %v1044_v30 = vpop.f32.mrb[13].mxu0  ;;  %v4824_v63 = vadd.f32 %v3873_v26, %v4795_v21 }
 0x2af   : > { %v4820_v52 = vadd.f32 %v4795_v21, %v1044_v30  ;;  %v3874_v42 = vpop.f32.mrb[14].mxu0  ;;  %1993 = vmax.xlane.f32.xlu0 %v1992_v48  ;;  %3887 = vmatprep.mubr.msk.bf16.mxu1 %vm633_vm0, %v1107_v24 }
 0x2b0   : > { %v4827_v49 = vadd.f32 %v3874_v42, %v4795_v21  ;;  %v1047_v2 = vpop.f32.mrb[15].mxu0  ;;  %3888 = vmatmul.mubr.msk.bf16.vlgmr.msra.gmra.mrb[24].mxu1 %vm633_vm0, %v1108_v51  ;;  %v1097_v28 = vmax.f32 %v4824_v63, 0.0  ;;  %v2007_v24 = vsel %vm1427_vm12, %v4824_v63, -inf }
 0x2b1   : > { %v4833_v7 = vadd.f32 %v4795_v21, %v1047_v2  ;;  %1990 = vmax.xlane.f32.xlu1 %v1989_v4  ;;  %v1095_v9 = vmax.f32 %v4820_v52, 0.0 }
 0x2b2   : > { %v1098_v30 = vmax.f32 %v4827_v49, 0.0  ;;  %v2010_v48 = vsel %vm1427_vm12, %v4827_v49, -inf }
 0x2b3   : > { %v1096_v42 = vmax.f32 %v4833_v7, 0.0  ;;  %2011 = vmax.xlane.f32.xlu0 %v2010_v48  ;;  %v2004_v53 = vsel %vm1427_vm12, %v4833_v7, -inf }
 0x2b4   : > { %v1110_v2 = vpack.c.bf16 %v1098_v30, %v1097_v28 }
 0x2b5   : > { %v1109_v26 = vpack.c.bf16 %v1096_v42, %v1095_v9  ;;  %2008 = vmax.xlane.f32.xlu1 %v2007_v24  ;;  %v3877_v51 = vpop.f32.mrb[16].mxu0  ;;  %v2001_v42 = vsel %vm1427_vm12, %v4820_v52, -inf }
 0x2b6   : > { %v4844_v4 = vadd.f32 %v3877_v51, %v4795_v21  ;;  %v1060_v45 = vpop.f32.mrb[17].mxu0 }
 0x2b7   : > { %v4849_v36 = vadd.f32 %v4795_v21, %v1060_v45  ;;  %v3878_v48 = vpop.f32.mrb[18].mxu0  ;;  %2005 = vmax.xlane.f32.xlu0 %v2004_v53  ;;  %3891 = vmatprep.mubr.msk.bf16.mxu1 %vm633_vm0, %v1109_v26 }
 0x2b8   : > { %v1101_v39 = vmax.f32 %v4844_v4, 0.0  ;;  %v4854_v9 = vadd.f32 %v3878_v48, %v4795_v21  ;;  %v1063_v30 = vpop.f32.mrb[19].mxu0  ;;  %3892 = vmatmul.mubr.msk.bf16.gmra.mrb[28].mxu1 %vm633_vm0, %v1110_v2  ;;  %v2019_v26 = vsel %vm1427_vm12, %v4844_v4, -inf }
 0x2b9   : > { %v1099_v28 = vmax.f32 %v4849_v36, 0.0  ;;  %v4861_v45 = vadd.f32 %v4795_v21, %v1063_v30  ;;  %2002 = vmax.xlane.f32.xlu1 %v2001_v42 }
 0x2ba   : > { %v1102_v53 = vmax.f32 %v4854_v9, 0.0  ;;  %v2022_v24 = vsel %vm1427_vm12, %v4854_v9, -inf }
 0x2bb   : > { %v1100_v51 = vmax.f32 %v4861_v45, 0.0  ;;  %2023 = vmax.xlane.f32.xlu0 %v2022_v24  ;;  %v2016_v42 = vsel %vm1427_vm12, %v4861_v45, -inf }
 0x2bc   : > { %v1112_v48 = vpack.c.bf16 %v1102_v53, %v1101_v39 }
 0x2bd   : > { %v1111_v33 = vpack.c.bf16 %v1100_v51, %v1099_v28  ;;  %2020 = vmax.xlane.f32.xlu1 %v2019_v26  ;;  %v3881_v2 = vpop.f32.mrb[20].mxu0  ;;  %v2013_v28 = vsel %vm1427_vm12, %v4849_v36, -inf }
 0x2be   : > { %v4870_v32 = vadd.f32 %v3881_v2, %v4795_v21  ;;  %v1076_v30 = vpop.f32.mrb[21].mxu0 }
 0x2bf   : > { %v4875_v31 = vadd.f32 %v4795_v21, %v1076_v30  ;;  %v3882_v41 = vpop.f32.mrb[22].mxu0  ;;  %2017 = vmax.xlane.f32.xlu0 %v2016_v42  ;;  %3895 = vmatprep.mubr.msk.bf16.mxu1 %vm633_vm0, %v1111_v33 }
 0x2c0   : > { %v1105_v24 = vmax.f32 %v4870_v32, 0.0  ;;  %v4880_v39 = vadd.f32 %v3882_v41, %v4795_v21  ;;  %3896 = vmatmul.mubr.msk.bf16.gmra.mrb[32].mxu1 %vm633_vm0, %v1112_v48  ;;  %v1079_v53 = vpop.f32.mrb[23].mxu0  ;;  %v2031_v41 = vsel %vm1427_vm12, %v4870_v32, -inf }
 0x2c1   : > { %v1103_v26 = vmax.f32 %v4875_v31, 0.0  ;;  %2014 = vmax.xlane.f32.xlu1 %v2013_v28  ;;  %v4887_v51 = vadd.f32 %v4795_v21, %v1079_v53  ;;  %v2025_v21 = vsel %vm1427_vm12, %v4875_v31, -inf }
 0x2c2   : > { %v1106_v2 = vmax.f32 %v4880_v39, 0.0  ;;  %v2034_v33 = vsel %vm1427_vm12, %v4880_v39, -inf }
 0x2c3   : > { %v1104_v30 = vmax.f32 %v4887_v51, 0.0  ;;  %2035 = vmax.xlane.f32.xlu0 %v2034_v33  ;;  %v2028_v48 = vsel %vm1427_vm12, %v4887_v51, -inf }
 0x2c4   : > { %v1114_v42 = vpack.c.bf16 %v1106_v2, %v1105_v24 }
 0x2c5   : > { %v1113_v44 = vpack.c.bf16 %v1104_v30, %v1103_v26  ;;  %2032 = vmax.xlane.f32.xlu1 %v2031_v41 }
 0x2c7   : > { %2029 = vmax.xlane.f32.xlu0 %v2028_v48  ;;  %3899 = vmatprep.mubr.msk.bf16.mxu1 %vm633_vm0, %v1113_v44 }
 0x2c8   : > { %3900 = vmatmul.mubr.msk.bf16.gmra.mrb[36].mxu1 %vm633_vm0, %v1114_v42 }
 0x2c9   : > { %2026 = vmax.xlane.f32.xlu1 %v2025_v21 }
 0x2da   : > { %v1545_v28 = vpop.permute.xlu1 %1544 }
 0x2db   : > { %v1595_v53 = vsel %vm1588_vm13, %v1545_v28, 0.0 }
 0x2dc   : > { %1596 = vadd.xlane.f32.xlu0 %v1595_v53 }
 0x2dd   : > { %v1543_v24 = vpop.permute.xlu0 %1542 }
 0x2de   : > { %v1541_v2 = vpop.permute.xlu1 %1540  ;;  %v1592_v33 = vsel %vm1588_vm13, %v1543_v24, 0.0 }
 0x2df   : > { %1593 = vadd.xlane.f32.xlu1 %v1592_v33  ;;  %v1589_v26 = vsel %vm1588_vm13, %v1541_v2, 0.0 }
 0x2e0   : > { %1590 = vadd.xlane.f32.xlu0 %v1589_v26 }
 0x2e2   : > { %v1553_v41 = vpop.permute.xlu0 %1552 }
 0x2e3   : > { %v1547_v30 = vpop.permute.xlu1 %1546  ;;  %v1607_v44 = vsel %vm1588_vm13, %v1553_v41, 0.0 }
 0x2e4   : > { %v1598_v42 = vsel %vm1588_vm13, %v1547_v30, 0.0  ;;  %1608 = vadd.xlane.f32.xlu1 %v1607_v44 }
 0x2e5   : > { %1599 = vadd.xlane.f32.xlu0 %v1598_v42 }
 0x2e6   : > { %v1549_v48 = vpop.permute.xlu0 %1548 }
 0x2e7   : > { %v1555_v21 = vpop.permute.xlu1 %1554  ;;  %v1601_v28 = vsel %vm1588_vm13, %v1549_v48, 0.0 }
 0x2e8   : > { %v1610_v53 = vsel %vm1588_vm13, %v1555_v21, 0.0  ;;  %1602 = vadd.xlane.f32.xlu1 %v1601_v28 }
 0x2e9   : > { %1611 = vadd.xlane.f32.xlu0 %v1610_v53 }
 0x2ea   : > { %v1561_v24 = vpop.permute.xlu0 %1560 }
 0x2eb   : > { %v1551_v33 = vpop.permute.xlu1 %1550  ;;  %v1619_v2 = vsel %vm1588_vm13, %v1561_v24, 0.0 }
 0x2ec   : > { %v1604_v26 = vsel %vm1588_vm13, %v1551_v33, 0.0  ;;  %1620 = vadd.xlane.f32.xlu1 %v1619_v2 }
 0x2ed   : > { %1605 = vadd.xlane.f32.xlu0 %v1604_v26 }
 0x2ee   : > { %v1557_v41 = vpop.permute.xlu0 %1556 }
 0x2ef   : > { %v1563_v30 = vpop.permute.xlu1 %1562  ;;  %v1613_v44 = vsel %vm1588_vm13, %v1557_v41, 0.0 }
 0x2f0   : > { %v1622_v42 = vsel %vm1588_vm13, %v1563_v30, 0.0  ;;  %1614 = vadd.xlane.f32.xlu1 %v1613_v44  ;;  %v3956_v44 = vld [vmem:[%s6622_s10] sm:$0xff]  }
 0x2f1   : > { %1623 = vadd.xlane.f32.xlu0 %v1622_v42  ;;  %3903 = vmatprep.subr.bf16.mxu0 %v3956_v44  ;;  %v3957_v42 = vld [vmem:[%s6622_s10 + $0x8] sm:$0xff]  }
 0x2f2   : > { %v1569_v48 = vpop.permute.xlu0 %1568  ;;  %3904 = vmatpush3.bf16.msra.mxu0 %v3956_v44 }
 0x2f3   : > { %v1559_v21 = vpop.permute.xlu1 %1558  ;;  %v1631_v28 = vsel %vm1588_vm13, %v1569_v48, 0.0  ;;  %3905 = vmatprep.subr.bf16.mxu0 %v3957_v42 }
 0x2f4   : > { %v1616_v53 = vsel %vm1588_vm13, %v1559_v21, 0.0  ;;  %1632 = vadd.xlane.f32.xlu1 %v1631_v28 }
 0x2f5   : > { %1617 = vadd.xlane.f32.xlu0 %v1616_v53 }
 0x2f6   : > { %v1565_v24 = vpop.permute.xlu0 %1564  ;;  %3906 = vmatpush3.bf16.msra.mxu0 %v3957_v42 }
 0x2f7   : > { %v1571_v33 = vpop.permute.xlu1 %1570  ;;  %v1625_v2 = vsel %vm1588_vm13, %v1565_v24, 0.0 }
 0x2f8   : > { %v1634_v26 = vsel %vm1588_vm13, %v1571_v33, 0.0  ;;  %1626 = vadd.xlane.f32.xlu1 %v1625_v2 }
 0x2f9   : > { %1635 = vadd.xlane.f32.xlu0 %v1634_v26 }
 0x2fb   : > { %v1567_v41 = vpop.permute.xlu1 %1566 }
 0x2fc   : > { %v1628_v30 = vsel %vm1588_vm13, %v1567_v41, 0.0 }
 0x2fd   : > { %1629 = vadd.xlane.f32.xlu0 %v1628_v30 }
 0x338   : > { %v2000_v48 = vpop.xlane.xlu0 %1999 }
 0x339   : > { %v4931_v2 = vsub.f32 %v4804_v47, %v2000_v48 }
 0x33a   : > { %v1997_v21 = vpop.xlane.xlu1 %1996 }
 0x33b   : > { %v4924_v28 = vsub.f32 %v4801_v34, %v1997_v21  ;;  %6722 = vst [vmem:[#allocation15_spill] sm:$0xff] %v4931_v2  ;;  %v2059_v42 = vmul.f32 1.442695, %v4931_v2 }
 0x33c   : > { %v1994_v53 = vpop.xlane.xlu0 %1993 }
 0x33d   : > { %v2057_v24 = vmul.f32 1.442695, %v4924_v28  ;;  %v4928_v33 = vsub.f32 %v4807_v61, %v1994_v53 }
 0x33e   : > { %v1991_v26 = vpop.xlane.xlu1 %1990 }
 0x33f   : > { %3990 = vpow2.f32 %v2057_v24  ;;  %v2055_v41 = vmul.f32 1.442695, %v4928_v33  ;;  %v4935_v30 = vsub.f32 %v4798_v54, %v1991_v26 }
 0x340   : > { %v2012_v44 = vpop.xlane.xlu0 %2011 }
 0x341   : > { %3992 = vpow2.f32 %v2055_v41  ;;  %v2053_v34 = vmul.f32 1.442695, %v4935_v30  ;;  %v4940_v21 = vsub.f32 %v4827_v49, %v2012_v44 }
 0x342   : > { %v2009_v61 = vpop.xlane.xlu1 %2008 }
 0x343   : > { %6723 = vst [vmem:[#allocation16_spill] sm:$0xff] %v4940_v21  ;;  %3994 = vpow2.f32 %v2053_v34  ;;  %v4943_v47 = vsub.f32 %v4824_v63, %v2009_v61  ;;  %v2067_v54 = vmul.f32 1.442695, %v4940_v21 }
 0x344   : > { %v2006_v48 = vpop.xlane.xlu0 %2005  ;;  %3996 = vpow2.f32 %v2059_v42 }
 0x345   : > { %v2065_v53 = vmul.f32 1.442695, %v4943_v47  ;;  %v4948_v24 = vsub.f32 %v4833_v7, %v2006_v48 }
 0x346   : > { %v2003_v26 = vpop.xlane.xlu1 %2002 }
 0x347   : > { %6724 = vst [vmem:[#allocation17_spill] sm:$0xff] %v4948_v24  ;;  %3998 = vpow2.f32 %v2065_v53  ;;  %v4951_v41 = vsub.f32 %v4820_v52, %v2003_v26  ;;  %v2063_v34 = vmul.f32 1.442695, %v4948_v24 }
 0x348   : > { %v2024_v49 = vpop.xlane.xlu0 %2023  ;;  %4000 = vpow2.f32 %v2067_v54 }
 0x349   : > { %v4953_v44 = vpop.eup %3990  ;;  %v2061_v63 = vmul.f32 1.442695, %v4951_v41  ;;  %v4958_v42 = vsub.f32 %v4854_v9, %v2024_v49 }
 0x34a   : > { %2105 = vrot.lane.b32.xlu1 %v4953_v44, %s4352_s19  ;;  %v2021_v7 = vpop.xlane.xlu1 %2020 }
 0x34b   : > { %6725 = vst [vmem:[#allocation18_spill] sm:$0xff] %v4958_v42  ;;  %v4962_v61 = vpop.eup %3992  ;;  %4002 = vpow2.f32 %v2061_v63  ;;  %v4965_v52 = vsub.f32 %v4844_v4, %v2021_v7  ;;  %v2075_v9 = vmul.f32 1.442695, %v4958_v42 }
 0x34c   : > { %2103 = vrot.lane.b32.xlu0 %v4962_v61, %s4352_s19  ;;  %v2018_v48 = vpop.xlane.xlu0 %2017  ;;  %4004 = vpow2.f32 %v2063_v34 }
 0x34d   : > { %6726 = vst [vmem:[#allocation19_spill] sm:$0xff] %v4965_v52  ;;  %v4969_v53 = vpop.eup %3994  ;;  %v2073_v54 = vmul.f32 1.442695, %v4965_v52  ;;  %v4974_v26 = vsub.f32 %v4861_v45, %v2018_v48 }
 0x34e   : > { %6727 = vst [vmem:[#allocation20_spill] sm:$0xff] %v4969_v53  ;;  %2101 = vrot.lane.b32.xlu1 %v4969_v53, %s4352_s19  ;;  %v2015_v49 = vpop.xlane.xlu1 %2014  ;;  %v4981_v63 = vpop.eup %3996 }
 0x34f   : > { %6728 = vst [vmem:[#allocation21_spill] sm:$0xff] %v4974_v26  ;;  %4006 = vpow2.f32 %v2073_v54  ;;  %v4979_v4 = vsub.f32 %v4849_v36, %v2015_v49  ;;  %6730 = vst [vmem:[#allocation23_spill] sm:$0xff] %v4981_v63  ;;  %v2071_v42 = vmul.f32 1.442695, %v4974_v26 }
 0x350   : > { %v2036_v7 = vpop.xlane.xlu0 %2035  ;;  %4008 = vpow2.f32 %v2075_v9 }
 0x351   : > { %6729 = vst [vmem:[#allocation22_spill] sm:$0xff] %v4979_v4  ;;  %v4983_v24 = vpop.eup %3998  ;;  %v2069_v34 = vmul.f32 1.442695, %v4979_v4  ;;  %v4988_v45 = vsub.f32 %v4880_v39, %v2036_v7 }
 0x352   : > { %6731 = vst [vmem:[#allocation24_spill] sm:$0xff] %v4983_v24  ;;  %2107 = vrot.lane.b32.xlu1 %v4981_v63, %s4352_s19  ;;  %2113 = vrot.lane.b32.xlu0 %v4983_v24, %s4352_s19  ;;  %v2033_v36 = vpop.xlane.xlu1 %2032  ;;  %v4997_v54 = vpop.eup %4000 }
 0x353   : > { %6732 = vst [vmem:[#allocation25_spill] sm:$0xff] %v4988_v45  ;;  %4010 = vpow2.f32 %v2069_v34  ;;  %v4995_v48 = vsub.f32 %v4870_v32, %v2033_v36  ;;  %6734 = vst [vmem:[#allocation27_spill] sm:$0xff] %v4997_v54  ;;  %v2083_v39 = vmul.f32 1.442695, %v4988_v45 }
 0x354   : > { %v2030_v49 = vpop.xlane.xlu0 %2029  ;;  %4012 = vpow2.f32 %v2071_v42 }
 0x355   : > { %6733 = vst [vmem:[#allocation26_spill] sm:$0xff] %v4995_v48  ;;  %v4999_v9 = vpop.eup %4002  ;;  %v2081_v26 = vmul.f32 1.442695, %v4995_v48  ;;  %v5008_v32 = vsub.f32 %v4887_v51, %v2030_v49 }
 0x356   : > { %6735 = vst [vmem:[#allocation28_spill] sm:$0xff] %v4999_v9  ;;  %2115 = vrot.lane.b32.xlu1 %v4997_v54, %s4352_s19  ;;  %2109 = vrot.lane.b32.xlu0 %v4999_v9, %s4352_s19  ;;  %v2027_v7 = vpop.xlane.xlu1 %2026  ;;  %v5013_v36 = vpop.eup %4004 }
 0x357   : > { %4014 = vpow2.f32 %v2081_v26  ;;  %6736 = vst [vmem:[#allocation29_spill] sm:$0xff] %v5008_v32  ;;  %v5011_v34 = vsub.f32 %v4875_v31, %v2027_v7  ;;  %6738 = vst [vmem:[#allocation31_spill] sm:$0xff] %v5013_v36  ;;  %v2079_v26 = vmul.f32 1.442695, %v5008_v32 }
 0x358   : > { %4016 = vpow2.f32 %v2083_v39 }
 0x359   : > { %6737 = vst [vmem:[#allocation30_spill] sm:$0xff] %v5011_v34  ;;  %v5015_v48 = vpop.eup %4006  ;;  %v2077_v42 = vmul.f32 1.442695, %v5011_v34 }
 0x35a   : > { %6739 = vst [vmem:[#allocation32_spill] sm:$0xff] %v5015_v48  ;;  %2111 = vrot.lane.b32.xlu1 %v5013_v36, %s4352_s19  ;;  %2121 = vrot.lane.b32.xlu0 %v5015_v48, %s4352_s19  ;;  %v5023_v51 = vpop.eup %4008 }
 0x35b   : > { %4018 = vpow2.f32 %v2077_v42  ;;  %6740 = vst [vmem:[#allocation33_spill] sm:$0xff] %v5023_v51 }
 0x35c   : > { %4020 = vpow2.f32 %v2079_v26 }
 0x35d   : > { %v5025_v31 = vpop.eup %4010 }
 0x35e   : > { %6741 = vst [vmem:[#allocation34_spill] sm:$0xff] %v5025_v31  ;;  %2123 = vrot.lane.b32.xlu1 %v5023_v51, %s4352_s19  ;;  %2117 = vrot.lane.b32.xlu0 %v5025_v31, %s4352_s19  ;;  %v5031_v49 = vpop.eup %4012 }
 0x35f   : > { %6742 = vst [vmem:[#allocation35_spill] sm:$0xff] %v5031_v49 }
 0x361   : > { %v5033_v39 = vpop.eup %4014 }
 0x362   : > { %6743 = vst [vmem:[#allocation36_spill] sm:$0xff] %v5033_v39  ;;  %2119 = vrot.lane.b32.xlu1 %v5031_v49, %s4352_s19  ;;  %2129 = vrot.lane.b32.xlu0 %v5033_v39, %s4352_s19  ;;  %v5039_v7 = vpop.eup %4016 }
 0x363   : > { %6744 = vst [vmem:[#allocation37_spill] sm:$0xff] %v5039_v7 }
 0x365   : > { %v5041_v42 = vpop.eup %4018 }
 0x366   : > { %6745 = vst [vmem:[#allocation38_spill] sm:$0xff] %v5041_v42  ;;  %2131 = vrot.lane.b32.xlu1 %v5039_v7, %s4352_s19  ;;  %2125 = vrot.lane.b32.xlu0 %v5041_v42, %s4352_s19  ;;  %v5047_v26 = vpop.eup %4020 }
 0x367   : > { %6746 = vst [vmem:[#allocation39_spill] sm:$0xff] %v5047_v26 }
 0x369   : > { %v1597_v34 = vpop.xlane.xlu0 %1596 }
 0x36a   : > { %4022 = vlog2.f32 %v1597_v34  ;;  %2127 = vrot.lane.b32.xlu1 %v5047_v26, %s4352_s19 }
 0x36c   : > { %v1594_v32 = vpop.xlane.xlu1 %1593 }
 0x36d   : > { %4024 = vlog2.f32 %v1594_v32  ;;  %v1591_v39 = vpop.xlane.xlu0 %1590 }
 0x36e   : > { %4026 = vrcp.f32 %v1594_v32 }
 0x36f   : > { %4028 = vlog2.f32 %v1591_v39 }
 0x370   : > { %4030 = vrcp.f32 %v1597_v34 }
 0x371   : > { %v1609_v45 = vpop.xlane.xlu1 %1608 }
 0x372   : > { %v1600_v31 = vpop.xlane.xlu0 %1599  ;;  %4032 = vlog2.f32 %v1609_v45 }
 0x373   : > { %4034 = vlog2.f32 %v1600_v31 }
 0x374   : > { %v4023_v7 = vpop.eup %4022 }
 0x375   : > { %v1603_v48 = vpop.xlane.xlu1 %1602  ;;  %v1642_v42 = vmul.f32 0.6931472, %v4023_v7 }
 0x376   : > { %4036 = vlog2.f32 %v1603_v48  ;;  %v1612_v36 = vpop.xlane.xlu0 %1611 }
 0x377   : > { %v4025_v49 = vpop.eup %4024  ;;  %v1671_v51 = vsub.f32 %v4665_v40, %v1642_v42  ;;  %4038 = vrcp.f32 %v1591_v39 }
 0x378   : > { %v4027_v4 = vpop.eup %4026  ;;  %v1640_v52 = vmul.f32 0.6931472, %v4025_v49  ;;  %4040 = vrcp.f32 %v1609_v45 }
 0x379   : > { %v4029_v26 = vpop.eup %4028  ;;  %1865 = vrot.lane.b32.xlu1 %v1671_v51, %s4352_s19  ;;  %v1702_v63 = vmul.f32 %v4027_v4, %v4702_v15  ;;  %4042 = vrcp.f32 %v1600_v31  ;;  %v5058_v42 = vpop.xlane.xlu1 %1620 }
 0x37a   : > { %v1638_v32 = vmul.f32 0.6931472, %v4029_v26  ;;  %v1670_v34 = vsub.f32 %v4669_v50, %v1640_v52  ;;  %v4031_v54 = vpop.eup %4030  ;;  %4044 = vlog2.f32 %v1612_v36  ;;  %v1606_v45 = vpop.xlane.xlu0 %1605 }
 0x37b   : > { %v1703_v39 = vmul.f32 %v4031_v54, %v4690_v8  ;;  %4046 = vrcp.f32 %v1603_v48  ;;  %v5067_v8 = vld [vmem:[%s6621_s9] ss:$0 sm:$0xff] }
 0x37c   : > { %v4033_v21 = vpop.eup %4032  ;;  %1863 = vrot.lane.b32.xlu0 %v1670_v34, %s4352_s19  ;;  %v1669_v7 = vsub.f32 %v4672_v55, %v1638_v32  ;;  %v1718_v26 = vmul.f32 %v1702_v63, %v1670_v34  ;;  %4048 = vlog2.f32 %v5058_v42 }
 0x37d   : > { %v4035_v40 = vpop.eup %4034  ;;  %v1650_v49 = vmul.f32 0.6931472, %v4033_v21  ;;  %v1719_v15 = vmul.f32 %v1703_v39, %v1671_v51  ;;  %4050 = vlog2.f32 %v1606_v45 }
 0x37e   : > { %1861 = vrot.lane.b32.xlu1 %v1669_v7, %s4352_s19  ;;  %v1644_v52 = vmul.f32 0.6931472, %v4035_v40  ;;  %4052 = vrcp.f32 %v1612_v36 }
 0x37f   : > { %v1675_v21 = vsub.f32 %v4677_v56, %v1650_v49  ;;  %4054 = vrcp.f32 %v1606_v45 }
 0x380   : > { %v4037_v50 = vpop.eup %4036  ;;  %1751 = vrot.lane.b32.xlu0 %v1718_v26, %s4352_s19  ;;  %v1672_v54 = vsub.f32 %v4680_v1, %v1644_v52 }
 0x381   : > { %v1646_v55 = vmul.f32 0.6931472, %v4037_v50  ;;  %v4039_v4 = vpop.eup %4038 }
 0x382   : > { %1753 = vrot.lane.b32.xlu1 %v1719_v15, %s4352_s19  ;;  %v4041_v51 = vpop.eup %4040  ;;  %v1701_v39 = vmul.f32 %v4039_v4, %v4704_v16 }
 0x383   : > { %v3889_v63 = vpop.f32.mrb[24].mxu1  ;;  %v1673_v49 = vsub.f32 %v4685_v5, %v1646_v55  ;;  %v4043_v26 = vpop.eup %4042 }
 0x384   : > { %1873 = vrot.lane.b32.xlu0 %v1675_v21, %s4352_s19  ;;  %v1196_v48 = vpop.f32.mrb[25].mxu1  ;;  %v5076_v34 = vadd.f32 %v3889_v63, %v5067_v8  ;;  %v4045_v50 = vpop.eup %4044  ;;  %v1717_v15 = vmul.f32 %v1701_v39, %v1669_v7  ;;  %v1707_v63 = vmul.f32 %v4041_v51, %v4718_v23  ;;  %v1704_v4 = vmul.f32 %v4043_v26, %v4722_v25 }
 0x385   : > { %v5073_v31 = vadd.f32 %v5067_v8, %v1196_v48  ;;  %v3890_v32 = vpop.f32.mrb[26].mxu1  ;;  %v4047_v48 = vpop.eup %4046  ;;  %v1652_v2 = vmul.f32 0.6931472, %v4045_v50 }
 0x386   : > { %1867 = vrot.lane.b32.xlu1 %v1672_v54, %s4352_s19  ;;  %v5080_v56 = vadd.f32 %v3890_v32, %v5067_v8  ;;  %v1199_v40 = vpop.f32.mrb[27].mxu1  ;;  %v1261_v16 = vmax.f32 %v5076_v34, 0.0  ;;  %v1723_v55 = vmul.f32 %v1707_v63, %v1675_v21  ;;  %v1720_v36 = vmul.f32 %v1704_v4, %v1672_v54 }
 0x387   : > { %v5085_v1 = vadd.f32 %v5067_v8, %v1199_v40  ;;  %v1259_v32 = vmax.f32 %v5073_v31, 0.0  ;;  %v4049_v40 = vpop.eup %4048  ;;  %v1705_v51 = vmul.f32 %v4047_v48, %v4734_v43 }
 0x388   : > { %v1262_v52 = vmax.f32 %v5080_v56, 0.0  ;;  %1869 = vrot.lane.b32.xlu0 %v1673_v49, %s4352_s19  ;;  %v4051_v39 = vpop.eup %4050  ;;  %v1658_v25 = vmul.f32 0.6931472, %v4049_v40 }
 0x389   : > { %v1260_v5 = vmax.f32 %v5085_v1, 0.0  ;;  %v1721_v43 = vmul.f32 %v1705_v51, %v1673_v49  ;;  %v1648_v50 = vmul.f32 0.6931472, %v4051_v39 }
 0x38a   : > { %1749 = vrot.lane.b32.xlu1 %v1717_v15, %s4352_s19  ;;  %v1276_v7 = vpack.c.bf16 %v1262_v52, %v1261_v16  ;;  %v5120_v49 = vsub.f32 %v4697_v11, %v1658_v25 }
 0x38b   : > { %v1275_v9 = vpack.c.bf16 %v1260_v5, %v1259_v32  ;;  %v3893_v53 = vpop.f32.mrb[28].mxu1  ;;  %v4053_v32 = vpop.eup %4052 }
 0x38c   : > { %1761 = vrot.lane.b32.xlu0 %v1723_v55, %s4352_s19  ;;  %v1212_v23 = vpop.f32.mrb[29].mxu1  ;;  %v5102_v21 = vadd.f32 %v3893_v53, %v5067_v8  ;;  %v1676_v53 = vsub.f32 %v4688_v6, %v1652_v2  ;;  %v1674_v6 = vsub.f32 %v4700_v13, %v1648_v50  ;;  %v4055_v13 = vpop.eup %4054 }
 0x38d   : > { %v5098_v24 = vadd.f32 %v5067_v8, %v1212_v23  ;;  %v3894_v15 = vpop.f32.mrb[30].mxu1  ;;  %3907 = vmatprep.mubr.msk.bf16.mxu0 %vm633_vm0, %v1275_v9  ;;  %v1706_v50 = vmul.f32 %v4055_v13, %v4754_v58 }
 0x38e   : > { %1755 = vrot.lane.b32.xlu1 %v1720_v36, %s4352_s19  ;;  %v5106_v26 = vadd.f32 %v3894_v15, %v5067_v8  ;;  %v1215_v54 = vpop.f32.mrb[31].mxu1  ;;  %3908 = vmatmul.mubr.msk.bf16.vlgmr.msra.gmra.mrb[24].mxu0 %vm633_vm0, %v1276_v7  ;;  %v1265_v48 = vmax.f32 %v5102_v21, 0.0  ;;  %v1708_v36 = vmul.f32 %v4053_v32, %v4738_v59 }
 0x38f   : > { %v5110_v45 = vadd.f32 %v5067_v8, %v1215_v54  ;;  %v1263_v9 = vmax.f32 %v5098_v24, 0.0 }
 0x390   : > { %v1266_v52 = vmax.f32 %v5106_v26, 0.0  ;;  %1757 = vrot.lane.b32.xlu0 %v1721_v43, %s4352_s19  ;;  %v1724_v15 = vmul.f32 %v1708_v36, %v1676_v53 }
 0x391   : > { %v1264_v63 = vmax.f32 %v5110_v45, 0.0 }
 0x392   : > { %1875 = vrot.lane.b32.xlu1 %v1676_v53, %s4352_s19  ;;  %v1278_v55 = vpack.c.bf16 %v1266_v52, %v1265_v48 }
 0x393   : > { %v1277_v5 = vpack.c.bf16 %v1264_v63, %v1263_v9  ;;  %v3897_v16 = vpop.f32.mrb[32].mxu1  ;;  %v1722_v63 = vmul.f32 %v1706_v50, %v1674_v6 }
 0x394   : > { %1881 = vrot.lane.b32.xlu0 %v5120_v49, %s4352_s19  ;;  %v1228_v4 = vpop.f32.mrb[33].mxu1  ;;  %v5130_v7 = vadd.f32 %v3897_v16, %v5067_v8 }
 0x395   : > { %v5126_v2 = vadd.f32 %v5067_v8, %v1228_v4  ;;  %v3898_v40 = vpop.f32.mrb[34].mxu1  ;;  %3911 = vmatprep.mubr.msk.bf16.mxu0 %vm633_vm0, %v1277_v5 }
 0x396   : > { %1871 = vrot.lane.b32.xlu1 %v1674_v6, %s4352_s19  ;;  %v5134_v11 = vadd.f32 %v3898_v40, %v5067_v8  ;;  %v1231_v23 = vpop.f32.mrb[35].mxu1  ;;  %3912 = vmatmul.mubr.msk.bf16.gmra.mrb[28].mxu0 %vm633_vm0, %v1278_v55  ;;  %v1269_v43 = vmax.f32 %v5130_v7, 0.0 }
 0x397   : > { %v5139_v51 = vadd.f32 %v5067_v8, %v1231_v23  ;;  %v1267_v25 = vmax.f32 %v5126_v2, 0.0 }
 0x398   : > { %v1270_v39 = vmax.f32 %v5134_v11, 0.0 }
 0x399   : > { %v1268_v54 = vmax.f32 %v5139_v51, 0.0 }
 0x39a   : > { %1763 = vrot.lane.b32.xlu1 %v1724_v15, %s4352_s19  ;;  %v1280_v59 = vpack.c.bf16 %v1270_v39, %v1269_v43  ;;  %v2558_v39 = vsel %vm1427_vm12, %v5080_v56, -inf  ;;  %v1615_v15 = vpop.xlane.xlu1 %1614 }
 0x39b   : > { %v1279_v52 = vpack.c.bf16 %v1268_v54, %v1267_v25  ;;  %v3901_v9 = vpop.f32.mrb[36].mxu1  ;;  %4056 = vlog2.f32 %v1615_v15  ;;  %v1624_v25 = vpop.xlane.xlu0 %1623 }
 0x39c   : > { %v5148_v48 = vadd.f32 %v3901_v9, %v5067_v8  ;;  %v1244_v32 = vpop.f32.mrb[37].mxu1  ;;  %4058 = vlog2.f32 %v1624_v25 }
 0x39d   : > { %3915 = vmatprep.mubr.msk.bf16.mxu0 %vm633_vm0, %v1279_v52  ;;  %v5152_v53 = vadd.f32 %v5067_v8, %v1244_v32  ;;  %v3902_v5 = vpop.f32.mrb[38].mxu1  ;;  %v2549_v52 = vsel %vm1427_vm12, %v5073_v31, -inf }
 0x39e   : > { %1759 = vrot.lane.b32.xlu1 %v1722_v63, %s4352_s19  ;;  %v1273_v16 = vmax.f32 %v5148_v48, 0.0  ;;  %3916 = vmatmul.mubr.msk.bf16.gmra.mrb[32].mxu0 %vm633_vm0, %v1280_v59  ;;  %v5158_v58 = vadd.f32 %v3902_v5, %v5067_v8  ;;  %v1247_v55 = vpop.f32.mrb[39].mxu1 }
 0x39f   : > { %v1271_v4 = vmax.f32 %v5152_v53, 0.0  ;;  %v5162_v6 = vadd.f32 %v5067_v8, %v1247_v55  ;;  %v2555_v8 = vsel %vm1427_vm12, %v5076_v34, -inf  ;;  %v1618_v50 = vpop.xlane.xlu0 %1617 }
 0x3a0   : > { %v1274_v40 = vmax.f32 %v5158_v58, 0.0  ;;  %4060 = vlog2.f32 %v1618_v50 }
 0x3a1   : > { %v1272_v23 = vmax.f32 %v5162_v6, 0.0  ;;  %4062 = vrcp.f32 %v1624_v25 }
 0x3a2   : > { %v1282_v36 = vpack.c.bf16 %v1274_v40, %v1273_v16  ;;  %4064 = vrcp.f32 %v1618_v50 }
 0x3a3   : > { %v1281_v13 = vpack.c.bf16 %v1272_v23, %v1271_v4  ;;  %4066 = vrcp.f32 %v5058_v42  ;;  %v1636_v42 = vpop.xlane.xlu0 %1635 }
 0x3a4   : > { %4068 = vrcp.f32 %v1615_v15 }
 0x3a5   : > { %3919 = vmatprep.mubr.msk.bf16.mxu0 %vm633_vm0, %v1281_v13  ;;  %v4057_v54 = vpop.eup %4056 }
 0x3a6   : > { %3920 = vmatmul.mubr.msk.bf16.gmra.mrb[36].mxu0 %vm633_vm0, %v1282_v36  ;;  %v1654_v43 = vmul.f32 0.6931472, %v4057_v54  ;;  %v4059_v59 = vpop.eup %4058  ;;  %vm510_vm0 = vcmp.eq.s32.totalorder %v4493_v27, %v4509_v35 }
 0x3a7   : > { %v1660_v63 = vmul.f32 0.6931472, %v4059_v59 }
 0x3a8   : > { %v1677_v9 = vsub.f32 %v4713_v17, %v1654_v43 }
 0x3a9   : > { %v1680_v16 = vsub.f32 %v4716_v22, %v1660_v63  ;;  %v2552_v22 = vsel %vm1427_vm12, %v5085_v1, -inf }
 0x3aa   : > { %v4061_v32 = vpop.eup %4060 }
 0x3ab   : > { %v1656_v5 = vmul.f32 0.6931472, %v4061_v32  ;;  %v4063_v55 = vpop.eup %4062 }
 0x3ac   : > { %v1712_v17 = vmul.f32 %v4063_v55, %v4766_v60  ;;  %v4065_v40 = vpop.eup %4064 }
 0x3ad   : > { %v1678_v4 = vsub.f32 %v4732_v46, %v1656_v5  ;;  %v1710_v36 = vmul.f32 %v4065_v40, %v4774_v14  ;;  %v5187_v46 = vpop.xlane.xlu1 %1632  ;;  %v4067_v60 = vpop.eup %4066 }
 0x3ae   : > { %v1728_v23 = vmul.f32 %v1712_v17, %v1680_v16  ;;  %4070 = vlog2.f32 %v5187_v46  ;;  %v4069_v25 = vpop.eup %4068  ;;  %v2570_v17 = vsel %vm1427_vm12, %v5106_v26, -inf }
 0x3af   : > { %v1726_v13 = vmul.f32 %v1710_v36, %v1678_v4  ;;  %4072 = vlog2.f32 %v1636_v42 }
 0x3b3   : > { %2559 = vmax.xlane.f32.xlu0 %v2558_v39  ;;  %v1711_v39 = vmul.f32 %v4067_v60, %v4750_v0  ;;  %v2567_v0 = vsel %vm1427_vm12, %v5102_v21, -inf }
 0x3b5   : > { %v1727_v14 = vmul.f32 %v1711_v39, %v5120_v49  ;;  %v1630_v49 = vpop.xlane.xlu0 %1629 }
 0x3b6   : > { %4074 = vlog2.f32 %v1630_v49 }
 0x3b7   : > { %4076 = vrcp.f32 %v1636_v42  ;;  %v2585_v42 = vsel %vm1427_vm12, %v5152_v53, -inf }
 0x3b8   : > { %v4071_v54 = vpop.eup %4070  ;;  %4078 = vrcp.f32 %v1630_v49  ;;  %v2564_v49 = vsel %vm1427_vm12, %v5110_v45, -inf }
 0x3b9   : > { %v1666_v43 = vmul.f32 0.6931472, %v4071_v54  ;;  %v2573_v54 = vsel %vm1427_vm12, %v5126_v2, -inf }
 0x3bb   : > { %v5196_v15 = vsub.f32 %v4727_v37, %v1666_v43 }
 0x3c2   : > { %2556 = vmax.xlane.f32.xlu1 %v2555_v8  ;;  %v1709_v8 = vmul.f32 %v4069_v25, %v4763_v3  ;;  %v2561_v3 = vsel %vm1427_vm12, %v5098_v24, -inf }
 0x3c4   : > { %v1725_v50 = vmul.f32 %v1709_v8, %v1677_v9 }
 0x3c6   : > { %2550 = vmax.xlane.f32.xlu1 %v2549_v52  ;;  %v4073_v52 = vpop.eup %4072 }
 0x3c7   : > { %v4075_v59 = vpop.eup %4074 }
 0x3c8   : > { %v1664_v37 = vmul.f32 0.6931472, %v4075_v59  ;;  %v4077_v32 = vpop.eup %4076 }
 0x3c9   : > { %1877 = vrot.lane.b32.xlu0 %v1677_v9, %s4352_s19  ;;  %v1668_v9 = vmul.f32 0.6931472, %v4073_v52  ;;  %v4079_v55 = vpop.eup %4078 }
 0x3ca   : > { %v1682_v5 = vsub.f32 %v4761_v12, %v1664_v37  ;;  %v1714_v40 = vmul.f32 %v4079_v55, %v4788_v20  ;;  %v2104_v12 = vpop.permute.xlu0 %2103 }
 0x3cb   : > { %v1684_v63 = vsub.f32 %v4748_v57, %v1668_v9  ;;  %v2152_v52 = vsel %vm1588_vm13, %v2104_v12, 0.0 }
 0x3cc   : > { %v1730_v57 = vmul.f32 %v1714_v40, %v1682_v5 }
 0x3d7   : > { %1883 = vrot.lane.b32.xlu1 %v1680_v16, %s4352_s19  ;;  %v1716_v16 = vmul.f32 %v4077_v32, %v4782_v19 }
 0x3db   : > { %1879 = vrot.lane.b32.xlu1 %v1678_v4, %s4352_s19  ;;  %v1732_v4 = vmul.f32 %v1716_v16, %v1684_v63 }
 0x3df   : > { %1771 = vrot.lane.b32.xlu1 %v1728_v23, %s4352_s19  ;;  %v1627_v23 = vpop.xlane.xlu1 %1626 }
 0x3e0   : > { %4080 = vlog2.f32 %v1627_v23 }
 0x3e1   : > { %4082 = vrcp.f32 %v5187_v46 }
 0x3e2   : > { %4084 = vrcp.f32 %v1627_v23 }
 0x3e3   : > { %1767 = vrot.lane.b32.xlu1 %v1726_v13, %s4352_s19  ;;  %v2114_v13 = vpop.permute.xlu0 %2113  ;;  %v5223_v43 = vpop.permute.xlu1 %2105 }
 0x3e4   : > { %v2167_v59 = vsel %vm1588_vm13, %v2114_v13, 0.0 }
 0x3e7   : > { %v2110_v19 = vpop.permute.xlu0 %2109 }
 0x3e8   : > { %2553 = vmax.xlane.f32.xlu0 %v2552_v22 }
 0x3ea   : > { %v4081_v36 = vpop.eup %4080 }
 0x3eb   : > { %v1662_v22 = vmul.f32 0.6931472, %v4081_v36  ;;  %v2122_v39 = vpop.permute.xlu0 %2121  ;;  %v4083_v40 = vpop.eup %4082 }
 0x3ed   : > { %v5215_v60 = vsub.f32 %v4743_v62, %v1662_v22  ;;  %v2591_v62 = vsel %vm1427_vm12, %v5148_v48, -inf }
 0x3ef   : > { %v2118_v25 = vpop.permute.xlu0 %2117 }
 0x3f3   : > { %v2130_v20 = vpop.permute.xlu0 %2129 }
 0x3f7   : > { %v2126_v8 = vpop.permute.xlu0 %2125 }
 0x3fe   : > { %1769 = vrot.lane.b32.xlu0 %v1727_v14, %s4352_s19  ;;  %v2579_v14 = vsel %vm1427_vm12, %v5130_v7, -inf }
 0x402   : > { %1765 = vrot.lane.b32.xlu0 %v1725_v50, %s4352_s19  ;;  %v5227_v50 = vpop.permute.xlu0 %1863 }
 0x406   : > { %1889 = vrot.lane.b32.xlu0 %v5196_v15, %s4352_s19 }
 0x407   : > { %2568 = vmax.xlane.f32.xlu1 %v2567_v0  ;;  %v5231_v0 = vpop.permute.xlu1 %2101 }
 0x40b   : > { %2562 = vmax.xlane.f32.xlu1 %v2561_v3  ;;  %v1752_v3 = vpop.permute.xlu0 %1751  ;;  %v5237_v9 = vpop.permute.xlu1 %2107 }
 0x40f   : > { %v5240_v37 = vpop.permute.xlu0 %1873  ;;  %v5251_v46 = vpop.permute.xlu1 %2115 }
 0x413   : > { %v5264_v13 = vpop.permute.xlu1 %2111 }
 0x41c   : > { %1891 = vrot.lane.b32.xlu1 %v1684_v63, %s4352_s19 }
 0x420   : > { %1887 = vrot.lane.b32.xlu1 %v1682_v5, %s4352_s19  ;;  %v2161_v5 = vsel %vm1588_vm13, %v2110_v19, 0.0  ;;  %v2173_v19 = vsel %vm1588_vm13, %v2118_v25, 0.0 }
 0x424   : > { %1779 = vrot.lane.b32.xlu1 %v1732_v4, %s4352_s19  ;;  %v5253_v4 = vpop.permute.xlu0 %1869 }
 0x425   : > { %2571 = vmax.xlane.f32.xlu0 %v2570_v17  ;;  %v2179_v17 = vsel %vm1588_vm13, %v2122_v39, 0.0 }
 0x428   : > { %1775 = vrot.lane.b32.xlu1 %v1730_v57, %s4352_s19  ;;  %v5259_v57 = vld [vmem:[%s6623_s11] ss:$0 sm:$0xff] }
 0x43b   : > { %1885 = vrot.lane.b32.xlu0 %v5215_v60, %s4352_s19 }
 0x44c   : > { %2580 = vmax.xlane.f32.xlu1 %v2579_v14  ;;  %v1762_v14 = vpop.permute.xlu0 %1761 }
 0x450   : > { %2574 = vmax.xlane.f32.xlu1 %v2573_v54 }
 0x454   : > { %2592 = vmax.xlane.f32.xlu1 %v2591_v62 }
 0x458   : > { %2586 = vmax.xlane.f32.xlu1 %v2585_v42  ;;  %v1715_v42 = vmul.f32 %v4083_v40, %v4772_v10 }
 0x45a   : > { %2565 = vmax.xlane.f32.xlu0 %v2564_v49  ;;  %v4085_v49 = vpop.eup %4084 }
 0x45b   : > { %v1713_v25 = vmul.f32 %v4085_v49, %v4780_v18 }
 0x45c   : > { %2153 = vadd.xlane.f32.xlu1 %v2152_v52 }
 0x45d   : > { %v1729_v40 = vmul.f32 %v1713_v25, %v5215_v60  ;;  %v6749_v60 = vmov 0.0  }
 0x45e   : > { %v5301_v49 = vsel %vm507_vm14, 1.0, %v6749_v60  ;;  %v5328_v38 = vsel %vm512_vm15, 1.0, %v6749_v60 }
 0x45f   : > { %6750 = vst [vmem:[#allocation42_spill] sm:$0xff] %v5301_v49  ;;  %6753 = vst [vmem:[#allocation45_spill] sm:$0xff] %v5328_v38 }
 0x460   : > { %2168 = vadd.xlane.f32.xlu1 %v2167_v59  ;;  %v1731_v59 = vmul.f32 %v1715_v42, %v5196_v15 }
 0x461   : > { %v5242_v63 = vpop.f32.mrb[24].mxu0 }
 0x462   : > { %v5244_v32 = vpop.f32.mrb[25].mxu0 }
 0x463   : > { %v5247_v16 = vpop.f32.mrb[26].mxu0 }
 0x464   : > { %2162 = vadd.xlane.f32.xlu1 %v2161_v5  ;;  %v5249_v55 = vpop.f32.mrb[27].mxu0  ;;  %v2191_v5 = vsel %vm1588_vm13, %v2130_v20, 0.0  ;;  %v2185_v20 = vsel %vm1588_vm13, %v2126_v8, 0.0  ;;  %v1800_v8 = vsel %vm1588_vm13, %v1752_v3, 0.0 }
 0x468   : > { %2180 = vadd.xlane.f32.xlu1 %v2179_v17  ;;  %v5281_v17 = vpop.permute.xlu1 %2123 }
 0x469   : > { %v3913_v23 = vpop.f32.mrb[28].mxu0 }
 0x46a   : > { %v5262_v12 = vadd.f32 %v3913_v23, %v5259_v57  ;;  %v1380_v36 = vpop.f32.mrb[29].mxu0 }
 0x46b   : > { %v5267_v22 = vadd.f32 %v5259_v57, %v1380_v36  ;;  %v3914_v39 = vpop.f32.mrb[30].mxu0  ;;  %v1758_v36 = vpop.permute.xlu0 %1757 }
 0x46c   : > { %2174 = vadd.xlane.f32.xlu1 %v2173_v19  ;;  %v5271_v54 = vadd.f32 %v3914_v39, %v5259_v57  ;;  %v1383_v62 = vpop.f32.mrb[31].mxu0  ;;  %v5303_v29 = vpop.permute.xlu1 %2119 }
 0x46d   : > { %v5275_v52 = vadd.f32 %v5259_v57, %v1383_v62 }
 0x470   : > { %2192 = vadd.xlane.f32.xlu1 %v2191_v5  ;;  %1777 = vrot.lane.b32.xlu0 %v1731_v59, %s4352_s19  ;;  %v1910_v59 = vmul.f32 %v5301_v49, %v5227_v50  ;;  %v1882_v5 = vpop.permute.xlu0 %1881 }
 0x471   : > { %v3917_v23 = vpop.f32.mrb[32].mxu0 }
 0x472   : > { %v5284_v19 = vadd.f32 %v3917_v23, %v5259_v57  ;;  %v1396_v10 = vpop.f32.mrb[33].mxu0 }
 0x473   : > { %v5290_v15 = vadd.f32 %v5259_v57, %v1396_v10  ;;  %v3918_v39 = vpop.f32.mrb[34].mxu0 }
 0x474   : > { %6747 = vst [vmem:[#allocation40_spill] sm:$0xff] %v5284_v19  ;;  %2186 = vadd.xlane.f32.xlu1 %v2185_v20  ;;  %v5294_v18 = vadd.f32 %v3918_v39, %v5259_v57  ;;  %1773 = vrot.lane.b32.xlu0 %v1729_v40, %s4352_s19  ;;  %v1399_v62 = vpop.f32.mrb[35].mxu0  ;;  %v1928_v40 = vsel %vm1588_vm13, %v1910_v59, 0.0  ;;  %v1915_v59 = vmul.f32 %v5328_v38, %v5240_v37 }
 0x475   : > { %6748 = vst [vmem:[#allocation41_spill] sm:$0xff] %v5290_v15  ;;  %v5298_v42 = vadd.f32 %v5259_v57, %v1399_v62  ;;  %v5317_v62 = vpop.xlane.xlu0 %2559 }
 0x478   : > { %1801 = vadd.xlane.f32.xlu1 %v1800_v8  ;;  %v5322_v8 = vpop.permute.xlu1 %2131 }
 0x479   : > { %v3921_v25 = vpop.f32.mrb[36].mxu0  ;;  %v1878_v49 = vpop.permute.xlu0 %1877 }
 0x47a   : > { %v5309_v23 = vadd.f32 %v3921_v25, %v5259_v57  ;;  %v1412_v10 = vpop.f32.mrb[37].mxu0 }
 0x47b   : > { %v5315_v20 = vadd.f32 %v5259_v57, %v1412_v10  ;;  %v3922_v39 = vpop.f32.mrb[38].mxu0  ;;  %v1815_v10 = vsel %vm1588_vm13, %v1762_v14, 0.0  ;;  %v1809_v14 = vsel %vm1588_vm13, %v1758_v36, 0.0  ;;  %v6756_v36 = vld [vmem:[#allocation7_spill] sm:$0xff] }
 0x47c   : > { %6751 = vst [vmem:[#allocation43_spill] sm:$0xff] %v5309_v23  ;;  %1929 = vadd.xlane.f32.xlu1 %v1928_v40  ;;  %v5320_v50 = vadd.f32 %v3922_v39, %v5259_v57  ;;  %v1415_v3 = vpop.f32.mrb[39].mxu0  ;;  %v2128_v40 = vpop.permute.xlu1 %2127  ;;  %v1943_v39 = vsel %vm1588_vm13, %v1915_v59, 0.0  ;;  %vm514_vm2 = vcmp.eq.s32.totalorder %v4493_v27, %v6756_v36 }
 0x47d   : > { %6752 = vst [vmem:[#allocation44_spill] sm:$0xff] %v5315_v20  ;;  %v5325_v25 = vadd.f32 %v5259_v57, %v1415_v3  ;;  %v5337_v3 = vsel %vm510_vm0, 1.0, %v6749_v60  ;;  %v5339_v20 = vpop.xlane.xlu0 %2553 }
 0x47e   : > { %v1913_v37 = vmul.f32 %v5337_v3, %v5253_v4  ;;  %v2582_v4 = vsel %vm1427_vm12, %v5134_v11, -inf }
 0x480   : > { %1816 = vadd.xlane.f32.xlu1 %v1815_v10  ;;  %v1866_v23 = vpop.permute.xlu1 %1865  ;;  %v6754_v10 = vld [vmem:[#allocation9_spill] sm:$0xff]  ;;  %v1937_v35 = vsel %vm1588_vm13, %v1913_v37, 0.0 }
 0x481   : > { %vm516_vm1 = vcmp.eq.s32.totalorder %v4493_v27, %v6754_v10  ;;  %v1770_v38 = vpop.permute.xlu0 %1769  ;;  %v2594_v27 = vsel %vm1427_vm12, %v5158_v58, -inf }
 0x482   : > { %v1827_v19 = vsel %vm1588_vm13, %v1770_v38, 0.0 }
 0x484   : > { %1944 = vadd.xlane.f32.xlu1 %v1943_v39  ;;  %v1862_v59 = vpop.permute.xlu1 %1861  ;;  %v5348_v39 = vsel %vm516_vm1, 1.0, %v6749_v60 }
 0x485   : > { %6755 = vst [vmem:[#allocation9_spill] sm:$0xff] %v5348_v39  ;;  %v1919_v15 = vmul.f32 %v5348_v39, %v1882_v5  ;;  %v1766_v10 = vpop.permute.xlu0 %1765  ;;  %v2576_v5 = vsel %vm1427_vm12, %v5139_v51, -inf }
 0x486   : > { %v1821_v38 = vsel %vm1588_vm13, %v1766_v10, 0.0  ;;  %v2158_v10 = vsel %vm1588_vm13, %v5237_v9, 0.0 }
 0x487   : > { %v1955_v37 = vsel %vm1588_vm13, %v1919_v15, 0.0 }
 0x488   : > { %1810 = vadd.xlane.f32.xlu1 %v1809_v14  ;;  %v1754_v14 = vpop.permute.xlu1 %1753 }
 0x48c   : > { %1938 = vadd.xlane.f32.xlu1 %v1937_v35  ;;  %v5358_v35 = vsel %vm514_vm2, 1.0, %v6749_v60  ;;  %v1868_v39 = vpop.permute.xlu1 %1867  ;;  %v2588_v60 = vsel %vm1427_vm12, %v5162_v6, -inf }
 0x48d   : > { %6757 = vst [vmem:[#allocation7_spill] sm:$0xff] %v5358_v35 }
 0x490   : > { %1828 = vadd.xlane.f32.xlu1 %v1827_v19  ;;  %v1917_v19 = vmul.f32 %v5358_v35, %v1878_v49  ;;  %v2155_v49 = vsel %vm1588_vm13, %v5223_v43, 0.0  ;;  %v2182_v43 = vsel %vm1588_vm13, %v5281_v17, 0.0  ;;  %v6761_v35 = vld [vmem:[#allocation6_spill] sm:$0xff] }
 0x492   : > { %v1949_v15 = vsel %vm1588_vm13, %v1917_v19, 0.0  ;;  %v2170_v19 = vsel %vm1588_vm13, %v5251_v46, 0.0 }
 0x493   : > { %2583 = vmax.xlane.f32.xlu0 %v2582_v4  ;;  %v1750_v4 = vpop.permute.xlu1 %1749 }
 0x494   : > { %1956 = vadd.xlane.f32.xlu1 %v1955_v37  ;;  %v2149_v37 = vsel %vm1588_vm13, %v5231_v0, 0.0  ;;  %v2176_v0 = vsel %vm1588_vm13, %v5303_v29, 0.0 }
 0x497   : > { %2577 = vmax.xlane.f32.xlu0 %v2576_v5  ;;  %v1756_v36 = vpop.permute.xlu1 %1755 }
 0x498   : > { %1822 = vadd.xlane.f32.xlu1 %v1821_v38 }
 0x49b   : > { %2595 = vmax.xlane.f32.xlu0 %v2594_v27  ;;  %v1876_v5 = vpop.permute.xlu1 %1875  ;;  %v2164_v27 = vsel %vm1588_vm13, %v5264_v13, 0.0  ;;  %v6758_v13 = vld [vmem:[#allocation2_spill] sm:$0xff] }
 0x49c   : > { %1950 = vadd.xlane.f32.xlu1 %v1949_v15 }
 0x49f   : > { %2589 = vmax.xlane.f32.xlu0 %v2588_v60  ;;  %v1872_v38 = vpop.permute.xlu1 %1871  ;;  %v2194_v60 = vsel %vm1588_vm13, %v5322_v8, 0.0 }
 0x4a3   : > { %2156 = vadd.xlane.f32.xlu0 %v2155_v49  ;;  %v1764_v15 = vpop.permute.xlu1 %1763  ;;  %v2188_v49 = vsel %vm1588_vm13, %v2128_v40, 0.0  ;;  %v6760_v40 = vld [vmem:[#allocation4_spill] sm:$0xff] }
 0x4a7   : > { %2150 = vadd.xlane.f32.xlu0 %v2149_v37  ;;  %v1760_v9 = vpop.permute.xlu1 %1759  ;;  %v1911_v37 = vmul.f32 %v6758_v13, %v1866_v23  ;;  %v1806_v23 = vsel %vm1588_vm13, %v1756_v36, 0.0  ;;  %v6762_v36 = vld [vmem:[#allocation5_spill] sm:$0xff] }
 0x4ab   : > { %2159 = vadd.xlane.f32.xlu0 %v2158_v10  ;;  %v2557_v46 = vpop.xlane.xlu1 %2556  ;;  %v1803_v10 = vsel %vm1588_vm13, %v1754_v14, 0.0 }
 0x4af   : > { %2171 = vadd.xlane.f32.xlu0 %v2170_v19  ;;  %v2551_v17 = vpop.xlane.xlu1 %2550  ;;  %v1931_v19 = vsel %vm1588_vm13, %v1911_v37, 0.0 }
 0x4b3   : > { %2165 = vadd.xlane.f32.xlu0 %v2164_v27  ;;  %v1884_v29 = vpop.permute.xlu1 %1883  ;;  %v6759_v27 = vld [vmem:[#allocation3_spill] sm:$0xff] }
 0x4b7   : > { %2183 = vadd.xlane.f32.xlu0 %v2182_v43  ;;  %v1909_v43 = vmul.f32 %v6759_v27, %v1862_v59  ;;  %v1916_v59 = vmul.f32 %v6761_v35, %v1876_v5  ;;  %v6763_v35 = vld [vmem:[#allocation14_spill] sm:$0xff] }
 0x4b8   : > { %v6764_v27 = vld [vmem:[#allocation10_spill] sm:$0xff] }
 0x4b9   : > { %v1925_v8 = vsel %vm1588_vm13, %v1909_v43, 0.0  ;;  %v1946_v43 = vsel %vm1588_vm13, %v1916_v59, 0.0  ;;  %v1920_v13 = vmul.f32 %v6764_v27, %v1884_v29 }
 0x4bb   : > { %2177 = vadd.xlane.f32.xlu0 %v2176_v0  ;;  %v1797_v0 = vsel %vm1588_vm13, %v1750_v4, 0.0  ;;  %v1818_v4 = vsel %vm1588_vm13, %v1764_v15, 0.0 }
 0x4bf   : > { %2195 = vadd.xlane.f32.xlu0 %v2194_v60  ;;  %v1880_v60 = vpop.permute.xlu1 %1879 }
 0x4c3   : > { %2189 = vadd.xlane.f32.xlu0 %v2188_v49  ;;  %v1912_v49 = vmul.f32 %v6760_v40, %v1868_v39  ;;  %v1772_v14 = vpop.permute.xlu1 %1771  ;;  %v1812_v40 = vsel %vm1588_vm13, %v1760_v9, 0.0 }
 0x4c5   : > { %v1934_v37 = vsel %vm1588_vm13, %v1912_v49, 0.0 }
 0x4c7   : > { %1804 = vadd.xlane.f32.xlu0 %v1803_v10  ;;  %v1890_v10 = vpop.permute.xlu0 %1889 }
 0x4cb   : > { %1932 = vadd.xlane.f32.xlu0 %v1931_v19  ;;  %v2572_v19 = vpop.xlane.xlu0 %2571 }
 0x4cf   : > { %1798 = vadd.xlane.f32.xlu0 %v1797_v0  ;;  %v1768_v0 = vpop.permute.xlu1 %1767  ;;  %v1886_v39 = vpop.permute.xlu0 %1885 }
 0x4d0   : > { %v1824_v29 = vsel %vm1588_vm13, %v1768_v0, 0.0 }
 0x4d3   : > { %1926 = vadd.xlane.f32.xlu0 %v1925_v8  ;;  %v5398_v8 = vpop.xlane.xlu1 %2568 }
 0x4d7   : > { %1807 = vadd.xlane.f32.xlu0 %v1806_v23  ;;  %v1914_v23 = vmul.f32 %v6762_v36, %v1872_v38  ;;  %v1958_v36 = vsel %vm1588_vm13, %v1920_v13, 0.0 }
 0x4d9   : > { %v1940_v5 = vsel %vm1588_vm13, %v1914_v23, 0.0  ;;  %v6765_v23 = vld [vmem:[#allocation12_spill] sm:$0xff] }
 0x4db   : > { %1935 = vadd.xlane.f32.xlu0 %v1934_v37  ;;  %v5402_v37 = vpop.xlane.xlu1 %2562 }
 0x4df   : > { %1819 = vadd.xlane.f32.xlu0 %v1818_v4  ;;  %v1923_v4 = vmul.f32 %v6763_v35, %v1890_v10  ;;  %v1892_v38 = vpop.permute.xlu1 %1891 }
 0x4e1   : > { %v1967_v9 = vsel %vm1588_vm13, %v1923_v4, 0.0 }
 0x4e3   : > { %1947 = vadd.xlane.f32.xlu0 %v1946_v43  ;;  %v1830_v43 = vsel %vm1588_vm13, %v1772_v14, 0.0  ;;  %v1888_v35 = vpop.permute.xlu1 %1887  ;;  %v5416_v14 = vsub.f32 %v5076_v34, %v2557_v46  ;;  %v5428_v34 = vsub.f32 %v5080_v56, %v5317_v62 }
 0x4e7   : > { %1813 = vadd.xlane.f32.xlu0 %v1812_v40  ;;  %v2566_v49 = vpop.xlane.xlu0 %2565 }
 0x4e8   : > { %v5440_v62 = vsub.f32 %v5110_v45, %v2566_v49 }
 0x4eb   : > { %1941 = vadd.xlane.f32.xlu0 %v1940_v5  ;;  %v1778_v15 = vpop.permute.xlu0 %1777  ;;  %v1921_v5 = vmul.f32 %v6765_v23, %v1886_v39  ;;  %v5422_v39 = vsub.f32 %v5073_v31, %v2551_v17  ;;  %v5434_v17 = vsub.f32 %v5106_v26, %v2572_v19  ;;  %v2623_v19 = vmul.f32 1.442695, %v5440_v62 }
 0x4ec   : > { %v1839_v59 = vsel %vm1588_vm13, %v1778_v15, 0.0  ;;  %v6766_v15 = vld [vmem:[#allocation8_spill] sm:$0xff] }
 0x4ed   : > { %1840 = vadd.xlane.f32.xlu1 %v1839_v59  ;;  %v1918_v59 = vmul.f32 %v6766_v15, %v1880_v60  ;;  %v1961_v4 = vsel %vm1588_vm13, %v1921_v5, 0.0  ;;  %v2613_v46 = vmul.f32 1.442695, %v5422_v39  ;;  %v2619_v5 = vmul.f32 1.442695, %v5428_v34  ;;  %6768 = vst [vmem:[#allocation46_spill] sm:$0xff] %v5434_v17 }
 0x4ee   : > { %v2627_v56 = vmul.f32 1.442695, %v5434_v17 }
 0x4ef   : > { %1831 = vadd.xlane.f32.xlu0 %v1830_v43  ;;  %v1774_v40 = vpop.permute.xlu0 %1773  ;;  %v1952_v13 = vsel %vm1588_vm13, %v1918_v59, 0.0  ;;  %v1780_v43 = vpop.permute.xlu1 %1779 }
 0x4f0   : > { %v1833_v10 = vsel %vm1588_vm13, %v1774_v40, 0.0  ;;  %v1842_v0 = vsel %vm1588_vm13, %v1780_v43, 0.0 }
 0x4f1   : > { %1968 = vadd.xlane.f32.xlu1 %v1967_v9  ;;  %v6767_v9 = vld [vmem:[#allocation13_spill] sm:$0xff] }
 0x4f2   : > { %v1924_v60 = vmul.f32 %v6767_v9, %v1892_v38  ;;  %v6769_v38 = vld [vmem:[#allocation11_spill] sm:$0xff] }
 0x4f3   : > { %1959 = vadd.xlane.f32.xlu0 %v1958_v36  ;;  %v2617_v36 = vmul.f32 1.442695, %v5416_v14  ;;  %v1776_v31 = vpop.permute.xlu1 %1775 }
 0x4f4   : > { %v1970_v40 = vsel %vm1588_vm13, %v1924_v60, 0.0  ;;  %v1836_v59 = vsel %vm1588_vm13, %v1776_v31, 0.0  ;;  %v5470_v60 = vsub.f32 %v5098_v24, %v5402_v37 }
 0x4f5   : > { %1834 = vadd.xlane.f32.xlu1 %v1833_v10  ;;  %4086 = vpow2.f32 %v2617_v36  ;;  %v1922_v10 = vmul.f32 %v6769_v38, %v1888_v35  ;;  %v5461_v36 = vsub.f32 %v5102_v21, %v5398_v8 }
 0x4f6   : > { %4088 = vpow2.f32 %v2613_v46  ;;  %v2621_v21 = vmul.f32 1.442695, %v5470_v60 }
 0x4f7   : > { %1825 = vadd.xlane.f32.xlu0 %v1824_v29  ;;  %4090 = vpow2.f32 %v2619_v5  ;;  %v1964_v26 = vsel %vm1588_vm13, %v1922_v10, 0.0  ;;  %v2581_v45 = vpop.xlane.xlu1 %2580 }
 0x4f8   : > { %4092 = vpow2.f32 %v2627_v56  ;;  %v5478_v8 = vsub.f32 %v5130_v7, %v2581_v45 }
 0x4f9   : > { %1962 = vadd.xlane.f32.xlu1 %v1961_v4  ;;  %v5452_v4 = vsub.f32 %v5085_v1, %v5339_v20  ;;  %4094 = vpow2.f32 %v2623_v19  ;;  %v2625_v20 = vmul.f32 1.442695, %v5461_v36 }
 0x4fb   : > { %1953 = vadd.xlane.f32.xlu0 %v1952_v13  ;;  %v2615_v13 = vmul.f32 1.442695, %v5452_v4  ;;  %v2575_v1 = vpop.xlane.xlu1 %2574 }
 0x4fc   : > { %v5484_v24 = vsub.f32 %v5126_v2, %v2575_v1 }
 0x4fd   : > { %4096 = vpow2.f32 %v2615_v13 }
 0x4fe   : > { %4098 = vpow2.f32 %v2625_v20  ;;  %6774 = vst [vmem:[#allocation51_spill] sm:$0xff] %v5484_v24 }
 0x4ff   : > { %1843 = vadd.xlane.f32.xlu0 %v1842_v0  ;;  %v5442_v29 = vpop.eup %4086  ;;  %v2593_v46 = vpop.xlane.xlu1 %2592  ;;  %4100 = vpow2.f32 %v2621_v21 }
 0x500   : > { %v5448_v35 = vpop.eup %4088  ;;  %v5489_v5 = vsub.f32 %v5148_v48, %v2593_v46 }
 0x501   : > { %6770 = vst [vmem:[#allocation47_spill] sm:$0xff] %v5448_v35  ;;  %v5456_v49 = vpop.eup %4090 }
 0x502   : > { %6771 = vst [vmem:[#allocation48_spill] sm:$0xff] %v5456_v49  ;;  %v5465_v43 = vpop.eup %4092  ;;  %6775 = vst [vmem:[#allocation52_spill] sm:$0xff] %v5489_v5 }
 0x503   : > { %1971 = vadd.xlane.f32.xlu0 %v1970_v40  ;;  %6772 = vst [vmem:[#allocation49_spill] sm:$0xff] %v5465_v43  ;;  %v5474_v0 = vpop.eup %4094  ;;  %v2633_v40 = vmul.f32 1.442695, %v5478_v8  ;;  %v2587_v10 = vpop.xlane.xlu1 %2586 }
 0x504   : > { %6773 = vst [vmem:[#allocation50_spill] sm:$0xff] %v5474_v0 }
 0x505   : > { %4102 = vpow2.f32 %v2633_v40 }
 0x507   : > { %1837 = vadd.xlane.f32.xlu0 %v1836_v59  ;;  %v5486_v37 = vpop.eup %4096  ;;  %v2629_v59 = vmul.f32 1.442695, %v5484_v24  ;;  %v2154_v45 = vpop.xlane.xlu1 %2153 }
 0x508   : > { %v5498_v2 = vpop.eup %4098 }
 0x509   : > { %v5510_v1 = vpop.eup %4100 }
 0x50a   : > { %2665 = vrot.lane.b32.xlu1 %v5442_v29, %s4352_s19 }
 0x50b   : > { %1965 = vadd.xlane.f32.xlu0 %v1964_v26  ;;  %v2641_v26 = vmul.f32 1.442695, %v5489_v5  ;;  %v6847_v5 = vld [vmem:[#allocation41_spill] sm:$0xff] }
 0x50e   : > { %2661 = vrot.lane.b32.xlu1 %v5448_v35, %s4352_s19 }
 0x50f   : > { %v5519_v46 = vpop.eup %4102 }
 0x510   : > { %6780 = vst [vmem:[#allocation57_spill] sm:$0xff] %v5519_v46 }
 0x512   : > { %2667 = vrot.lane.b32.xlu1 %v5456_v49, %s4352_s19 }
 0x516   : > { %2675 = vrot.lane.b32.xlu1 %v5465_v43, %s4352_s19 }
 0x51a   : > { %2671 = vrot.lane.b32.xlu1 %v5474_v0, %s4352_s19 }
 0x520   : > { %v2584_v31 = vpop.xlane.xlu0 %2583 }
 0x521   : > { %v5492_v7 = vsub.f32 %v5134_v11, %v2584_v31  ;;  %2663 = vrot.lane.b32.xlu0 %v5486_v37, %s4352_s19  ;;  %v5507_v11 = vsub.f32 %v5152_v53, %v2587_v10  ;;  %v2169_v31 = vpop.xlane.xlu1 %2168 }
 0x523   : > { %6776 = vst [vmem:[#allocation53_spill] sm:$0xff] %v5492_v7  ;;  %v2635_v56 = vmul.f32 1.442695, %v5492_v7  ;;  %6778 = vst [vmem:[#allocation55_spill] sm:$0xff] %v5507_v11 }
 0x524   : > { %v2578_v19 = vpop.xlane.xlu0 %2577 }
 0x525   : > { %4104 = vpow2.f32 %v2635_v56  ;;  %v5502_v48 = vsub.f32 %v5139_v51, %v2578_v19  ;;  %2673 = vrot.lane.b32.xlu0 %v5498_v2, %s4352_s19  ;;  %v2637_v51 = vmul.f32 1.442695, %v5507_v11 }
 0x526   : > { %4106 = vpow2.f32 %v2629_v59 }
 0x527   : > { %6777 = vst [vmem:[#allocation54_spill] sm:$0xff] %v5502_v48  ;;  %v2631_v13 = vmul.f32 1.442695, %v5502_v48  ;;  %4108 = vpow2.f32 %v2641_v26 }
 0x528   : > { %v2596_v20 = vpop.xlane.xlu0 %2595 }
 0x529   : > { %4110 = vpow2.f32 %v2631_v13  ;;  %v5513_v21 = vsub.f32 %v5158_v58, %v2596_v20  ;;  %2669 = vrot.lane.b32.xlu0 %v5510_v1, %s4352_s19  ;;  %v2163_v13 = vpop.xlane.xlu1 %2162 }
 0x52a   : > { %4112 = vlog2.f32 %v2154_v45 }
 0x52b   : > { %6779 = vst [vmem:[#allocation56_spill] sm:$0xff] %v5513_v21  ;;  %v2643_v53 = vmul.f32 1.442695, %v5513_v21 }
 0x52c   : > { %v2590_v40 = vpop.xlane.xlu0 %2589 }
 0x52d   : > { %4114 = vpow2.f32 %v2643_v53  ;;  %v5522_v10 = vsub.f32 %v5162_v6, %v2590_v40  ;;  %2681 = vrot.lane.b32.xlu0 %v5519_v46, %s4352_s19 }
 0x52e   : > { %4116 = vpow2.f32 %v2637_v51 }
 0x52f   : > { %6781 = vst [vmem:[#allocation58_spill] sm:$0xff] %v5522_v10  ;;  %v5526_v58 = vpop.eup %4104  ;;  %4118 = vrcp.f32 %v2154_v45  ;;  %v2639_v59 = vmul.f32 1.442695, %v5522_v10 }
 0x530   : > { %6782 = vst [vmem:[#allocation59_spill] sm:$0xff] %v5526_v58  ;;  %v5529_v56 = vpop.eup %4106  ;;  %4120 = vlog2.f32 %v2169_v31  ;;  %v2157_v26 = vpop.xlane.xlu0 %2156  ;;  %2683 = vrot.lane.b32.xlu1 %v5526_v58, %s4352_s19 }
 0x531   : > { %6783 = vst [vmem:[#allocation60_spill] sm:$0xff] %v5529_v56  ;;  %4122 = vpow2.f32 %v2639_v59  ;;  %2677 = vrot.lane.b32.xlu0 %v5529_v56, %s4352_s19  ;;  %v5535_v6 = vpop.eup %4108 }
 0x532   : > { %6784 = vst [vmem:[#allocation61_spill] sm:$0xff] %v5535_v6  ;;  %4124 = vlog2.f32 %v2157_v26 }
 0x533   : > { %v5537_v19 = vpop.eup %4110 }
 0x534   : > { %6785 = vst [vmem:[#allocation62_spill] sm:$0xff] %v5537_v19  ;;  %v4113_v45 = vpop.eup %4112  ;;  %v2151_v20 = vpop.xlane.xlu0 %2150  ;;  %2679 = vrot.lane.b32.xlu1 %v5537_v19, %s4352_s19 }
 0x535   : > { %4126 = vlog2.f32 %v2151_v20  ;;  %2689 = vrot.lane.b32.xlu0 %v5535_v6, %s4352_s19  ;;  %v2200_v53 = vmul.f32 0.6931472, %v4113_v45 }
 0x536   : > { %4128 = vlog2.f32 %v2163_v13 }
 0x537   : > { %v5543_v51 = vpop.eup %4114  ;;  %4130 = vrcp.f32 %v2157_v26  ;;  %v2230_v58 = vsub.f32 %v4928_v33, %v2200_v53 }
 0x538   : > { %6786 = vst [vmem:[#allocation63_spill] sm:$0xff] %v5543_v51  ;;  %v5545_v40 = vpop.eup %4116  ;;  %v2160_v59 = vpop.xlane.xlu0 %2159  ;;  %2691 = vrot.lane.b32.xlu1 %v5543_v51, %s4352_s19 }
 0x539   : > { %6787 = vst [vmem:[#allocation64_spill] sm:$0xff] %v5545_v40  ;;  %v4119_v10 = vpop.eup %4118  ;;  %2685 = vrot.lane.b32.xlu0 %v5545_v40, %s4352_s19  ;;  %4132 = vlog2.f32 %v2160_v59 }
 0x53a   : > { %v4121_v21 = vpop.eup %4120  ;;  %4134 = vrcp.f32 %v2169_v31  ;;  %v2262_v45 = vmul.f32 %v4119_v10, %v4962_v61 }
 0x53b   : > { %v5551_v19 = vpop.eup %4122  ;;  %v2210_v7 = vmul.f32 0.6931472, %v4121_v21  ;;  %4136 = vrcp.f32 %v2163_v13 }
 0x53c   : > { %6788 = vst [vmem:[#allocation65_spill] sm:$0xff] %v5551_v19  ;;  %v4125_v48 = vpop.eup %4124  ;;  %2687 = vrot.lane.b32.xlu1 %v5551_v19, %s4352_s19  ;;  %v2278_v40 = vmul.f32 %v2262_v45, %v2230_v58  ;;  %4138 = vrcp.f32 %v2151_v20  ;;  %v2172_v33 = vpop.xlane.xlu0 %2171 }
 0x53d   : > { %v2202_v26 = vmul.f32 0.6931472, %v4125_v48  ;;  %2423 = vrot.lane.b32.xlu0 %v2230_v58, %s4352_s19  ;;  %v2235_v61 = vsub.f32 %v4943_v47, %v2210_v7  ;;  %4140 = vrcp.f32 %v2160_v59  ;;  %v6790_v7 = vld [vmem:[#allocation15_spill] sm:$0xff] }
 0x53e   : > { %4142 = vlog2.f32 %v2172_v33 }
 0x53f   : > { %v4127_v51 = vpop.eup %4126  ;;  %v2231_v0 = vsub.f32 %v4924_v28, %v2202_v26  ;;  %v6792_v26 = vld [vmem:[#allocation28_spill] sm:$0xff] }
 0x540   : > { %v4129_v43 = vpop.eup %4128  ;;  %v2198_v6 = vmul.f32 0.6931472, %v4127_v51  ;;  %v2166_v13 = vpop.xlane.xlu0 %2165 }
 0x541   : > { %2425 = vrot.lane.b32.xlu1 %v2231_v0, %s4352_s19  ;;  %2311 = vrot.lane.b32.xlu0 %v2278_v40, %s4352_s19  ;;  %v4131_v31 = vpop.eup %4130  ;;  %v2206_v53 = vmul.f32 0.6931472, %v4129_v43  ;;  %4144 = vlog2.f32 %v2166_v13 }
 0x542   : > { %v2229_v48 = vsub.f32 %v4935_v30, %v2198_v6  ;;  %v2263_v28 = vmul.f32 %v4131_v31, %v4953_v44  ;;  %v6789_v30 = vld [vmem:[#allocation24_spill] sm:$0xff]  ;;  %4146 = vrcp.f32 %v2172_v33 }
 0x543   : > { %v4133_v10 = vpop.eup %4132  ;;  %v2233_v51 = vsub.f32 %v4951_v41, %v2206_v53  ;;  %v6791_v44 = vld [vmem:[#allocation20_spill] sm:$0xff]  ;;  %4148 = vrcp.f32 %v2166_v13 }
 0x544   : > { %v4135_v21 = vpop.eup %4134  ;;  %v2204_v58 = vmul.f32 0.6931472, %v4133_v10  ;;  %v2279_v20 = vmul.f32 %v2263_v28, %v2231_v0  ;;  %v6793_v28 = vld [vmem:[#allocation23_spill] sm:$0xff] }
 0x545   : > { %2421 = vrot.lane.b32.xlu1 %v2229_v48, %s4352_s19  ;;  %2433 = vrot.lane.b32.xlu0 %v2235_v61, %s4352_s19  ;;  %v4137_v40 = vpop.eup %4136  ;;  %v2267_v47 = vmul.f32 %v4135_v21, %v6789_v30 }
 0x546   : > { %v4139_v43 = vpop.eup %4138  ;;  %v2232_v6 = vsub.f32 %v6790_v7, %v2204_v58  ;;  %v2265_v41 = vmul.f32 %v4137_v40, %v6792_v26  ;;  %v5589_v26 = vadd.f32 %v5242_v63, %v5259_v57  ;;  %v5599_v63 = vadd.f32 %v5259_v57, %v5244_v32 }
 0x547   : > { %v2283_v59 = vmul.f32 %v2267_v47, %v2235_v61  ;;  %v2261_v0 = vmul.f32 %v4139_v43, %v6791_v44  ;;  %v4141_v45 = vpop.eup %4140  ;;  %v6794_v47 = vld [vmem:[#allocation16_spill] sm:$0xff]  ;;  %v6796_v43 = vld [vmem:[#allocation27_spill] sm:$0xff] }
 0x548   : > { %v2281_v53 = vmul.f32 %v2265_v41, %v2233_v51  ;;  %v4143_v10 = vpop.eup %4142  ;;  %v2264_v21 = vmul.f32 %v4141_v45, %v6793_v28  ;;  %v2184_v41 = vpop.xlane.xlu0 %2183 }
 0x549   : > { %2313 = vrot.lane.b32.xlu1 %v2279_v20, %s4352_s19  ;;  %2429 = vrot.lane.b32.xlu0 %v2233_v51, %s4352_s19  ;;  %v2277_v31 = vmul.f32 %v2261_v0, %v2229_v48  ;;  %v2212_v61 = vmul.f32 0.6931472, %v4143_v10  ;;  %v6795_v51 = vld [vmem:[#allocation17_spill] sm:$0xff]  ;;  %v2181_v45 = vpop.xlane.xlu1 %2180 }
 0x54a   : > { %v2280_v58 = vmul.f32 %v2264_v21, %v2232_v6  ;;  %4150 = vlog2.f32 %v2181_v45 }
 0x54b   : > { %v4145_v20 = vpop.eup %4144  ;;  %v2236_v40 = vsub.f32 %v6794_v47, %v2212_v61  ;;  %v6798_v47 = vld [vmem:[#allocation19_spill] sm:$0xff] }
 0x54c   : > { %v2208_v30 = vmul.f32 0.6931472, %v4145_v20  ;;  %v4147_v48 = vpop.eup %4146 }
 0x54d   : > { %2427 = vrot.lane.b32.xlu1 %v2232_v6, %s4352_s19  ;;  %2321 = vrot.lane.b32.xlu0 %v2283_v59, %s4352_s19  ;;  %v2268_v7 = vmul.f32 %v4147_v48, %v6796_v43  ;;  %v4149_v59 = vpop.eup %4148  ;;  %v6797_v6 = vld [vmem:[#allocation31_spill] sm:$0xff]  ;;  %v2175_v10 = vpop.xlane.xlu1 %2174  ;;  %v6800_v43 = vld [vmem:[#allocation22_spill] sm:$0xff] }
 0x54e   : > { %v2234_v33 = vsub.f32 %v6795_v51, %v2208_v30  ;;  %v2266_v13 = vmul.f32 %v4149_v59, %v6797_v6  ;;  %4152 = vlog2.f32 %v2175_v10  ;;  %v5607_v51 = vadd.f32 %v5247_v16, %v5259_v57 }
 0x54f   : > { %v2284_v44 = vmul.f32 %v2268_v7, %v2236_v40  ;;  %4154 = vlog2.f32 %v2184_v41 }
 0x550   : > { %v2282_v0 = vmul.f32 %v2266_v13, %v2234_v33 }
 0x551   : > { %2309 = vrot.lane.b32.xlu1 %v2277_v31, %s4352_s19  ;;  %2317 = vrot.lane.b32.xlu0 %v2281_v53, %s4352_s19  ;;  %v3115_v31 = vsel %vm1588_vm13, %v5589_v26, -inf  ;;  %v2178_v53 = vpop.xlane.xlu0 %2177  ;;  %v5612_v59 = vpop.xlane.xlu1 %2192 }
 0x552   : > { %4156 = vlog2.f32 %v2178_v53 }
 0x553   : > { %4158 = vrcp.f32 %v2184_v41  ;;  %v6810_v41 = vld [vmem:[#allocation33_spill] sm:$0xff] }
 0x554   : > { %v4151_v21 = vpop.eup %4150  ;;  %4160 = vrcp.f32 %v2178_v53 }
 0x555   : > { %2315 = vrot.lane.b32.xlu1 %v2280_v58, %s4352_s19  ;;  %v5593_v28 = vpop.xlane.xlu0 %2195  ;;  %v2218_v58 = vmul.f32 0.6931472, %v4151_v21  ;;  %v5619_v6 = vpop.xlane.xlu1 %2186  ;;  %4162 = vrcp.f32 %v2181_v45  ;;  %v6823_v45 = vld [vmem:[#allocation34_spill] sm:$0xff] }
 0x556   : > { %4164 = vrcp.f32 %v2175_v10 }
 0x557   : > { %4166 = vlog2.f32 %v5593_v28 }
 0x558   : > { %v4153_v20 = vpop.eup %4152 }
 0x559   : > { %2435 = vrot.lane.b32.xlu1 %v2236_v40, %s4352_s19  ;;  %v5595_v61 = vpop.xlane.xlu0 %2189  ;;  %v2214_v30 = vmul.f32 0.6931472, %v4153_v20  ;;  %v2239_v40 = vsub.f32 %v6798_v47, %v2218_v58  ;;  %v4155_v13 = vpop.eup %4154  ;;  %v6806_v47 = vld [vmem:[#allocation18_spill] sm:$0xff] }
 0x55a   : > { %v2220_v21 = vmul.f32 0.6931472, %v4155_v13  ;;  %4168 = vlog2.f32 %v5595_v61 }
 0x55b   : > { %v2237_v7 = vsub.f32 %v6800_v43, %v2214_v30  ;;  %4170 = vrcp.f32 %v5593_v28 }
 0x55c   : > { %v4157_v58 = vpop.eup %4156  ;;  %4172 = vrcp.f32 %v5595_v61  ;;  %v6838_v61 = vld [vmem:[#allocation29_spill] sm:$0xff] }
 0x55d   : > { %2431 = vrot.lane.b32.xlu1 %v2234_v33, %s4352_s19  ;;  %v5602_v48 = vpop.xlane.xlu0 %1804  ;;  %v3109_v33 = vsel %vm1588_vm13, %v5599_v63, -inf  ;;  %v2216_v30 = vmul.f32 0.6931472, %v4157_v58  ;;  %v5642_v58 = vadd.f32 %v5259_v57, %v5249_v55  ;;  %4174 = vlog2.f32 %v5612_v59 }
 0x55e   : > { %6799 = vst [vmem:[#allocation24_spill] sm:$0xff] %v5602_v48  ;;  %4176 = vlog2.f32 %v5619_v6 }
 0x55f   : > { %4178 = vrcp.f32 %v5612_v59  ;;  %v6844_v59 = vld [vmem:[#allocation36_spill] sm:$0xff] }
 0x560   : > { %4180 = vrcp.f32 %v5619_v6 }
 0x561   : > { %2323 = vrot.lane.b32.xlu1 %v2284_v44, %s4352_s19  ;;  %v5615_v32 = vpop.xlane.xlu0 %1932  ;;  %v3118_v44 = vsel %vm1588_vm13, %v5607_v51, -inf }
 0x562   : > { %6801 = vst [vmem:[#allocation15_spill] sm:$0xff] %v5615_v32 }
 0x565   : > { %2319 = vrot.lane.b32.xlu1 %v2282_v0, %s4352_s19  ;;  %v5621_v16 = vpop.xlane.xlu0 %1798  ;;  %v5623_v0 = vpop.xlane.xlu1 %1801 }
 0x566   : > { %6802 = vst [vmem:[#allocation20_spill] sm:$0xff] %v5621_v16  ;;  %6803 = vst [vmem:[#allocation28_spill] sm:$0xff] %v5623_v0  ;;  %v6808_v16 = vld [vmem:[#allocation21_spill] sm:$0xff] }
 0x567   : > { %v2238_v32 = vsub.f32 %v6808_v16, %v2216_v30  ;;  %v3112_v16 = vsel %vm1588_vm13, %v5642_v58, -inf }
 0x569   : > { %v5627_v20 = vpop.xlane.xlu1 %1929 }
 0x56a   : > { %6805 = vst [vmem:[#allocation16_spill] sm:$0xff] %v5627_v20 }
 0x56d   : > { %v5634_v48 = vpop.xlane.xlu1 %1816 }
 0x56e   : > { %6809 = vst [vmem:[#allocation27_spill] sm:$0xff] %v5634_v48 }
 0x570   : > { %3116 = vmax.xlane.f32.xlu0 %v3115_v31  ;;  %v5625_v31 = vpop.xlane.xlu0 %1926 }
 0x571   : > { %6804 = vst [vmem:[#allocation23_spill] sm:$0xff] %v5625_v31 }
 0x574   : > { %v5630_v43 = vpop.xlane.xlu0 %1807 }
 0x575   : > { %6807 = vst [vmem:[#allocation17_spill] sm:$0xff] %v5630_v43  ;;  %v5646_v43 = vpop.xlane.xlu1 %1944 }
 0x576   : > { %6813 = vst [vmem:[#allocation19_spill] sm:$0xff] %v5646_v43 }
 0x578   : > { %v5638_v53 = vpop.xlane.xlu0 %1935 }
 0x579   : > { %6811 = vst [vmem:[#allocation31_spill] sm:$0xff] %v5638_v53 }
 0x57c   : > { %v5650_v48 = vpop.xlane.xlu0 %1819 }
 0x57d   : > { %6814 = vst [vmem:[#allocation22_spill] sm:$0xff] %v5650_v48 }
 0x580   : > { %v5655_v55 = vpop.xlane.xlu0 %1947 }
 0x581   : > { %6816 = vst [vmem:[#allocation21_spill] sm:$0xff] %v5655_v55 }
 0x586   : > { %2441 = vrot.lane.b32.xlu0 %v2239_v40, %s4352_s19 }
 0x589   : > { %3110 = vmax.xlane.f32.xlu1 %v3109_v33  ;;  %v2240_v33 = vsub.f32 %v6806_v47, %v2220_v21  ;;  %v6812_v47 = vld [vmem:[#allocation35_spill] sm:$0xff] }
 0x58a   : > { %2437 = vrot.lane.b32.xlu0 %v2237_v7, %s4352_s19 }
 0x58d   : > { %3119 = vmax.xlane.f32.xlu1 %v3118_v44  ;;  %v4159_v44 = vpop.eup %4158 }
 0x58e   : > { %v2272_v13 = vmul.f32 %v4159_v44, %v6810_v41  ;;  %v4161_v0 = vpop.eup %4160  ;;  %v5653_v44 = vpop.xlane.xlu1 %1810 }
 0x58f   : > { %v2270_v20 = vmul.f32 %v4161_v0, %v6812_v47  ;;  %6815 = vst [vmem:[#allocation18_spill] sm:$0xff] %v5653_v44  ;;  %v5659_v0 = vpop.xlane.xlu0 %1813 }
 0x590   : > { %v2288_v21 = vmul.f32 %v2272_v13, %v2240_v33  ;;  %6818 = vst [vmem:[#allocation35_spill] sm:$0xff] %v5659_v0 }
 0x591   : > { %v2286_v30 = vmul.f32 %v2270_v20, %v2238_v32 }
 0x592   : > { %v5657_v57 = vpop.xlane.xlu1 %1938 }
 0x593   : > { %6817 = vst [vmem:[#allocation33_spill] sm:$0xff] %v5657_v57  ;;  %v5663_v13 = vpop.xlane.xlu0 %1941 }
 0x594   : > { %6820 = vst [vmem:[#allocation67_spill] sm:$0xff] %v5663_v13 }
 0x596   : > { %v5661_v41 = vpop.xlane.xlu1 %1828 }
 0x597   : > { %6819 = vst [vmem:[#allocation66_spill] sm:$0xff] %v5661_v41  ;;  %v5670_v10 = vpop.xlane.xlu0 %1831 }
 0x598   : > { %6824 = vst [vmem:[#allocation34_spill] sm:$0xff] %v5670_v10 }
 0x59b   : > { %v5675_v41 = vpop.xlane.xlu0 %1959 }
 0x59c   : > { %6826 = vst [vmem:[#allocation69_spill] sm:$0xff] %v5675_v41 }
 0x59e   : > { %2443 = vrot.lane.b32.xlu1 %v2240_v33, %s4352_s19  ;;  %v4163_v33 = vpop.eup %4162 }
 0x5a2   : > { %2439 = vrot.lane.b32.xlu1 %v2238_v32, %s4352_s19  ;;  %v6821_v32 = vld [vmem:[#allocation32_spill] sm:$0xff] }
 0x5a3   : > { %v2271_v20 = vmul.f32 %v4163_v33, %v6821_v32  ;;  %v5679_v33 = vpop.xlane.xlu0 %1825 }
 0x5a4   : > { %6828 = vst [vmem:[#allocation71_spill] sm:$0xff] %v5679_v33 }
 0x5a5   : > { %v2287_v47 = vmul.f32 %v2271_v20, %v2239_v40  ;;  %v3130_v40 = vsel %vm1588_vm13, %v5271_v54, -inf }
 0x5a6   : > { %2331 = vrot.lane.b32.xlu1 %v2288_v21, %s4352_s19  ;;  %v4165_v21 = vpop.eup %4164 }
 0x5a9   : > { %3113 = vmax.xlane.f32.xlu0 %v3112_v16  ;;  %v5666_v16 = vpop.xlane.xlu1 %1956 }
 0x5aa   : > { %2327 = vrot.lane.b32.xlu1 %v2286_v30, %s4352_s19  ;;  %6822 = vst [vmem:[#allocation32_spill] sm:$0xff] %v5666_v16  ;;  %v2269_v30 = vmul.f32 %v4165_v21, %v6823_v45 }
 0x5ac   : > { %v2285_v55 = vmul.f32 %v2269_v30, %v2237_v7  ;;  %v3124_v7 = vsel %vm1588_vm13, %v5275_v52, -inf }
 0x5ad   : > { %v5673_v0 = vpop.xlane.xlu1 %1822 }
 0x5ae   : > { %6825 = vst [vmem:[#allocation68_spill] sm:$0xff] %v5673_v0 }
 0x5b1   : > { %v5677_v13 = vpop.xlane.xlu1 %1950 }
 0x5b2   : > { %6827 = vst [vmem:[#allocation70_spill] sm:$0xff] %v5677_v13 }
 0x5b5   : > { %v5683_v32 = vpop.xlane.xlu1 %1840 }
 0x5b6   : > { %6829 = vst [vmem:[#allocation72_spill] sm:$0xff] %v5683_v32 }
 0x5b9   : > { %v5691_v20 = vpop.xlane.xlu1 %1968 }
 0x5ba   : > { %6831 = vst [vmem:[#allocation74_spill] sm:$0xff] %v5691_v20  ;;  %v6836_v20 = vld [vmem:[#allocation25_spill] sm:$0xff] }
 0x5bd   : > { %v5696_v45 = vpop.xlane.xlu1 %1834 }
 0x5be   : > { %6833 = vst [vmem:[#allocation76_spill] sm:$0xff] %v5696_v45 }
 0x5bf   : > { %2329 = vrot.lane.b32.xlu0 %v2287_v47, %s4352_s19  ;;  %v4167_v47 = vpop.eup %4166 }
 0x5c0   : > { %v2228_v30 = vmul.f32 0.6931472, %v4167_v47  ;;  %v3121_v47 = vsel %vm1588_vm13, %v5267_v22, -inf }
 0x5c1   : > { %v5701_v32 = vpop.xlane.xlu1 %1962 }
 0x5c2   : > { %6835 = vst [vmem:[#allocation78_spill] sm:$0xff] %v5701_v32  ;;  %v2244_v41 = vsub.f32 %v6836_v20, %v2228_v30  ;;  %v6841_v30 = vld [vmem:[#allocation39_spill] sm:$0xff] }
 0x5c3   : > { %2325 = vrot.lane.b32.xlu0 %v2285_v55, %s4352_s19  ;;  %v5688_v55 = vpop.xlane.xlu0 %1953 }
 0x5c4   : > { %6830 = vst [vmem:[#allocation73_spill] sm:$0xff] %v5688_v55  ;;  %v3127_v55 = vsel %vm1588_vm13, %v5262_v12, -inf }
 0x5c7   : > { %v5693_v21 = vpop.xlane.xlu0 %1843 }
 0x5c8   : > { %6832 = vst [vmem:[#allocation75_spill] sm:$0xff] %v5693_v21 }
 0x5cb   : > { %v5699_v33 = vpop.xlane.xlu0 %1971 }
 0x5cc   : > { %6834 = vst [vmem:[#allocation77_spill] sm:$0xff] %v5699_v33  ;;  %v6839_v33 = vld [vmem:[#allocation37_spill] sm:$0xff] }
 0x5ce   : > { %3131 = vmax.xlane.f32.xlu1 %v3130_v40  ;;  %v4169_v40 = vpop.eup %4168 }
 0x5cf   : > { %v4171_v28 = vpop.eup %4170  ;;  %v5707_v21 = vpop.xlane.xlu0 %1837 }
 0x5d0   : > { %6837 = vst [vmem:[#allocation25_spill] sm:$0xff] %v5707_v21  ;;  %v2276_v32 = vmul.f32 %v4171_v28, %v6839_v33  ;;  %v4173_v10 = vpop.eup %4172 }
 0x5d1   : > { %v2274_v21 = vmul.f32 %v4173_v10, %v6841_v30  ;;  %v4175_v13 = vpop.eup %4174  ;;  %v6842_v30 = vld [vmem:[#allocation26_spill] sm:$0xff] }
 0x5d2   : > { %3125 = vmax.xlane.f32.xlu1 %v3124_v7  ;;  %v2224_v7 = vmul.f32 0.6931472, %v4169_v40  ;;  %v5712_v40 = vpop.permute.xlu1 %2665 }
 0x5d3   : > { %v5717_v20 = vpop.xlane.xlu0 %1965 }
 0x5d4   : > { %v2242_v45 = vsub.f32 %v6838_v61, %v2224_v7  ;;  %6840 = vst [vmem:[#allocation29_spill] sm:$0xff] %v5717_v20 }
 0x5d6   : > { %v5722_v7 = vpop.permute.xlu1 %2661 }
 0x5d7   : > { %v2664_v61 = vpop.permute.xlu0 %2663 }
 0x5da   : > { %v5726_v33 = vpop.permute.xlu1 %2667 }
 0x5db   : > { %v2674_v28 = vpop.permute.xlu0 %2673 }
 0x5dc   : > { %v2727_v31 = vsel %vm1588_vm13, %v2674_v28, 0.0 }
 0x5e2   : > { %3128 = vmax.xlane.f32.xlu0 %v3127_v55  ;;  %v2292_v55 = vmul.f32 %v2276_v32, %v2244_v41  ;;  %v4177_v32 = vpop.eup %4176 }
 0x5e3   : > { %2451 = vrot.lane.b32.xlu1 %v2244_v41, %s4352_s19  ;;  %v2226_v41 = vmul.f32 0.6931472, %v4175_v13  ;;  %v2222_v10 = vmul.f32 0.6931472, %v4177_v32 }
 0x5e5   : > { %v2243_v20 = vsub.f32 %v6842_v30, %v2226_v41  ;;  %v6845_v41 = vld [vmem:[#allocation38_spill] sm:$0xff] }
 0x5e6   : > { %3122 = vmax.xlane.f32.xlu0 %v3121_v47  ;;  %v2290_v47 = vmul.f32 %v2274_v21, %v2242_v45  ;;  %v4179_v21 = vpop.eup %4178 }
 0x5e7   : > { %2447 = vrot.lane.b32.xlu1 %v2242_v45, %s4352_s19  ;;  %v2670_v45 = vpop.permute.xlu0 %2669  ;;  %v2275_v13 = vmul.f32 %v4179_v21, %v6844_v59  ;;  %v4181_v48 = vpop.eup %4180  ;;  %v3142_v21 = vsel %vm1588_vm13, %v5294_v18, -inf }
 0x5e8   : > { %v2273_v32 = vmul.f32 %v4181_v48, %v6845_v41  ;;  %v3154_v48 = vsel %vm1588_vm13, %v5320_v50, -inf  ;;  %v3148_v41 = vsel %vm1588_vm13, %v5325_v25, -inf }
 0x5e9   : > { %v2291_v6 = vmul.f32 %v2275_v13, %v2243_v20  ;;  %v3136_v13 = vsel %vm1588_vm13, %v5298_v42, -inf }
 0x5eb   : > { %2339 = vrot.lane.b32.xlu1 %v2292_v55, %s4352_s19  ;;  %v5729_v55 = vpop.permute.xlu1 %2675  ;;  %v2682_v44 = vpop.permute.xlu0 %2681 }
 0x5ec   : > { %v2739_v28 = vsel %vm1588_vm13, %v2682_v44, 0.0  ;;  %v2715_v44 = vsel %vm1588_vm13, %v5712_v40, 0.0  ;;  %v2718_v40 = vsel %vm1588_vm13, %v5726_v33, 0.0 }
 0x5ef   : > { %2335 = vrot.lane.b32.xlu1 %v2290_v47, %s4352_s19  ;;  %v6843_v47 = vld [vmem:[#allocation30_spill] sm:$0xff]  ;;  %v5734_v16 = vpop.permute.xlu1 %2671 }
 0x5f0   : > { %v2241_v0 = vsub.f32 %v6843_v47, %v2222_v10  ;;  %v2678_v10 = vpop.permute.xlu0 %2677  ;;  %v2724_v33 = vsel %vm1588_vm13, %v5734_v16, 0.0 }
 0x5f2   : > { %v2289_v30 = vmul.f32 %v2273_v32, %v2241_v0 }
 0x5f3   : > { %v5738_v57 = vpop.permute.xlu1 %2683 }
 0x5f4   : > { %v2690_v53 = vpop.permute.xlu0 %2689 }
 0x5f7   : > { %v5743_v43 = vpop.permute.xlu1 %2679 }
 0x5f8   : > { %v2686_v59 = vpop.permute.xlu0 %2685 }
 0x5fb   : > { %v5745_v47 = vpop.permute.xlu1 %2691 }
 0x5fc   : > { %2449 = vrot.lane.b32.xlu0 %v2243_v20, %s4352_s19 }
 0x5ff   : > { %v5749_v20 = vpop.permute.xlu1 %2687 }
 0x600   : > { %2445 = vrot.lane.b32.xlu0 %v2241_v0, %s4352_s19 }
 0x603   : > { %v5755_v0 = vpop.permute.xlu1 %2425 }
 0x604   : > { %2337 = vrot.lane.b32.xlu0 %v2291_v6, %s4352_s19  ;;  %v2424_v6 = vpop.permute.xlu0 %2423 }
 0x607   : > { %v5759_v32 = vpop.permute.xlu1 %2421 }
 0x608   : > { %2333 = vrot.lane.b32.xlu0 %v2289_v30, %s4352_s19  ;;  %v2312_v30 = vpop.permute.xlu0 %2311 }
 0x60b   : > { %v5765_v17 = vpop.permute.xlu1 %2313 }
 0x60c   : > { %v2434_v11 = vpop.permute.xlu0 %2433 }
 0x60f   : > { %v5770_v56 = vpop.permute.xlu1 %2427 }
 0x613   : > { %3143 = vmax.xlane.f32.xlu1 %v3142_v21  ;;  %v2712_v21 = vsel %vm1588_vm13, %v2664_v61, 0.0  ;;  %v2430_v61 = vpop.permute.xlu0 %2429  ;;  %v5778_v46 = vpop.permute.xlu1 %2309 }
 0x617   : > { %3137 = vmax.xlane.f32.xlu1 %v3136_v13  ;;  %v6846_v13 = vld [vmem:[#allocation40_spill] sm:$0xff]  ;;  %v2322_v24 = vpop.permute.xlu0 %2321 }
 0x618   : > { %v3139_v19 = vsel %vm1588_vm13, %v6846_v13, -inf }
 0x61b   : > { %3155 = vmax.xlane.f32.xlu1 %v3154_v48  ;;  %v2721_v48 = vsel %vm1588_vm13, %v2670_v45, 0.0 }
 0x61f   : > { %3149 = vmax.xlane.f32.xlu1 %v3148_v41  ;;  %v3133_v41 = vsel %vm1588_vm13, %v6847_v5, -inf }
 0x623   : > { %2713 = vadd.xlane.f32.xlu1 %v2712_v21  ;;  %v6848_v21 = vld [vmem:[#allocation43_spill] sm:$0xff] }
 0x624   : > { %v3151_v49 = vsel %vm1588_vm13, %v6848_v21, -inf }
 0x627   : > { %2728 = vadd.xlane.f32.xlu1 %v2727_v31  ;;  %3140 = vmax.xlane.f32.xlu0 %v3139_v19  ;;  %v2733_v31 = vsel %vm1588_vm13, %v2678_v10, 0.0  ;;  %v6849_v19 = vld [vmem:[#allocation44_spill] sm:$0xff]  ;;  %v2745_v10 = vsel %vm1588_vm13, %v2686_v59, 0.0 }
 0x628   : > { %v3145_v45 = vsel %vm1588_vm13, %v6849_v19, -inf }
 0x62b   : > { %2722 = vadd.xlane.f32.xlu1 %v2721_v48  ;;  %3134 = vmax.xlane.f32.xlu0 %v3133_v41  ;;  %v2751_v48 = vsel %vm1588_vm13, %v2690_v53, 0.0  ;;  %v5783_v41 = vpop.permute.xlu1 %2315  ;;  %v2360_v53 = vsel %vm1588_vm13, %v2312_v30, 0.0  ;;  %v2375_v30 = vsel %vm1588_vm13, %v2322_v24, 0.0  ;;  %v2736_v24 = vsel %vm1588_vm13, %v5743_v43, 0.0 }
 0x62c   : > { %v2748_v43 = vsel %vm1588_vm13, %v5749_v20, 0.0 }
 0x62f   : > { %2740 = vadd.xlane.f32.xlu1 %v2739_v28  ;;  %3152 = vmax.xlane.f32.xlu0 %v3151_v49  ;;  %v2318_v49 = vpop.permute.xlu0 %2317  ;;  %v2709_v28 = vsel %vm1588_vm13, %v5722_v7, 0.0  ;;  %v2730_v7 = vsel %vm1588_vm13, %v5729_v55, 0.0  ;;  %v2742_v55 = vsel %vm1588_vm13, %v5738_v57, 0.0 }
 0x633   : > { %2734 = vadd.xlane.f32.xlu1 %v2733_v31  ;;  %3146 = vmax.xlane.f32.xlu0 %v3145_v45  ;;  %v5788_v35 = vpop.xlane.xlu0 %3116  ;;  %v6850_v31 = vld [vmem:[#allocation42_spill] sm:$0xff] }
 0x634   : > { %v2470_v45 = vmul.f32 %v6850_v31, %v2424_v6  ;;  %v6851_v6 = vld [vmem:[#allocation45_spill] sm:$0xff] }
 0x636   : > { %v2488_v59 = vsel %vm1588_vm13, %v2470_v45, 0.0 }
 0x637   : > { %2752 = vadd.xlane.f32.xlu1 %v2751_v48  ;;  %2716 = vadd.xlane.f32.xlu0 %v2715_v44  ;;  %v5794_v48 = vpop.permute.xlu1 %2435  ;;  %v2442_v44 = vpop.permute.xlu0 %2441 }
 0x63b   : > { %2746 = vadd.xlane.f32.xlu1 %v2745_v10  ;;  %2710 = vadd.xlane.f32.xlu0 %v2709_v28  ;;  %v5799_v10 = vpop.permute.xlu1 %2431  ;;  %v2475_v28 = vmul.f32 %v6851_v6, %v2434_v11  ;;  %v2369_v11 = vsel %vm1588_vm13, %v2318_v49, 0.0 }
 0x63d   : > { %v2503_v45 = vsel %vm1588_vm13, %v2475_v28, 0.0  ;;  %v2754_v28 = vsel %vm1588_vm13, %v5745_v47, 0.0  ;;  %v2363_v47 = vsel %vm1588_vm13, %v5765_v17, 0.0  ;;  %v2357_v17 = vsel %vm1588_vm13, %v5778_v46, 0.0  ;;  %v6857_v46 = vld [vmem:[#allocation6_spill] sm:$0xff] }
 0x63f   : > { %2361 = vadd.xlane.f32.xlu1 %v2360_v53  ;;  %2719 = vadd.xlane.f32.xlu0 %v2718_v40  ;;  %v2438_v53 = vpop.permute.xlu0 %2437  ;;  %v2324_v40 = vpop.permute.xlu1 %2323 }
 0x643   : > { %2489 = vadd.xlane.f32.xlu1 %v2488_v59  ;;  %2731 = vadd.xlane.f32.xlu0 %v2730_v7  ;;  %v3114_v59 = vpop.xlane.xlu0 %3113  ;;  %v2473_v7 = vmul.f32 %v5337_v3, %v2430_v61  ;;  %v2320_v16 = vpop.permute.xlu1 %2319 }
 0x647   : > { %2376 = vadd.xlane.f32.xlu1 %v2375_v30  ;;  %2725 = vadd.xlane.f32.xlu0 %v2724_v33  ;;  %v2497_v30 = vsel %vm1588_vm13, %v2473_v7, 0.0  ;;  %v2330_v57 = vpop.permute.xlu0 %2329  ;;  %v5815_v33 = vpop.xlane.xlu1 %3110 }
 0x648   : > { %v2387_v49 = vsel %vm1588_vm13, %v2330_v57, 0.0 }
 0x64b   : > { %2504 = vadd.xlane.f32.xlu1 %v2503_v45  ;;  %2743 = vadd.xlane.f32.xlu0 %v2742_v55  ;;  %v6852_v45 = vld [vmem:[#allocation9_spill] sm:$0xff]  ;;  %v6853_v55 = vld [vmem:[#allocation2_spill] sm:$0xff] }
 0x64c   : > { %v2479_v61 = vmul.f32 %v6852_v45, %v2442_v44  ;;  %v2471_v7 = vmul.f32 %v6853_v55, %v5755_v0  ;;  %v6854_v44 = vld [vmem:[#allocation7_spill] sm:$0xff] }
 0x64d   : > { %v6855_v0 = vld [vmem:[#allocation3_spill] sm:$0xff] }
 0x64e   : > { %v2491_v20 = vsel %vm1588_vm13, %v2471_v7, 0.0 }
 0x64f   : > { %2370 = vadd.xlane.f32.xlu1 %v2369_v11  ;;  %2737 = vadd.xlane.f32.xlu0 %v2736_v24  ;;  %v2515_v11 = vsel %vm1588_vm13, %v2479_v61, 0.0  ;;  %v5826_v24 = vpop.xlane.xlu1 %3119  ;;  %v2469_v61 = vmul.f32 %v6855_v0, %v5759_v32 }
 0x653   : > { %2498 = vadd.xlane.f32.xlu1 %v2497_v30  ;;  %2755 = vadd.xlane.f32.xlu0 %v2754_v28  ;;  %v2326_v30 = vpop.permute.xlu0 %2325  ;;  %v2477_v28 = vmul.f32 %v6854_v44, %v2438_v53 }
 0x654   : > { %v2381_v57 = vsel %vm1588_vm13, %v2326_v30, 0.0  ;;  %v2366_v30 = vsel %vm1588_vm13, %v5783_v41, 0.0 }
 0x657   : > { %2388 = vadd.xlane.f32.xlu1 %v2387_v49  ;;  %2749 = vadd.xlane.f32.xlu0 %v2748_v43  ;;  %v2444_v49 = vpop.permute.xlu1 %2443  ;;  %v2509_v43 = vsel %vm1588_vm13, %v2477_v28, 0.0 }
 0x65b   : > { %2516 = vadd.xlane.f32.xlu1 %v2515_v11  ;;  %2364 = vadd.xlane.f32.xlu0 %v2363_v47  ;;  %v2485_v11 = vsel %vm1588_vm13, %v2469_v61, 0.0  ;;  %v2440_v53 = vpop.permute.xlu1 %2439  ;;  %v6856_v47 = vld [vmem:[#allocation4_spill] sm:$0xff] }
 0x65c   : > { %v2472_v7 = vmul.f32 %v6856_v47, %v5770_v56 }
 0x65e   : > { %v2494_v32 = vsel %vm1588_vm13, %v2472_v7, 0.0  ;;  %v2372_v7 = vsel %vm1588_vm13, %v2320_v16, 0.0 }
 0x65f   : > { %2382 = vadd.xlane.f32.xlu1 %v2381_v57  ;;  %2492 = vadd.xlane.f32.xlu0 %v2491_v20  ;;  %v2332_v57 = vpop.permute.xlu1 %2331  ;;  %v2476_v20 = vmul.f32 %v6857_v46, %v5794_v48  ;;  %v6859_v46 = vld [vmem:[#allocation14_spill] sm:$0xff] }
 0x663   : > { %2510 = vadd.xlane.f32.xlu1 %v2509_v43  ;;  %2358 = vadd.xlane.f32.xlu0 %v2357_v17  ;;  %v2378_v43 = vsel %vm1588_vm13, %v2324_v40, 0.0  ;;  %v2328_v61 = vpop.permute.xlu1 %2327 }
 0x667   : > { %2486 = vadd.xlane.f32.xlu0 %v2485_v11  ;;  %v2506_v11 = vsel %vm1588_vm13, %v2476_v20, 0.0  ;;  %v5846_v56 = vpop.xlane.xlu1 %3131 }
 0x66b   : > { %2367 = vadd.xlane.f32.xlu0 %v2366_v30  ;;  %v6858_v30 = vld [vmem:[#allocation5_spill] sm:$0xff]  ;;  %v5854_v40 = vpop.xlane.xlu1 %3125 }
 0x66c   : > { %v2474_v44 = vmul.f32 %v6858_v30, %v5799_v10 }
 0x66f   : > { %2495 = vadd.xlane.f32.xlu0 %v2494_v32  ;;  %v3129_v28 = vpop.xlane.xlu0 %3128  ;;  %v5852_v32 = vsub.f32 %v5642_v58, %v3114_v59  ;;  %v2480_v58 = vmul.f32 %v6764_v27, %v2444_v49  ;;  %v2390_v59 = vsel %vm1588_vm13, %v2332_v57, 0.0 }
 0x670   : > { %v5859_v45 = vsub.f32 %v5262_v12, %v3129_v28 }
 0x671   : > { %v3175_v20 = vmul.f32 1.442695, %v5852_v32 }
 0x673   : > { %2379 = vadd.xlane.f32.xlu0 %v2378_v43  ;;  %v3123_v17 = vpop.xlane.xlu0 %3122  ;;  %v2500_v43 = vsel %vm1588_vm13, %v2474_v44, 0.0  ;;  %4182 = vpow2.f32 %v3175_v20  ;;  %v3185_v44 = vmul.f32 1.442695, %v5859_v45 }
 0x674   : > { %v5867_v30 = vsub.f32 %v5267_v22, %v3123_v17  ;;  %v2478_v22 = vmul.f32 %v6766_v15, %v2440_v53  ;;  %v2384_v17 = vsel %vm1588_vm13, %v2328_v61, 0.0 }
 0x675   : > { %4184 = vpow2.f32 %v3185_v44  ;;  %v5891_v44 = vsub.f32 %v5599_v63, %v5815_v33 }
 0x677   : > { %2507 = vadd.xlane.f32.xlu0 %v2506_v11  ;;  %v2450_v41 = vpop.permute.xlu0 %2449 }
 0x678   : > { %v2483_v10 = vmul.f32 %v6859_v46, %v2450_v41  ;;  %v2518_v41 = vsel %vm1588_vm13, %v2480_v58, 0.0 }
 0x67a   : > { %v2527_v12 = vsel %vm1588_vm13, %v2483_v10, 0.0 }
 0x67b   : > { %2373 = vadd.xlane.f32.xlu0 %v2372_v7  ;;  %v2446_v48 = vpop.permute.xlu0 %2445  ;;  %v2452_v7 = vpop.permute.xlu1 %2451 }
 0x67c   : > { %v2481_v49 = vmul.f32 %v6765_v23, %v2446_v48  ;;  %v2512_v48 = vsel %vm1588_vm13, %v2478_v22, 0.0 }
 0x67d   : > { %v5877_v10 = vpop.eup %4182 }
 0x67e   : > { %v3208_v53 = vsel %vm1588_vm13, %v5877_v10, 0.0 }
 0x67f   : > { %2501 = vadd.xlane.f32.xlu0 %v2500_v43  ;;  %v2338_v11 = vpop.permute.xlu0 %2337  ;;  %v3181_v43 = vmul.f32 1.442695, %v5867_v30  ;;  %v2448_v20 = vpop.permute.xlu1 %2447 }
 0x680   : > { %v2399_v16 = vsel %vm1588_vm13, %v2338_v11, 0.0  ;;  %v2521_v11 = vsel %vm1588_vm13, %v2481_v49, 0.0  ;;  %v2482_v22 = vmul.f32 %v6769_v38, %v2448_v20 }
 0x681   : > { %2400 = vadd.xlane.f32.xlu1 %v2399_v16  ;;  %4186 = vpow2.f32 %v3181_v43  ;;  %v5881_v16 = vsub.f32 %v5589_v26, %v5788_v35  ;;  %v2484_v35 = vmul.f32 %v6767_v9, %v2452_v7  ;;  %v5902_v43 = vsub.f32 %v5607_v51, %v5826_v24 }
 0x683   : > { %2391 = vadd.xlane.f32.xlu0 %v2390_v59  ;;  %v2334_v28 = vpop.permute.xlu0 %2333  ;;  %v2340_v58 = vpop.permute.xlu1 %2339  ;;  %v3177_v61 = vmul.f32 1.442695, %v5881_v16  ;;  %v2530_v63 = vsel %vm1588_vm13, %v2484_v35, 0.0  ;;  %v3179_v49 = vmul.f32 1.442695, %v5902_v43 }
 0x684   : > { %v2393_v57 = vsel %vm1588_vm13, %v2334_v28, 0.0  ;;  %v5886_v59 = vpop.eup %4184  ;;  %v2402_v26 = vsel %vm1588_vm13, %v2340_v58, 0.0 }
 0x685   : > { %2528 = vadd.xlane.f32.xlu1 %v2527_v12  ;;  %v3223_v12 = vsel %vm1588_vm13, %v5886_v59, 0.0  ;;  %4188 = vpow2.f32 %v3177_v61 }
 0x687   : > { %2519 = vadd.xlane.f32.xlu0 %v2518_v41  ;;  %v3173_v41 = vmul.f32 1.442695, %v5891_v44  ;;  %v2336_v33 = vpop.permute.xlu1 %2335 }
 0x688   : > { %v2396_v51 = vsel %vm1588_vm13, %v2336_v33, 0.0 }
 0x689   : > { %2394 = vadd.xlane.f32.xlu1 %v2393_v57  ;;  %4190 = vpow2.f32 %v3173_v41  ;;  %v5910_v57 = vsub.f32 %v5271_v54, %v5846_v56 }
 0x68a   : > { %4192 = vpow2.f32 %v3179_v49 }
 0x68b   : > { %2385 = vadd.xlane.f32.xlu0 %v2384_v17  ;;  %v5897_v28 = vpop.eup %4186  ;;  %v3187_v24 = vmul.f32 1.442695, %v5910_v57  ;;  %v5917_v17 = vsub.f32 %v5275_v52, %v5854_v40 }
 0x68c   : > { %v3217_v7 = vsel %vm1588_vm13, %v5897_v28, 0.0 }
 0x68d   : > { %2522 = vadd.xlane.f32.xlu1 %v2521_v11  ;;  %v2524_v11 = vsel %vm1588_vm13, %v2482_v22, 0.0  ;;  %4194 = vpow2.f32 %v3187_v24  ;;  %v3183_v56 = vmul.f32 1.442695, %v5917_v17 }
 0x68f   : > { %2513 = vadd.xlane.f32.xlu0 %v2512_v48  ;;  %v5920_v48 = vpop.eup %4188  ;;  %4196 = vpow2.f32 %v3183_v56 }
 0x690   : > { %v3211_v58 = vsel %vm1588_vm13, %v5920_v48, 0.0 }
 0x691   : > { %3209 = vadd.xlane.f32.xlu1 %v3208_v53 }
 0x693   : > { %2403 = vadd.xlane.f32.xlu0 %v2402_v26  ;;  %v5928_v53 = vpop.eup %4190 }
 0x694   : > { %v3205_v35 = vsel %vm1588_vm13, %v5928_v53, 0.0  ;;  %v5936_v26 = vpop.eup %4192 }
 0x695   : > { %3224 = vadd.xlane.f32.xlu1 %v3223_v12 }
 0x697   : > { %2531 = vadd.xlane.f32.xlu0 %v2530_v63  ;;  %v3214_v63 = vsel %vm1588_vm13, %v5936_v26, 0.0  ;;  %v5944_v33 = vpop.eup %4194 }
 0x698   : > { %v3226_v22 = vsel %vm1588_vm13, %v5944_v33, 0.0 }
 0x699   : > { %3218 = vadd.xlane.f32.xlu1 %v3217_v7 }
 0x69b   : > { %2397 = vadd.xlane.f32.xlu0 %v2396_v51  ;;  %v5952_v51 = vpop.eup %4196 }
 0x69c   : > { %v3220_v24 = vsel %vm1588_vm13, %v5952_v51, 0.0 }
 0x69f   : > { %2525 = vadd.xlane.f32.xlu0 %v2524_v11 }
 0x6a0   : > { %v3144_v54 = vpop.xlane.xlu1 %3143 }
 0x6a1   : > { %v5924_v20 = vsub.f32 %v5294_v18, %v3144_v54 }
 0x6a3   : > { %3212 = vadd.xlane.f32.xlu0 %v3211_v58  ;;  %v3195_v40 = vmul.f32 1.442695, %v5924_v20 }
 0x6a4   : > { %v3138_v52 = vpop.xlane.xlu1 %3137 }
 0x6a5   : > { %v5932_v61 = vsub.f32 %v5298_v42, %v3138_v52  ;;  %4198 = vpow2.f32 %v3195_v40 }
 0x6a7   : > { %3206 = vadd.xlane.f32.xlu0 %v3205_v35  ;;  %v3191_v12 = vmul.f32 1.442695, %v5932_v61 }
 0x6a8   : > { %v3156_v18 = vpop.xlane.xlu1 %3155 }
 0x6a9   : > { %v5940_v41 = vsub.f32 %v5320_v50, %v3156_v18  ;;  %4200 = vpow2.f32 %v3191_v12 }
 0x6ab   : > { %6860 = vst [vmem:[#allocation37_spill] sm:$0xff] %v5940_v41  ;;  %3215 = vadd.xlane.f32.xlu0 %v3214_v63  ;;  %v3203_v7 = vmul.f32 1.442695, %v5940_v41 }
 0x6ac   : > { %v3150_v42 = vpop.xlane.xlu1 %3149 }
 0x6ad   : > { %v5948_v49 = vsub.f32 %v5325_v25, %v3150_v42  ;;  %4202 = vpow2.f32 %v3203_v7 }
 0x6af   : > { %6861 = vst [vmem:[#allocation39_spill] sm:$0xff] %v5948_v49  ;;  %3227 = vadd.xlane.f32.xlu0 %v3226_v22  ;;  %v3199_v50 = vmul.f32 1.442695, %v5948_v49  ;;  %v5957_v11 = vpop.eup %4198 }
 0x6b0   : > { %v2714_v56 = vpop.xlane.xlu1 %2713  ;;  %v3238_v58 = vsel %vm1588_vm13, %v5957_v11, 0.0 }
 0x6b1   : > { %4204 = vpow2.f32 %v3199_v50 }
 0x6b3   : > { %3221 = vadd.xlane.f32.xlu0 %v3220_v24  ;;  %v5964_v52 = vpop.eup %4200 }
 0x6b4   : > { %v3141_v54 = vpop.xlane.xlu0 %3140  ;;  %6862 = vst [vmem:[#allocation26_spill] sm:$0xff] %v5964_v52  ;;  %v3232_v12 = vsel %vm1588_vm13, %v5964_v52, 0.0  ;;  %v2729_v42 = vpop.xlane.xlu1 %2728 }
 0x6b5   : > { %v5960_v25 = vsub.f32 %v6846_v13, %v3141_v54 }
 0x6b7   : > { %v3193_v40 = vmul.f32 1.442695, %v5960_v25  ;;  %3239 = vadd.xlane.f32.xlu0 %v3238_v58  ;;  %v5972_v63 = vpop.eup %4202 }
 0x6b8   : > { %v3135_v35 = vpop.xlane.xlu0 %3134  ;;  %6863 = vst [vmem:[#allocation30_spill] sm:$0xff] %v5972_v63  ;;  %v3250_v50 = vsel %vm1588_vm13, %v5972_v63, 0.0 }
 0x6b9   : > { %4206 = vpow2.f32 %v3193_v40  ;;  %v5968_v18 = vsub.f32 %v6847_v5, %v3135_v35  ;;  %v2723_v40 = vpop.xlane.xlu1 %2722 }
 0x6bb   : > { %v3189_v13 = vmul.f32 1.442695, %v5968_v18  ;;  %3233 = vadd.xlane.f32.xlu0 %v3232_v12  ;;  %v5980_v24 = vpop.eup %4204 }
 0x6bc   : > { %v3153_v7 = vpop.xlane.xlu0 %3152  ;;  %6865 = vst [vmem:[#allocation38_spill] sm:$0xff] %v5980_v24  ;;  %v3244_v35 = vsel %vm1588_vm13, %v5980_v24, 0.0 }
 0x6bd   : > { %4208 = vpow2.f32 %v3189_v13  ;;  %v5976_v22 = vsub.f32 %v6848_v21, %v3153_v7 }
 0x6bf   : > { %6864 = vst [vmem:[#allocation36_spill] sm:$0xff] %v5976_v22  ;;  %v3201_v5 = vmul.f32 1.442695, %v5976_v22  ;;  %3251 = vadd.xlane.f32.xlu0 %v3250_v50 }
 0x6c0   : > { %v3147_v54 = vpop.xlane.xlu0 %3146 }
 0x6c1   : > { %4210 = vpow2.f32 %v3201_v5  ;;  %v5984_v58 = vsub.f32 %v6849_v19, %v3147_v54  ;;  %v5995_v19 = vpop.xlane.xlu1 %2740 }
 0x6c3   : > { %6866 = vst [vmem:[#allocation40_spill] sm:$0xff] %v5984_v58  ;;  %v5988_v12 = vpop.eup %4206  ;;  %v3197_v21 = vmul.f32 1.442695, %v5984_v58  ;;  %3245 = vadd.xlane.f32.xlu0 %v3244_v35 }
 0x6c4   : > { %v2717_v13 = vpop.xlane.xlu0 %2716  ;;  %v3235_v7 = vsel %vm1588_vm13, %v5988_v12, 0.0 }
 0x6c5   : > { %4212 = vpow2.f32 %v3197_v21  ;;  %3236 = vadd.xlane.f32.xlu1 %v3235_v7  ;;  %v6003_v21 = vpop.xlane.xlu1 %2734 }
 0x6c6   : > { %4214 = vlog2.f32 %v2714_v56 }
 0x6c7   : > { %v5993_v50 = vpop.eup %4208  ;;  %4216 = vlog2.f32 %v2729_v42 }
 0x6c8   : > { %v2711_v5 = vpop.xlane.xlu0 %2710  ;;  %v3229_v54 = vsel %vm1588_vm13, %v5993_v50, 0.0  ;;  %4218 = vrcp.f32 %v2714_v56 }
 0x6c9   : > { %3230 = vadd.xlane.f32.xlu1 %v3229_v54  ;;  %4220 = vlog2.f32 %v2723_v40 }
 0x6ca   : > { %4222 = vlog2.f32 %v2717_v13 }
 0x6cb   : > { %v5999_v9 = vpop.eup %4210  ;;  %4224 = vrcp.f32 %v2729_v42 }
 0x6cc   : > { %6867 = vst [vmem:[#allocation41_spill] sm:$0xff] %v5999_v9  ;;  %v2720_v35 = vpop.xlane.xlu0 %2719  ;;  %v3247_v38 = vsel %vm1588_vm13, %v5999_v9, 0.0  ;;  %4226 = vlog2.f32 %v2711_v5  ;;  %v6011_v9 = vpop.xlane.xlu1 %2752 }
 0x6cd   : > { %3248 = vadd.xlane.f32.xlu1 %v3247_v38  ;;  %4228 = vrcp.f32 %v2723_v40 }
 0x6cf   : > { %v6005_v7 = vpop.eup %4212 }
 0x6d0   : > { %6868 = vst [vmem:[#allocation43_spill] sm:$0xff] %v6005_v7  ;;  %v4215_v46 = vpop.eup %4214  ;;  %v6007_v24 = vpop.xlane.xlu0 %2731  ;;  %v3241_v54 = vsel %vm1588_vm13, %v6005_v7, 0.0 }
 0x6d1   : > { %3242 = vadd.xlane.f32.xlu1 %v3241_v54  ;;  %v2760_v56 = vmul.f32 0.6931472, %v4215_v46  ;;  %v4217_v49 = vpop.eup %4216  ;;  %v6022_v54 = vpop.xlane.xlu1 %2746 }
 0x6d2   : > { %v4219_v63 = vpop.eup %4218  ;;  %v2770_v22 = vmul.f32 0.6931472, %v4217_v49 }
 0x6d3   : > { %v2790_v42 = vsub.f32 %v5452_v4, %v2760_v56  ;;  %v4221_v23 = vpop.eup %4220  ;;  %v2822_v46 = vmul.f32 %v4219_v63, %v5486_v37 }
 0x6d4   : > { %v6013_v38 = vpop.xlane.xlu0 %2725  ;;  %v4223_v15 = vpop.eup %4222  ;;  %v6025_v7 = vsub.f32 %v5461_v36, %v2770_v22  ;;  %v2766_v49 = vmul.f32 0.6931472, %v4221_v23 }
 0x6d5   : > { %4230 = vlog2.f32 %v6013_v38  ;;  %v4225_v40 = vpop.eup %4224  ;;  %v2838_v4 = vmul.f32 %v2822_v46, %v2790_v42  ;;  %v2762_v56 = vmul.f32 0.6931472, %v4223_v15  ;;  %v6036_v52 = vpop.xlane.xlu1 %2361 }
 0x6d6   : > { %4232 = vrcp.f32 %v2717_v13  ;;  %v4227_v27 = vpop.eup %4226  ;;  %v2827_v13 = vmul.f32 %v4225_v40, %v5498_v2  ;;  %v6033_v63 = vsub.f32 %v5470_v60, %v2766_v49 }
 0x6d7   : > { %4234 = vlog2.f32 %v5995_v19  ;;  %v4229_v37 = vpop.eup %4228  ;;  %v2758_v23 = vmul.f32 0.6931472, %v4227_v27 }
 0x6d8   : > { %v6017_v41 = vpop.xlane.xlu0 %2743  ;;  %4236 = vlog2.f32 %v2720_v35  ;;  %v2843_v36 = vmul.f32 %v2827_v13, %v6025_v7  ;;  %v2825_v2 = vmul.f32 %v4229_v37, %v5510_v1 }
 0x6d9   : > { %2983 = vrot.lane.b32.xlu0 %v2790_v42, %s4352_s19  ;;  %4238 = vlog2.f32 %v6003_v21  ;;  %v2791_v42 = vsub.f32 %v5416_v14, %v2762_v56  ;;  %v6050_v14 = vpop.xlane.xlu1 %2489 }
 0x6da   : > { %4240 = vrcp.f32 %v2711_v5  ;;  %v2841_v40 = vmul.f32 %v2825_v2, %v6033_v63  ;;  %6869 = vst [vmem:[#allocation44_spill] sm:$0xff] %v6050_v14  ;;  %v6870_v2 = vld [vmem:[#allocation47_spill] sm:$0xff] }
 0x6db   : > { %4242 = vrcp.f32 %v5995_v19 }
 0x6dc   : > { %v6027_v58 = vpop.xlane.xlu0 %2737  ;;  %4244 = vrcp.f32 %v2720_v35 }
 0x6dd   : > { %2871 = vrot.lane.b32.xlu0 %v2838_v4, %s4352_s19  ;;  %v2789_v4 = vsub.f32 %v5422_v39, %v2758_v23  ;;  %4246 = vrcp.f32 %v6003_v21 }
 0x6de   : > { %4248 = vlog2.f32 %v6011_v9 }
 0x6df   : > { %v4231_v22 = vpop.eup %4230  ;;  %4250 = vlog2.f32 %v6022_v54 }
 0x6e0   : > { %v6038_v15 = vpop.xlane.xlu0 %2755  ;;  %v4233_v46 = vpop.eup %4232  ;;  %v2768_v60 = vmul.f32 0.6931472, %v4231_v22  ;;  %4252 = vlog2.f32 %v6007_v24 }
 0x6e1   : > { %2881 = vrot.lane.b32.xlu0 %v2843_v36, %s4352_s19  ;;  %v4235_v49 = vpop.eup %4234  ;;  %v2823_v1 = vmul.f32 %v4233_v46, %v5442_v29  ;;  %4254 = vrcp.f32 %v6011_v9 }
 0x6e2   : > { %2985 = vrot.lane.b32.xlu1 %v2791_v42, %s4352_s19  ;;  %v4237_v13 = vpop.eup %4236  ;;  %v2778_v5 = vmul.f32 0.6931472, %v4235_v49  ;;  %v6055_v56 = vsub.f32 %v5440_v62, %v2768_v60  ;;  %v6065_v62 = vpop.xlane.xlu1 %2376  ;;  %4256 = vrcp.f32 %v6007_v24 }
 0x6e3   : > { %v4239_v37 = vpop.eup %4238  ;;  %v2764_v19 = vmul.f32 0.6931472, %v4237_v13  ;;  %v2839_v39 = vmul.f32 %v2823_v1, %v2791_v42  ;;  %4258 = vrcp.f32 %v6022_v54 }
 0x6e4   : > { %v6046_v27 = vpop.xlane.xlu0 %2749  ;;  %v4241_v35 = vpop.eup %4240  ;;  %v2774_v29 = vmul.f32 0.6931472, %v4239_v37  ;;  %v2799_v22 = vsub.f32 %v5478_v8, %v2778_v5  ;;  %4260 = vrcp.f32 %v6013_v38 }
 0x6e5   : > { %2877 = vrot.lane.b32.xlu0 %v2841_v40, %s4352_s19  ;;  %v2792_v21 = vsub.f32 %v5428_v34, %v2764_v19  ;;  %v4243_v42 = vpop.eup %4242  ;;  %v2821_v46 = vmul.f32 %v4241_v35, %v6870_v2  ;;  %v6871_v40 = vld [vmem:[#allocation51_spill] sm:$0xff]  ;;  %v6872_v34 = vld [vmem:[#allocation57_spill] sm:$0xff]  ;;  %v6873_v19 = vld [vmem:[#allocation48_spill] sm:$0xff]  ;;  %4262 = vlog2.f32 %v6017_v41 }
 0x6e6   : > { %2981 = vrot.lane.b32.xlu1 %v2789_v4, %s4352_s19  ;;  %v4245_v60 = vpop.eup %4244  ;;  %v2797_v8 = vsub.f32 %v6871_v40, %v2774_v29  ;;  %v2831_v1 = vmul.f32 %v4243_v42, %v6872_v34  ;;  %v6080_v37 = vpop.xlane.xlu1 %2504  ;;  %4264 = vlog2.f32 %v6027_v58 }
 0x6e7   : > { %v2837_v13 = vmul.f32 %v2821_v46, %v2789_v4  ;;  %v4247_v5 = vpop.eup %4246  ;;  %v6874_v4 = vld [vmem:[#allocation60_spill] sm:$0xff]  ;;  %4266 = vrcp.f32 %v6017_v41 }
 0x6e8   : > { %v6058_v36 = vpop.xlane.xlu0 %2364  ;;  %v2847_v35 = vmul.f32 %v2831_v1, %v2799_v22  ;;  %v4249_v2 = vpop.eup %4248  ;;  %v2829_v42 = vmul.f32 %v4247_v5, %v6874_v4  ;;  %4268 = vrcp.f32 %v6027_v58 }
 0x6e9   : > { %2991 = vrot.lane.b32.xlu0 %v6055_v56, %s4352_s19  ;;  %v2786_v46 = vmul.f32 0.6931472, %v4249_v2  ;;  %4270 = vlog2.f32 %v6038_v15 }
 0x6ea   : > { %2873 = vrot.lane.b32.xlu1 %v2839_v39, %s4352_s19  ;;  %v2824_v39 = vmul.f32 %v4245_v60, %v6873_v19  ;;  %v2845_v40 = vmul.f32 %v2829_v42, %v2797_v8  ;;  %4272 = vlog2.f32 %v6046_v27 }
 0x6eb   : > { %4274 = vrcp.f32 %v6038_v15  ;;  %v6892_v15 = vld [vmem:[#allocation56_spill] sm:$0xff] }
 0x6ec   : > { %v6067_v23 = vpop.xlane.xlu0 %2492  ;;  %v2840_v29 = vmul.f32 %v2824_v39, %v2792_v21  ;;  %4276 = vrcp.f32 %v6046_v27  ;;  %v6896_v27 = vld [vmem:[#allocation63_spill] sm:$0xff] }
 0x6ed   : > { %3001 = vrot.lane.b32.xlu0 %v2799_v22, %s4352_s19  ;;  %v6092_v22 = vpop.xlane.xlu1 %2370 }
 0x6ee   : > { %2987 = vrot.lane.b32.xlu1 %v2792_v21, %s4352_s19  ;;  %v6875_v21 = vld [vmem:[#allocation52_spill] sm:$0xff] }
 0x6f0   : > { %v6076_v49 = vpop.xlane.xlu0 %2358 }
 0x6f1   : > { %2997 = vrot.lane.b32.xlu0 %v2797_v8, %s4352_s19  ;;  %v2803_v8 = vsub.f32 %v6875_v21, %v2786_v46  ;;  %v6105_v5 = vpop.xlane.xlu1 %2498  ;;  %v6880_v46 = vld [vmem:[#allocation49_spill] sm:$0xff] }
 0x6f2   : > { %2869 = vrot.lane.b32.xlu1 %v2837_v13, %s4352_s19  ;;  %v4251_v13 = vpop.eup %4250 }
 0x6f3   : > { %v4253_v9 = vpop.eup %4252  ;;  %v2782_v24 = vmul.f32 0.6931472, %v4251_v13 }
 0x6f4   : > { %v6085_v14 = vpop.xlane.xlu0 %2486  ;;  %v2772_v34 = vmul.f32 0.6931472, %v4253_v9  ;;  %v4255_v54 = vpop.eup %4254 }
 0x6f5   : > { %2889 = vrot.lane.b32.xlu0 %v2847_v35, %s4352_s19  ;;  %v4257_v38 = vpop.eup %4256  ;;  %v6878_v35 = vld [vmem:[#allocation46_spill] sm:$0xff]  ;;  %v6118_v9 = vpop.xlane.xlu1 %2388 }
 0x6f6   : > { %2875 = vrot.lane.b32.xlu1 %v2840_v29, %s4352_s19  ;;  %v2796_v2 = vsub.f32 %v6878_v35, %v2772_v34  ;;  %v6879_v29 = vld [vmem:[#allocation61_spill] sm:$0xff]  ;;  %v4259_v42 = vpop.eup %4258  ;;  %v6881_v34 = vld [vmem:[#allocation64_spill] sm:$0xff] }
 0x6f7   : > { %v2835_v4 = vmul.f32 %v4255_v54, %v6879_v29  ;;  %v4261_v13 = vpop.eup %4260  ;;  %v2833_v35 = vmul.f32 %v4259_v42, %v6881_v34  ;;  %v6882_v54 = vld [vmem:[#allocation50_spill] sm:$0xff] }
 0x6f8   : > { %v6094_v60 = vpop.xlane.xlu0 %2367  ;;  %v2826_v29 = vmul.f32 %v4261_v13, %v6882_v54 }
 0x6f9   : > { %2885 = vrot.lane.b32.xlu0 %v2845_v40, %s4352_s19  ;;  %v2828_v40 = vmul.f32 %v4257_v38, %v6880_v46  ;;  %v6132_v41 = vpop.xlane.xlu1 %2516 }
 0x6fa   : > { %2993 = vrot.lane.b32.xlu1 %v6025_v7, %s4352_s19  ;;  %v6876_v7 = vld [vmem:[#allocation55_spill] sm:$0xff] }
 0x6fb   : > { %v2801_v19 = vsub.f32 %v6876_v7, %v2782_v24  ;;  %v2844_v24 = vmul.f32 %v2828_v40, %v2796_v2  ;;  %v4263_v7 = vpop.eup %4262 }
 0x6fc   : > { %v6102_v1 = vpop.xlane.xlu0 %2495  ;;  %v2780_v38 = vmul.f32 0.6931472, %v4263_v7 }
 0x6fd   : > { %3009 = vrot.lane.b32.xlu0 %v2803_v8, %s4352_s19 }
 0x6fe   : > { %2989 = vrot.lane.b32.xlu1 %v6033_v63, %s4352_s19  ;;  %v2851_v63 = vmul.f32 %v2835_v4, %v2803_v8  ;;  %v2842_v8 = vmul.f32 %v2826_v29, %v6055_v56  ;;  %v4265_v4 = vpop.eup %4264  ;;  %v6141_v56 = vpop.xlane.xlu1 %2382 }
 0x6ff   : > { %v4267_v13 = vpop.eup %4266 }
 0x700   : > { %v6111_v39 = vpop.xlane.xlu0 %2379  ;;  %v4269_v34 = vpop.eup %4268 }
 0x701   : > { %6877 = vst [vmem:[#allocation42_spill] sm:$0xff] %v6111_v39  ;;  %3005 = vrot.lane.b32.xlu0 %v2801_v19, %s4352_s19  ;;  %v2849_v39 = vmul.f32 %v2833_v35, %v2801_v19  ;;  %v6883_v19 = vld [vmem:[#allocation53_spill] sm:$0xff]  ;;  %v4271_v29 = vpop.eup %4270 }
 0x702   : > { %2995 = vrot.lane.b32.xlu1 %v2796_v2, %s4352_s19  ;;  %v2776_v2 = vmul.f32 0.6931472, %v4265_v4  ;;  %v2800_v40 = vsub.f32 %v6883_v19, %v2780_v38  ;;  %v6151_v38 = vpop.xlane.xlu1 %2510  ;;  %v2788_v19 = vmul.f32 0.6931472, %v4271_v29 }
 0x704   : > { %v6120_v21 = vpop.xlane.xlu0 %2507 }
 0x705   : > { %2897 = vrot.lane.b32.xlu0 %v2851_v63, %s4352_s19 }
 0x706   : > { %2883 = vrot.lane.b32.xlu1 %v2844_v24, %s4352_s19  ;;  %v6886_v24 = vld [vmem:[#allocation59_spill] sm:$0xff] }
 0x707   : > { %v2832_v7 = vmul.f32 %v4267_v13, %v6886_v24 }
 0x708   : > { %v6127_v46 = vpop.xlane.xlu0 %2373 }
 0x709   : > { %2893 = vrot.lane.b32.xlu0 %v2849_v39, %s4352_s19  ;;  %v6885_v39 = vld [vmem:[#allocation54_spill] sm:$0xff]  ;;  %v2848_v54 = vmul.f32 %v2832_v7, %v2800_v40  ;;  %v2804_v7 = vsub.f32 %v6892_v15, %v2788_v19  ;;  %v6899_v19 = vld [vmem:[#allocation65_spill] sm:$0xff] }
 0x70a   : > { %2879 = vrot.lane.b32.xlu1 %v2842_v8, %s4352_s19  ;;  %v2798_v63 = vsub.f32 %v6885_v39, %v2776_v2  ;;  %v6888_v8 = vld [vmem:[#allocation62_spill] sm:$0xff]  ;;  %v4273_v39 = vpop.eup %4272 }
 0x70b   : > { %v2830_v4 = vmul.f32 %v4269_v34, %v6888_v8 }
 0x70c   : > { %v6136_v42 = vpop.xlane.xlu0 %2501 }
 0x70d   : > { %v2846_v2 = vmul.f32 %v2830_v4, %v2798_v63 }
 0x70e   : > { %3003 = vrot.lane.b32.xlu1 %v2800_v40, %s4352_s19  ;;  %v6158_v13 = vpop.xlane.xlu1 %2400  ;;  %v2784_v40 = vmul.f32 0.6931472, %v4273_v39 }
 0x70f   : > { %6890 = vst [vmem:[#allocation4_spill] sm:$0xff] %v6158_v13 }
 0x710   : > { %v6143_v58 = vpop.xlane.xlu0 %2391 }
 0x711   : > { %6884 = vst [vmem:[#allocation45_spill] sm:$0xff] %v6143_v58 }
 0x712   : > { %2999 = vrot.lane.b32.xlu1 %v2798_v63, %s4352_s19  ;;  %v6165_v34 = vpop.xlane.xlu1 %2528  ;;  %v6895_v63 = vld [vmem:[#allocation58_spill] sm:$0xff] }
 0x713   : > { %6893 = vst [vmem:[#allocation51_spill] sm:$0xff] %v6165_v34  ;;  %v2802_v8 = vsub.f32 %v6895_v63, %v2784_v40 }
 0x714   : > { %v6148_v35 = vpop.xlane.xlu0 %2519 }
 0x715   : > { %6887 = vst [vmem:[#allocation2_spill] sm:$0xff] %v6148_v35 }
 0x716   : > { %2891 = vrot.lane.b32.xlu1 %v2848_v54, %s4352_s19  ;;  %v4275_v54 = vpop.eup %4274 }
 0x717   : > { %v2836_v4 = vmul.f32 %v4275_v54, %v6896_v27 }
 0x718   : > { %v6155_v58 = vpop.xlane.xlu0 %2385 }
 0x719   : > { %6889 = vst [vmem:[#allocation3_spill] sm:$0xff] %v6155_v58  ;;  %v4277_v58 = vpop.eup %4276  ;;  %v2852_v39 = vmul.f32 %v2836_v4, %v2804_v7 }
 0x71a   : > { %2887 = vrot.lane.b32.xlu1 %v2846_v2, %s4352_s19  ;;  %v2834_v15 = vmul.f32 %v4277_v58, %v6899_v19 }
 0x71c   : > { %v6161_v24 = vpop.xlane.xlu0 %2513  ;;  %v2850_v34 = vmul.f32 %v2834_v15, %v2802_v8 }
 0x71d   : > { %6891 = vst [vmem:[#allocation47_spill] sm:$0xff] %v6161_v24  ;;  %v6174_v24 = vpop.xlane.xlu1 %2394 }
 0x71e   : > { %3011 = vrot.lane.b32.xlu1 %v2804_v7, %s4352_s19  ;;  %6898 = vst [vmem:[#allocation60_spill] sm:$0xff] %v6174_v24 }
 0x720   : > { %v6167_v29 = vpop.xlane.xlu0 %2403 }
 0x721   : > { %6894 = vst [vmem:[#allocation57_spill] sm:$0xff] %v6167_v29  ;;  %v6181_v40 = vpop.xlane.xlu1 %2522 }
 0x722   : > { %3007 = vrot.lane.b32.xlu1 %v2802_v8, %s4352_s19  ;;  %6901 = vst [vmem:[#allocation55_spill] sm:$0xff] %v6181_v40 }
 0x724   : > { %v6172_v2 = vpop.xlane.xlu0 %2531 }
 0x725   : > { %6897 = vst [vmem:[#allocation48_spill] sm:$0xff] %v6172_v2  ;;  %v3210_v27 = vpop.xlane.xlu1 %3209 }
 0x726   : > { %2899 = vrot.lane.b32.xlu1 %v2852_v39, %s4352_s19 }
 0x728   : > { %v6178_v13 = vpop.xlane.xlu0 %2397 }
 0x729   : > { %6900 = vst [vmem:[#allocation52_spill] sm:$0xff] %v6178_v13  ;;  %v3225_v39 = vpop.xlane.xlu1 %3224 }
 0x72a   : > { %2895 = vrot.lane.b32.xlu1 %v2850_v34, %s4352_s19 }
 0x72c   : > { %v6183_v63 = vpop.xlane.xlu0 %2525 }
 0x72d   : > { %6902 = vst [vmem:[#allocation46_spill] sm:$0xff] %v6183_v63 }
 0x730   : > { %v3213_v54 = vpop.xlane.xlu0 %3212 }
 0x731   : > { %4278 = vlog2.f32 %v3213_v54 }
 0x732   : > { %4280 = vrcp.f32 %v3213_v54 }
 0x733   : > { %4282 = vlog2.f32 %v3210_v27 }
 0x734   : > { %v3207_v7 = vpop.xlane.xlu0 %3206 }
 0x735   : > { %4284 = vlog2.f32 %v3207_v7 }
 0x738   : > { %v3216_v4 = vpop.xlane.xlu0 %3215 }
 0x739   : > { %4286 = vlog2.f32 %v3216_v4 }
 0x73a   : > { %4288 = vrcp.f32 %v3210_v27 }
 0x73b   : > { %v4279_v58 = vpop.eup %4278  ;;  %4290 = vlog2.f32 %v3225_v39 }
 0x73c   : > { %v4281_v19 = vpop.eup %4280  ;;  %v3258_v8 = vmul.f32 0.6931472, %v4279_v58  ;;  %4292 = vrcp.f32 %v3207_v7 }
 0x73d   : > { %v3319_v15 = vmul.f32 %v4281_v19, %v5920_v48  ;;  %v4283_v2 = vpop.eup %4282  ;;  %4294 = vrcp.f32 %v3225_v39 }
 0x73e   : > { %v3287_v34 = vsub.f32 %v5881_v16, %v3258_v8  ;;  %v3256_v54 = vmul.f32 0.6931472, %v4283_v2  ;;  %4296 = vrcp.f32 %v3216_v4  ;;  %v3219_v4 = vpop.xlane.xlu1 %3218 }
 0x73f   : > { %v4285_v13 = vpop.eup %4284  ;;  %4298 = vlog2.f32 %v3219_v4 }
 0x740   : > { %v3335_v63 = vmul.f32 %v3319_v15, %v3287_v34  ;;  %v3254_v27 = vmul.f32 0.6931472, %v4285_v13  ;;  %v3286_v7 = vsub.f32 %v5852_v32, %v3256_v54  ;;  %v3399_v2 = vmul.f32 %v6853_v55, %v3287_v34  ;;  %v3228_v34 = vpop.xlane.xlu0 %3227 }
 0x741   : > { %4300 = vlog2.f32 %v3228_v34 }
 0x742   : > { %v3355_v29 = vsel %vm1588_vm13, %v3335_v63, 0.0  ;;  %v3285_v63 = vsub.f32 %v5891_v44, %v3254_v27  ;;  %v3419_v32 = vsel %vm1588_vm13, %v3399_v2, 0.0 }
 0x743   : > { %v4287_v40 = vpop.eup %4286  ;;  %3356 = vadd.xlane.f32.xlu0 %v3355_v29 }
 0x744   : > { %v3260_v24 = vmul.f32 0.6931472, %v4287_v40  ;;  %v4289_v35 = vpop.eup %4288  ;;  %v3222_v2 = vpop.xlane.xlu0 %3221 }
 0x745   : > { %v4291_v16 = vpop.eup %4290  ;;  %v3318_v19 = vmul.f32 %v4289_v35, %v5877_v10  ;;  %v3398_v10 = vmul.f32 %v6850_v31, %v3286_v7  ;;  %4302 = vlog2.f32 %v3222_v2 }
 0x746   : > { %v3288_v58 = vsub.f32 %v5902_v43, %v3260_v24  ;;  %v4293_v8 = vpop.eup %4292  ;;  %v3266_v39 = vmul.f32 0.6931472, %v4291_v16  ;;  %4304 = vrcp.f32 %v3219_v4 }
 0x747   : > { %v3334_v40 = vmul.f32 %v3318_v19, %v3286_v7  ;;  %v3317_v13 = vmul.f32 %v4293_v8, %v5928_v53  ;;  %v4295_v43 = vpop.eup %4294  ;;  %v3397_v53 = vmul.f32 %v6855_v0, %v3285_v63  ;;  %v3416_v8 = vsel %vm1588_vm13, %v3398_v10, 0.0 }
 0x748   : > { %v3400_v48 = vmul.f32 %v6856_v47, %v3288_v58  ;;  %v3291_v35 = vsub.f32 %v5859_v45, %v3266_v39  ;;  %v4297_v44 = vpop.eup %4296  ;;  %v3323_v54 = vmul.f32 %v4295_v43, %v5886_v59  ;;  %4306 = vrcp.f32 %v3228_v34 }
 0x749   : > { %v3333_v24 = vmul.f32 %v3317_v13, %v3285_v63  ;;  %v3352_v15 = vsel %vm1588_vm13, %v3334_v40, 0.0  ;;  %v3320_v7 = vmul.f32 %v4297_v44, %v5936_v26  ;;  %v3413_v45 = vsel %vm1588_vm13, %v3397_v53, 0.0  ;;  %v6214_v40 = vpop.xlane.xlu0 %3239 }
 0x74a   : > { %v3422_v29 = vsel %vm1588_vm13, %v3400_v48, 0.0  ;;  %v3339_v48 = vmul.f32 %v3323_v54, %v3291_v35  ;;  %4308 = vrcp.f32 %v3222_v2 }
 0x74b   : > { %3423 = vadd.xlane.f32.xlu0 %v3422_v29  ;;  %v3349_v27 = vsel %vm1588_vm13, %v3333_v24, 0.0  ;;  %v3336_v19 = vmul.f32 %v3320_v7, %v3288_v58 }
 0x74c   : > { %v3367_v59 = vsel %vm1588_vm13, %v3339_v48, 0.0  ;;  %v3403_v48 = vmul.f32 %v6851_v6, %v3291_v35 }
 0x74d   : > { %v3358_v63 = vsel %vm1588_vm13, %v3336_v19, 0.0  ;;  %v6218_v26 = vpop.xlane.xlu0 %3233 }
 0x74e   : > { %3420 = vadd.xlane.f32.xlu1 %v3419_v32  ;;  %v4299_v32 = vpop.eup %4298  ;;  %v3431_v2 = vsel %vm1588_vm13, %v3403_v48, 0.0 }
 0x74f   : > { %3353 = vadd.xlane.f32.xlu0 %v3352_v15  ;;  %v3262_v15 = vmul.f32 0.6931472, %v4299_v32 }
 0x751   : > { %v6220_v24 = vpop.xlane.xlu0 %3251  ;;  %v3289_v7 = vsub.f32 %v5867_v30, %v3262_v15 }
 0x752   : > { %3350 = vadd.xlane.f32.xlu1 %v3349_v27  ;;  %v6203_v16 = vpop.xlane.xlu1 %3236  ;;  %v4301_v27 = vpop.eup %4300 }
 0x753   : > { %3417 = vadd.xlane.f32.xlu0 %v3416_v8  ;;  %v3268_v4 = vmul.f32 0.6931472, %v4301_v27  ;;  %4310 = vlog2.f32 %v6203_v16 }
 0x755   : > { %v6224_v53 = vpop.xlane.xlu0 %3245  ;;  %v3292_v30 = vsub.f32 %v5910_v57, %v3268_v4 }
 0x756   : > { %3414 = vadd.xlane.f32.xlu1 %v3413_v45  ;;  %v6208_v39 = vpop.xlane.xlu1 %3230  ;;  %v4303_v45 = vpop.eup %4302 }
 0x757   : > { %3368 = vadd.xlane.f32.xlu0 %v3367_v59  ;;  %v4305_v19 = vpop.eup %4304  ;;  %4312 = vlog2.f32 %v6208_v39 }
 0x758   : > { %v4307_v59 = vpop.eup %4306  ;;  %4314 = vlog2.f32 %v6214_v40 }
 0x759   : > { %v2984_v15 = vpop.permute.xlu0 %2983  ;;  %4316 = vrcp.f32 %v6203_v16 }
 0x75a   : > { %3359 = vadd.xlane.f32.xlu1 %v3358_v63  ;;  %v6212_v29 = vpop.xlane.xlu1 %3248  ;;  %v3401_v63 = vmul.f32 %v5337_v3, %v3289_v7  ;;  %4318 = vlog2.f32 %v6218_v26  ;;  %v3030_v16 = vmul.f32 %v6850_v31, %v2984_v15 }
 0x75b   : > { %4320 = vrcp.f32 %v6214_v40 }
 0x75c   : > { %v3425_v48 = vsel %vm1588_vm13, %v3401_v63, 0.0  ;;  %4322 = vrcp.f32 %v6208_v39  ;;  %v6905_v39 = vld [vmem:[#allocation5_spill] sm:$0xff]  ;;  %v3048_v15 = vsel %vm1588_vm13, %v3030_v16, 0.0 }
 0x75d   : > { %4324 = vrcp.f32 %v6218_v26 }
 0x75e   : > { %v6216_v13 = vpop.xlane.xlu1 %3242 }
 0x75f   : > { %4326 = vlog2.f32 %v6216_v13 }
 0x760   : > { %4328 = vlog2.f32 %v6220_v24 }
 0x761   : > { %4330 = vlog2.f32 %v6212_v29 }
 0x762   : > { %v2986_v58 = vpop.permute.xlu1 %2985  ;;  %4332 = vlog2.f32 %v6224_v53 }
 0x763   : > { %v3031_v44 = vmul.f32 %v6853_v55, %v2986_v58  ;;  %v3264_v58 = vmul.f32 0.6931472, %v4303_v45  ;;  %4334 = vrcp.f32 %v6220_v24 }
 0x764   : > { %4336 = vrcp.f32 %v6212_v29 }
 0x765   : > { %v3051_v34 = vsel %vm1588_vm13, %v3031_v44, 0.0  ;;  %v3324_v44 = vmul.f32 %v4307_v59, %v5944_v33  ;;  %4338 = vrcp.f32 %v6224_v53 }
 0x766   : > { %v2982_v43 = vpop.permute.xlu1 %2981 }
 0x767   : > { %v3029_v32 = vmul.f32 %v6855_v0, %v2982_v43  ;;  %v3340_v45 = vmul.f32 %v3324_v44, %v3292_v30  ;;  %v3290_v0 = vsub.f32 %v5917_v17, %v3264_v58  ;;  %v2872_v43 = vpop.permute.xlu0 %2871  ;;  %v6903_v58 = vld [vmem:[#allocation6_spill] sm:$0xff] }
 0x76a   : > { %v2874_v10 = vpop.permute.xlu1 %2873 }
 0x76b   : > { %v2923_v54 = vsel %vm1588_vm13, %v2874_v10, 0.0  ;;  %v3321_v10 = vmul.f32 %v4305_v19, %v5897_v28 }
 0x76c   : > { %2924 = vadd.xlane.f32.xlu1 %v2923_v54  ;;  %v4309_v54 = vpop.eup %4308  ;;  %4340 = vrcp.f32 %v6216_v13 }
 0x76d   : > { %v3337_v27 = vmul.f32 %v3321_v10, %v3289_v7  ;;  %v3322_v57 = vmul.f32 %v4309_v54, %v5952_v51  ;;  %v4311_v19 = vpop.eup %4310  ;;  %v2882_v51 = vpop.permute.xlu0 %2881  ;;  %v6904_v54 = vld [vmem:[#allocation9_spill] sm:$0xff] }
 0x76e   : > { %v2988_v8 = vpop.permute.xlu1 %2987  ;;  %v3274_v7 = vmul.f32 0.6931472, %v4311_v19 }
 0x76f   : > { %v3361_v28 = vsel %vm1588_vm13, %v3337_v27, 0.0  ;;  %v3338_v33 = vmul.f32 %v3322_v57, %v3290_v0  ;;  %v3032_v59 = vmul.f32 %v6856_v47, %v2988_v8 }
 0x770   : > { %3052 = vadd.xlane.f32.xlu1 %v3051_v34  ;;  %v3045_v34 = vsel %vm1588_vm13, %v3029_v32, 0.0  ;;  %v3404_v32 = vmul.f32 %v6903_v58, %v3292_v30  ;;  %v3295_v47 = vsub.f32 %v5960_v25, %v3274_v7 }
 0x771   : > { %v3054_v44 = vsel %vm1588_vm13, %v3032_v59, 0.0 }
 0x772   : > { %v2870_v55 = vpop.permute.xlu1 %2869  ;;  %v3434_v8 = vsel %vm1588_vm13, %v3404_v32, 0.0  ;;  %v3407_v27 = vmul.f32 %v6904_v54, %v3295_v47 }
 0x773   : > { %v2917_v35 = vsel %vm1588_vm13, %v2870_v55, 0.0  ;;  %v3370_v55 = vsel %vm1588_vm13, %v3340_v45, 0.0  ;;  %v2920_v45 = vsel %vm1588_vm13, %v2872_v43, 0.0 }
 0x774   : > { %3432 = vadd.xlane.f32.xlu1 %v3431_v2  ;;  %2918 = vadd.xlane.f32.xlu0 %v2917_v35  ;;  %v3364_v2 = vsel %vm1588_vm13, %v3338_v33, 0.0  ;;  %v2935_v35 = vsel %vm1588_vm13, %v2882_v51, 0.0  ;;  %v3443_v40 = vsel %vm1588_vm13, %v3407_v27, 0.0  ;;  %v3402_v33 = vmul.f32 %v6905_v39, %v3290_v0 }
 0x776   : > { %v2876_v4 = vpop.permute.xlu1 %2875 }
 0x777   : > { %v2926_v17 = vsel %vm1588_vm13, %v2876_v4, 0.0 }
 0x778   : > { %3426 = vadd.xlane.f32.xlu1 %v3425_v48  ;;  %3046 = vadd.xlane.f32.xlu0 %v3045_v34  ;;  %v4313_v48 = vpop.eup %4312 }
 0x779   : > { %v4315_v25 = vpop.eup %4314  ;;  %v3270_v34 = vmul.f32 0.6931472, %v4313_v48 }
 0x77a   : > { %v2994_v63 = vpop.permute.xlu1 %2993  ;;  %v4317_v4 = vpop.eup %4316 }
 0x77b   : > { %v3035_v10 = vmul.f32 %v6851_v6, %v2994_v63  ;;  %v2878_v6 = vpop.permute.xlu0 %2877  ;;  %v3293_v43 = vsub.f32 %v5968_v18, %v3270_v34  ;;  %v4319_v7 = vpop.eup %4318  ;;  %v3327_v59 = vmul.f32 %v4317_v4, %v5988_v12 }
 0x77c   : > { %3371 = vadd.xlane.f32.xlu1 %v3370_v55  ;;  %3362 = vadd.xlane.f32.xlu0 %v3361_v28  ;;  %v3276_v55 = vmul.f32 0.6931472, %v4315_v25  ;;  %v2929_v19 = vsel %vm1588_vm13, %v2878_v6, 0.0  ;;  %v4321_v26 = vpop.eup %4320  ;;  %v3272_v0 = vmul.f32 0.6931472, %v4319_v7 }
 0x77d   : > { %v3063_v30 = vsel %vm1588_vm13, %v3035_v10, 0.0  ;;  %v3343_v32 = vmul.f32 %v3327_v59, %v3295_v47  ;;  %v3328_v18 = vmul.f32 %v4321_v26, %v5957_v11  ;;  %v6907_v47 = vld [vmem:[#allocation26_spill] sm:$0xff] }
 0x77e   : > { %v2990_v57 = vpop.permute.xlu1 %2989  ;;  %v3296_v51 = vsub.f32 %v5924_v20, %v3276_v55  ;;  %v3294_v6 = vsub.f32 %v5932_v61, %v3272_v0 }
 0x77f   : > { %v6264_v28 = vpop.permute.xlu0 %2991  ;;  %v3033_v31 = vmul.f32 %v5337_v3, %v2990_v57  ;;  %v6906_v3 = vld [vmem:[#allocation7_spill] sm:$0xff]  ;;  %v3379_v27 = vsel %vm1588_vm13, %v3343_v32, 0.0 }
 0x780   : > { %3365 = vadd.xlane.f32.xlu1 %v3364_v2  ;;  %2927 = vadd.xlane.f32.xlu0 %v2926_v17  ;;  %v4323_v17 = vpop.eup %4322  ;;  %v3428_v2 = vsel %vm1588_vm13, %v3402_v33, 0.0  ;;  %v3034_v29 = vmul.f32 %v6905_v39, %v6264_v28 }
 0x781   : > { %v3057_v63 = vsel %vm1588_vm13, %v3033_v31, 0.0  ;;  %v6908_v31 = vld [vmem:[#allocation10_spill] sm:$0xff] }
 0x782   : > { %v2996_v12 = vpop.permute.xlu1 %2995  ;;  %v3060_v39 = vsel %vm1588_vm13, %v3034_v29, 0.0 }
 0x783   : > { %v3002_v10 = vpop.permute.xlu0 %3001  ;;  %v3036_v61 = vmul.f32 %v6903_v58, %v2996_v12  ;;  %v6910_v12 = vld [vmem:[#allocation8_spill] sm:$0xff] }
 0x784   : > { %2936 = vadd.xlane.f32.xlu1 %v2935_v35  ;;  %3055 = vadd.xlane.f32.xlu0 %v3054_v44  ;;  %v3405_v35 = vmul.f32 %v6906_v3, %v3293_v43  ;;  %v3325_v44 = vmul.f32 %v4323_v17, %v5993_v50  ;;  %v3039_v55 = vmul.f32 %v6904_v54, %v3002_v10 }
 0x786   : > { %v3437_v20 = vsel %vm1588_vm13, %v3405_v35, 0.0  ;;  %v3341_v48 = vmul.f32 %v3325_v44, %v3293_v43  ;;  %v3075_v24 = vsel %vm1588_vm13, %v3039_v55, 0.0  ;;  %v6909_v35 = vld [vmem:[#allocation40_spill] sm:$0xff] }
 0x787   : > { %v2998_v16 = vpop.permute.xlu0 %2997 }
 0x788   : > { %3435 = vadd.xlane.f32.xlu0 %v3434_v8  ;;  %3064 = vadd.xlane.f32.xlu1 %v3063_v30  ;;  %v4325_v8 = vpop.eup %4324  ;;  %v3344_v30 = vmul.f32 %v3328_v18, %v3296_v51  ;;  %v3373_v11 = vsel %vm1588_vm13, %v3341_v48, 0.0 }
 0x789   : > { %v3326_v25 = vmul.f32 %v4325_v8, %v6907_v47  ;;  %v4327_v58 = vpop.eup %4326  ;;  %v6913_v47 = vld [vmem:[#allocation36_spill] sm:$0xff] }
 0x78a   : > { %v3382_v50 = vsel %vm1588_vm13, %v3344_v30, 0.0  ;;  %v4329_v43 = vpop.eup %4328  ;;  %v3278_v59 = vmul.f32 0.6931472, %v4327_v58  ;;  %v3406_v30 = vmul.f32 %v6910_v12, %v3294_v6  ;;  %v6917_v58 = vld [vmem:[#allocation38_spill] sm:$0xff] }
 0x78b   : > { %v3342_v34 = vmul.f32 %v3326_v25, %v3294_v6  ;;  %v2890_v4 = vpop.permute.xlu0 %2889  ;;  %v4331_v26 = vpop.eup %4330 }
 0x78c   : > { %2921 = vadd.xlane.f32.xlu0 %v2920_v45  ;;  %3444 = vadd.xlane.f32.xlu1 %v3443_v40  ;;  %v2884_v45 = vpop.permute.xlu1 %2883  ;;  %v2947_v33 = vsel %vm1588_vm13, %v2890_v4, 0.0  ;;  %v4333_v0 = vpop.eup %4332  ;;  %v3297_v10 = vsub.f32 %v6909_v35, %v3278_v59 }
 0x78d   : > { %v2938_v40 = vsel %vm1588_vm13, %v2884_v45, 0.0  ;;  %v3376_v57 = vsel %vm1588_vm13, %v3342_v34, 0.0  ;;  %v4335_v18 = vpop.eup %4334  ;;  %v3280_v8 = vmul.f32 0.6931472, %v4333_v0  ;;  %v6915_v45 = vld [vmem:[#allocation41_spill] sm:$0xff] }
 0x78e   : > { %v4337_v13 = vpop.eup %4336 }
 0x78f   : > { %v2886_v17 = vpop.permute.xlu0 %2885 }
 0x790   : > { %3049 = vadd.xlane.f32.xlu0 %v3048_v15  ;;  %2930 = vadd.xlane.f32.xlu1 %v2929_v19  ;;  %v3066_v19 = vsel %vm1588_vm13, %v3036_v61, 0.0  ;;  %v3408_v15 = vmul.f32 %v6908_v31, %v3296_v51  ;;  %v2880_v7 = vpop.permute.xlu1 %2879  ;;  %v3282_v51 = vmul.f32 0.6931472, %v4331_v26  ;;  %v2941_v53 = vsel %vm1588_vm13, %v2886_v17, 0.0 }
 0x791   : > { %v2932_v32 = vsel %vm1588_vm13, %v2880_v7, 0.0  ;;  %v3331_v61 = vmul.f32 %v4337_v13, %v6915_v45  ;;  %v6918_v7 = vld [vmem:[#allocation43_spill] sm:$0xff] }
 0x792   : > { %v3446_v54 = vsel %vm1588_vm13, %v3408_v15, 0.0  ;;  %v3299_v25 = vsub.f32 %v6913_v47, %v3282_v51 }
 0x794   : > { %3429 = vadd.xlane.f32.xlu0 %v3428_v2  ;;  %3058 = vadd.xlane.f32.xlu1 %v3057_v63  ;;  %v3284_v2 = vmul.f32 0.6931472, %v4329_v43  ;;  %v3037_v63 = vmul.f32 %v6906_v3, %v2998_v16  ;;  %v3004_v44 = vpop.permute.xlu1 %3003  ;;  %v6912_v3 = vld [vmem:[#allocation12_spill] sm:$0xff]  ;;  %v3010_v16 = vpop.permute.xlu0 %3009 }
 0x795   : > { %v3409_v48 = vmul.f32 %v6912_v3, %v3297_v10  ;;  %v3040_v13 = vmul.f32 %v6908_v31, %v3004_v44 }
 0x796   : > { %v3069_v28 = vsel %vm1588_vm13, %v3037_v63, 0.0 }
 0x797   : > { %v3449_v4 = vsel %vm1588_vm13, %v3409_v48, 0.0 }
 0x798   : > { %3380 = vadd.xlane.f32.xlu0 %v3379_v27  ;;  %3438 = vadd.xlane.f32.xlu1 %v3437_v20  ;;  %v6911_v27 = vld [vmem:[#allocation37_spill] sm:$0xff]  ;;  %v3006_v59 = vpop.permute.xlu0 %3005 }
 0x799   : > { %v6309_v20 = vsub.f32 %v6911_v27, %v3284_v2 }
 0x79c   : > { %3374 = vadd.xlane.f32.xlu0 %v3373_v11  ;;  %3383 = vadd.xlane.f32.xlu1 %v3382_v50  ;;  %v4339_v11 = vpop.eup %4338  ;;  %v6914_v50 = vld [vmem:[#allocation30_spill] sm:$0xff]  ;;  %v2898_v63 = vpop.permute.xlu0 %2897 }
 0x79d   : > { %v3332_v34 = vmul.f32 %v4335_v18, %v6914_v50  ;;  %v4341_v6 = vpop.eup %4340  ;;  %v3330_v43 = vmul.f32 %v4339_v11, %v6917_v58  ;;  %v2959_v18 = vsel %vm1588_vm13, %v2898_v63, 0.0 }
 0x79e   : > { %v3329_v26 = vmul.f32 %v4341_v6, %v6918_v7  ;;  %v6921_v6 = vld [vmem:[#allocation13_spill] sm:$0xff] }
 0x79f   : > { %v3348_v55 = vmul.f32 %v3332_v34, %v6309_v20  ;;  %v6920_v34 = vld [vmem:[#allocation11_spill] sm:$0xff] }
 0x7a0   : > { %3377 = vadd.xlane.f32.xlu1 %v3376_v57  ;;  %2939 = vadd.xlane.f32.xlu0 %v2938_v40  ;;  %v3000_v40 = vpop.permute.xlu1 %2999  ;;  %v3440_v57 = vsel %vm1588_vm13, %v3406_v30, 0.0  ;;  %v3345_v2 = vmul.f32 %v3329_v26, %v3297_v10  ;;  %v3078_v30 = vsel %vm1588_vm13, %v3040_v13, 0.0  ;;  %v2894_v27 = vpop.permute.xlu0 %2893 }
 0x7a1   : > { %v2953_v48 = vsel %vm1588_vm13, %v2894_v27, 0.0  ;;  %v3038_v47 = vmul.f32 %v6910_v12, %v3000_v40 }
 0x7a2   : > { %v3385_v0 = vsel %vm1588_vm13, %v3345_v2, 0.0 }
 0x7a3   : > { %v3072_v11 = vsel %vm1588_vm13, %v3038_v47, 0.0 }
 0x7a4   : > { %2948 = vadd.xlane.f32.xlu1 %v2947_v33  ;;  %3067 = vadd.xlane.f32.xlu0 %v3066_v19  ;;  %v3347_v33 = vmul.f32 %v3331_v61, %v3299_v25  ;;  %v6916_v19 = vld [vmem:[#allocation39_spill] sm:$0xff]  ;;  %v2892_v51 = vpop.permute.xlu1 %2891 }
 0x7a5   : > { %v3298_v15 = vsub.f32 %v6916_v19, %v3280_v8  ;;  %v2950_v8 = vsel %vm1588_vm13, %v2892_v51, 0.0 }
 0x7a7   : > { %v3346_v17 = vmul.f32 %v3330_v43, %v3298_v15  ;;  %v3410_v45 = vmul.f32 %v6920_v34, %v3298_v15  ;;  %v3412_v15 = vmul.f32 %v6921_v6, %v6309_v20  ;;  %v6922_v20 = vld [vmem:[#allocation24_spill] sm:$0xff] }
 0x7a8   : > { %3076 = vadd.xlane.f32.xlu1 %v3075_v24  ;;  %3447 = vadd.xlane.f32.xlu0 %v3446_v54  ;;  %v3394_v24 = vsel %vm1588_vm13, %v3348_v55, 0.0  ;;  %v3391_v54 = vsel %vm1588_vm13, %v3347_v33, 0.0  ;;  %v3480_v51 = vsel %vm3477_vm4, %v6922_v20, %v6058_v36  ;;  %v2536_v20 = vsub.f32 0.0, %v6102_v1 }
 0x7a9   : > { %v3388_v29 = vsel %vm1588_vm13, %v3346_v17, 0.0  ;;  %v3452_v61 = vsel %vm1588_vm13, %v3410_v45, 0.0  ;;  %v3458_v43 = vsel %vm1588_vm13, %v3412_v15, 0.0  ;;  %v2539_v1 = vsub.f32 0.0, %v6080_v37 }
 0x7ac   : > { %2942 = vadd.xlane.f32.xlu1 %v2941_v53  ;;  %2933 = vadd.xlane.f32.xlu0 %v2932_v32  ;;  %v2888_v53 = vpop.permute.xlu1 %2887  ;;  %v6919_v32 = vld [vmem:[#allocation14_spill] sm:$0xff] }
 0x7ad   : > { %v3043_v35 = vmul.f32 %v6919_v32, %v3010_v16  ;;  %v2944_v31 = vsel %vm1588_vm13, %v2888_v53, 0.0  ;;  %v3411_v50 = vmul.f32 %v6919_v32, %v3299_v25 }
 0x7af   : > { %v3087_v10 = vsel %vm1588_vm13, %v3043_v35, 0.0 }
 0x7b0   : > { %3070 = vadd.xlane.f32.xlu1 %v3069_v28  ;;  %3061 = vadd.xlane.f32.xlu0 %v3060_v39  ;;  %v3012_v28 = vpop.permute.xlu1 %3011  ;;  %v3041_v39 = vmul.f32 %v6912_v3, %v3006_v59  ;;  %v3455_v3 = vsel %vm1588_vm13, %v3411_v50, 0.0 }
 0x7b1   : > { %v3044_v40 = vmul.f32 %v6921_v6, %v3012_v28 }
 0x7b2   : > { %v3081_v16 = vsel %vm1588_vm13, %v3041_v39, 0.0 }
 0x7b4   : > { %3450 = vadd.xlane.f32.xlu1 %v3449_v4  ;;  %3441 = vadd.xlane.f32.xlu0 %v3440_v57  ;;  %v3008_v44 = vpop.permute.xlu1 %3007  ;;  %v3090_v4 = vsel %vm1588_vm13, %v3044_v40, 0.0 }
 0x7b5   : > { %v3042_v25 = vmul.f32 %v6920_v34, %v3008_v44  ;;  %v2533_v34 = vsub.f32 0.0, %v6085_v14 }
 0x7b7   : > { %v3084_v19 = vsel %vm1588_vm13, %v3042_v25, 0.0 }
 0x7b8   : > { %3395 = vadd.xlane.f32.xlu1 %v3394_v24  ;;  %3392 = vadd.xlane.f32.xlu0 %v3391_v54  ;;  %v2900_v12 = vpop.permute.xlu1 %2899 }
 0x7b9   : > { %v2962_v57 = vsel %vm1588_vm13, %v2900_v12, 0.0 }
 0x7bc   : > { %3389 = vadd.xlane.f32.xlu1 %v3388_v29  ;;  %3386 = vadd.xlane.f32.xlu0 %v3385_v0  ;;  %v2896_v55 = vpop.permute.xlu1 %2895  ;;  %v6923_v0 = vld [vmem:[#allocation15_spill] sm:$0xff] }
 0x7bd   : > { %v2956_v33 = vsel %vm1588_vm13, %v2896_v55, 0.0  ;;  %v1975_v63 = vsub.f32 0.0, %v6923_v0  ;;  %v6926_v55 = vld [vmem:[#allocation17_spill] sm:$0xff] }
 0x7be   : > { %v3481_v14 = vsel %vm3477_vm4, %v6926_v55, %v6094_v60 }
 0x7c0   : > { %2960 = vadd.xlane.f32.xlu1 %v2959_v18  ;;  %2951 = vadd.xlane.f32.xlu0 %v2950_v8  ;;  %v2535_v18 = vsub.f32 0.0, %v6067_v23  ;;  %v6924_v23 = vld [vmem:[#allocation20_spill] sm:$0xff] }
 0x7c1   : > { %v3478_v28 = vsel %vm3477_vm4, %v6924_v23, %v6076_v49  ;;  %v6930_v23 = vld [vmem:[#allocation28_spill] sm:$0xff] }
 0x7c4   : > { %3088 = vadd.xlane.f32.xlu1 %v3087_v10  ;;  %3079 = vadd.xlane.f32.xlu0 %v3078_v30 }
 0x7c8   : > { %2954 = vadd.xlane.f32.xlu1 %v2953_v48  ;;  %2945 = vadd.xlane.f32.xlu0 %v2944_v31  ;;  %v6925_v31 = vld [vmem:[#allocation23_spill] sm:$0xff] }
 0x7c9   : > { %v1973_v44 = vsub.f32 0.0, %v6925_v31  ;;  %v6931_v31 = vld [vmem:[#allocation16_spill] sm:$0xff] }
 0x7cc   : > { %3082 = vadd.xlane.f32.xlu1 %v3081_v16  ;;  %3073 = vadd.xlane.f32.xlu0 %v3072_v11 }
 0x7d0   : > { %3456 = vadd.xlane.f32.xlu1 %v3455_v3  ;;  %3453 = vadd.xlane.f32.xlu0 %v3452_v61  ;;  %v3357_v7 = vpop.xlane.xlu0 %3356 }
 0x7d4   : > { %2963 = vadd.xlane.f32.xlu0 %v2962_v57 }
 0x7d8   : > { %3091 = vadd.xlane.f32.xlu0 %v3090_v4  ;;  %v6352_v59 = vpop.xlane.xlu0 %3423 }
 0x7db   : > { %v3421_v58 = vpop.xlane.xlu1 %3420 }
 0x7dc   : > { %2957 = vadd.xlane.f32.xlu0 %v2956_v33  ;;  %v6354_v54 = vpop.xlane.xlu0 %3353  ;;  %v3463_v36 = vsub.f32 0.0, %v3421_v58 }
 0x7df   : > { %v3351_v26 = vpop.xlane.xlu1 %3350 }
 0x7e0   : > { %3085 = vadd.xlane.f32.xlu0 %v3084_v19  ;;  %v6356_v2 = vpop.xlane.xlu0 %3417  ;;  %v6927_v19 = vld [vmem:[#allocation31_spill] sm:$0xff] }
 0x7e1   : > { %v1976_v15 = vsub.f32 0.0, %v6927_v19 }
 0x7e3   : > { %v3415_v24 = vpop.xlane.xlu1 %3414 }
 0x7e4   : > { %3459 = vadd.xlane.f32.xlu0 %v3458_v43  ;;  %v3369_v13 = vpop.xlane.xlu0 %3368  ;;  %v3461_v61 = vsub.f32 0.0, %v3415_v24 }
 0x7e7   : > { %v3360_v17 = vpop.xlane.xlu1 %3359 }
 0x7f9   : > { %v2925_v29 = vpop.xlane.xlu1 %2924 }
 0x7fa   : > { %v3497_v53 = vsel %vm3494_vm3, %v3480_v51, %v2925_v29  ;;  %v6929_v29 = vld [vmem:[#allocation19_spill] sm:$0xff] }
 0x7fb   : > { %v3514_v32 = vsel %vm3511_vm5, %v3497_v53, %v3357_v7  ;;  %v1979_v0 = vsub.f32 0.0, %v6929_v29 }
 0x7fc   : > { %v3531_v35 = vsel %vm3528_vm6, %v3514_v32, %v1975_v63  ;;  %v3464_v32 = vsub.f32 0.0, %v6352_v59 }
 0x7fd   : > { %v3053_v8 = vpop.xlane.xlu1 %3052  ;;  %v3548_v30 = vsel %vm3545_vm7, %v3531_v35, %v2535_v18 }
 0x7fe   : > { %v3095_v10 = vsub.f32 0.0, %v3053_v8 }
 0x800   : > { %v3565_v27 = vsel %vm3562_vm8, %v3548_v30, %v3095_v10 }
 0x801   : > { %v3582_v39 = vsel %vm3579_vm9, %v3565_v27, %v3463_v36  ;;  %v2919_v48 = vpop.xlane.xlu0 %2918  ;;  %v3433_v47 = vpop.xlane.xlu1 %3432 }
 0x802   : > { %3599 = vst.msk [vmem:[%s6371_s16 + $0x10] sm:$0xff] %vm3596_vm10, %v3582_v39  ;;  %v3495_v16 = vsel %vm3494_vm3, %v3478_v28, %v2919_v48  ;;  %v3467_v59 = vsub.f32 0.0, %v3433_v47  ;;  %v3479_v28 = vsel %vm3477_vm4, %v6930_v23, %v6036_v52  ;;  %v6933_v52 = vld [vmem:[#allocation18_spill] sm:$0xff] }
 0x803   : > { %v3512_v11 = vsel %vm3511_vm5, %v3495_v16, %v3351_v26  ;;  %v6928_v26 = vld [vmem:[#allocation27_spill] sm:$0xff] }
 0x804   : > { %v3529_v50 = vsel %vm3528_vm6, %v3512_v11, %v1973_v44  ;;  %v3484_v24 = vsel %vm3477_vm4, %v6928_v26, %v6065_v62  ;;  %v1974_v44 = vsub.f32 0.0, %v6931_v31 }
 0x805   : > { %v3047_v45 = vpop.xlane.xlu0 %3046  ;;  %v6386_v3 = vpop.xlane.xlu1 %3426  ;;  %v3546_v12 = vsel %vm3545_vm7, %v3529_v50, %v2533_v34  ;;  %v6932_v50 = vld [vmem:[#allocation44_spill] sm:$0xff] }
 0x806   : > { %v3093_v49 = vsub.f32 0.0, %v3047_v45  ;;  %v2534_v34 = vsub.f32 0.0, %v6932_v50  ;;  %v3482_v45 = vsel %vm3477_vm4, %v6933_v52, %v6092_v22  ;;  %v2537_v22 = vsub.f32 0.0, %v6105_v5 }
 0x808   : > { %v3563_v6 = vsel %vm3562_vm8, %v3546_v12, %v3093_v49  ;;  %v6934_v12 = vld [vmem:[#allocation33_spill] sm:$0xff] }
 0x809   : > { %v3580_v40 = vsel %vm3579_vm9, %v3563_v6, %v3461_v61  ;;  %v3363_v57 = vpop.xlane.xlu0 %3362  ;;  %v6391_v4 = vpop.xlane.xlu1 %3371  ;;  %v1977_v6 = vsub.f32 0.0, %v6934_v12 }
 0x80a   : > { %3597 = vst.msk [vmem:[%s6371_s16] sm:$0xff] %vm3596_vm10, %v3580_v40 }
 0x80d   : > { %v2928_v25 = vpop.xlane.xlu0 %2927  ;;  %v6398_v33 = vpop.xlane.xlu1 %3365 }
 0x80e   : > { %v3498_v58 = vsel %vm3494_vm3, %v3481_v14, %v2928_v25  ;;  %v3462_v14 = vsub.f32 0.0, %v6356_v2  ;;  %v3465_v2 = vsub.f32 0.0, %v6386_v3  ;;  %v6937_v3 = vld [vmem:[#allocation21_spill] sm:$0xff] }
 0x80f   : > { %v3515_v43 = vsel %vm3511_vm5, %v3498_v58, %v3360_v17 }
 0x810   : > { %v3532_v7 = vsel %vm3528_vm6, %v3515_v43, %v1976_v15 }
 0x811   : > { %v3056_v51 = vpop.xlane.xlu0 %3055  ;;  %v2937_v60 = vpop.xlane.xlu1 %2936  ;;  %v3549_v17 = vsel %vm3545_vm7, %v3532_v7, %v2536_v20 }
 0x812   : > { %v3096_v63 = vsub.f32 0.0, %v3056_v51  ;;  %v3501_v53 = vsel %vm3494_vm3, %v3484_v24, %v2937_v60 }
 0x813   : > { %v3518_v35 = vsel %vm3511_vm5, %v3501_v53, %v3369_v13 }
 0x814   : > { %v3566_v18 = vsel %vm3562_vm8, %v3549_v17, %v3096_v63  ;;  %v3535_v62 = vsel %vm3528_vm6, %v3518_v35, %v1979_v0  ;;  %v6935_v0 = vld [vmem:[#allocation42_spill] sm:$0xff]  ;;  %v1980_v35 = vsub.f32 0.0, %v6937_v3 }
 0x815   : > { %v3583_v8 = vsel %vm3579_vm9, %v3566_v18, %v3464_v32  ;;  %v6417_v10 = vpop.xlane.xlu0 %3435  ;;  %v3065_v36 = vpop.xlane.xlu1 %3064  ;;  %v3552_v27 = vsel %vm3545_vm7, %v3535_v62, %v2539_v1  ;;  %v6936_v63 = vld [vmem:[#allocation22_spill] sm:$0xff] }
 0x816   : > { %3600 = vst.msk [vmem:[%s6371_s16 + $0x18] sm:$0xff] %vm3596_vm10, %v3583_v8  ;;  %v3099_v30 = vsub.f32 0.0, %v3065_v36  ;;  %v3485_v53 = vsel %vm3477_vm4, %v6936_v63, %v6935_v0  ;;  %v6938_v8 = vld [vmem:[#allocation66_spill] sm:$0xff] }
 0x817   : > { %v3488_v36 = vsel %vm3477_vm4, %v6938_v8, %v6118_v9 }
 0x818   : > { %v3569_v13 = vsel %vm3562_vm8, %v3552_v27, %v3099_v30  ;;  %v2540_v30 = vsub.f32 0.0, %v6120_v21 }
 0x819   : > { %v3586_v39 = vsel %vm3579_vm9, %v3569_v13, %v3467_v59  ;;  %v2922_v37 = vpop.xlane.xlu0 %2921  ;;  %v6427_v48 = vpop.xlane.xlu1 %3444  ;;  %v6939_v13 = vld [vmem:[#allocation32_spill] sm:$0xff] }
 0x81a   : > { %3603 = vst.msk [vmem:[%s6371_s16 + $0x30] sm:$0xff] %vm3596_vm10, %v3586_v39  ;;  %v3496_v16 = vsel %vm3494_vm3, %v3479_v28, %v2922_v37  ;;  %v1983_v23 = vsub.f32 0.0, %v6939_v13  ;;  %v3468_v37 = vsub.f32 0.0, %v6417_v10  ;;  %v3471_v10 = vsub.f32 0.0, %v6427_v48 }
 0x81b   : > { %v3513_v47 = vsel %vm3511_vm5, %v3496_v16, %v6354_v54  ;;  %v2543_v16 = vsub.f32 0.0, %v6132_v41  ;;  %v6941_v41 = vld [vmem:[#allocation35_spill] sm:$0xff] }
 0x81c   : > { %v3530_v11 = vsel %vm3528_vm6, %v3513_v47, %v1974_v44 }
 0x81d   : > { %v3050_v49 = vpop.xlane.xlu0 %3049  ;;  %v2931_v61 = vpop.xlane.xlu1 %2930  ;;  %v3547_v54 = vsel %vm3545_vm7, %v3530_v11, %v2534_v34 }
 0x81e   : > { %v3094_v40 = vsub.f32 0.0, %v3050_v49  ;;  %v3499_v55 = vsel %vm3494_vm3, %v3482_v45, %v2931_v61  ;;  %v6940_v45 = vld [vmem:[#allocation68_spill] sm:$0xff]  ;;  %v3483_v61 = vsel %vm3477_vm4, %v6941_v41, %v6127_v46 }
 0x81f   : > { %v3516_v25 = vsel %vm3511_vm5, %v3499_v55, %v3363_v57  ;;  %v3486_v49 = vsel %vm3477_vm4, %v6940_v45, %v6141_v56  ;;  %v6942_v55 = vld [vmem:[#allocation70_spill] sm:$0xff]  ;;  %v6953_v45 = vld [vmem:[#allocation71_spill] sm:$0xff] }
 0x820   : > { %v3564_v19 = vsel %vm3562_vm8, %v3547_v54, %v3094_v40  ;;  %v3533_v15 = vsel %vm3528_vm6, %v3516_v25, %v1977_v6  ;;  %v6943_v54 = vld [vmem:[#allocation67_spill] sm:$0xff] }
 0x821   : > { %v3581_v58 = vsel %vm3579_vm9, %v3564_v19, %v3462_v14  ;;  %v6449_v43 = vpop.xlane.xlu0 %3429  ;;  %v3059_v7 = vpop.xlane.xlu1 %3058  ;;  %v3550_v24 = vsel %vm3545_vm7, %v3533_v15, %v2537_v22  ;;  %v1981_v14 = vsub.f32 0.0, %v6942_v55  ;;  %v1978_v48 = vsub.f32 0.0, %v6943_v54  ;;  %v6955_v55 = vld [vmem:[#allocation73_spill] sm:$0xff] }
 0x822   : > { %3598 = vst.msk [vmem:[%s6371_s16 + $0x8] sm:$0xff] %vm3596_vm10, %v3581_v58  ;;  %v3097_v26 = vsub.f32 0.0, %v3059_v7  ;;  %v2541_v58 = vsub.f32 0.0, %v6151_v38  ;;  %v2538_v7 = vsub.f32 0.0, %v6136_v42 }
 0x824   : > { %v3567_v57 = vsel %vm3562_vm8, %v3550_v24, %v3097_v26 }
 0x825   : > { %v3584_v20 = vsel %vm3579_vm9, %v3567_v57, %v3465_v2  ;;  %v3381_v51 = vpop.xlane.xlu0 %3380  ;;  %v3439_v60 = vpop.xlane.xlu1 %3438 }
 0x826   : > { %3601 = vst.msk [vmem:[%s6371_s16 + $0x20] sm:$0xff] %vm3596_vm10, %v3584_v20  ;;  %v3466_v20 = vsub.f32 0.0, %v6449_v43 }
 0x829   : > { %v3375_v5 = vpop.xlane.xlu0 %3374  ;;  %v6459_v29 = vpop.xlane.xlu1 %3383 }
 0x82d   : > { %v2940_v32 = vpop.xlane.xlu0 %2939  ;;  %v6464_v17 = vpop.xlane.xlu1 %3377 }
 0x82e   : > { %v3502_v18 = vsel %vm3494_vm3, %v3485_v53, %v2940_v32 }
 0x82f   : > { %v3519_v62 = vsel %vm3511_vm5, %v3502_v18, %v6391_v4  ;;  %v6944_v18 = vld [vmem:[#allocation45_spill] sm:$0xff] }
 0x830   : > { %v3536_v1 = vsel %vm3528_vm6, %v3519_v62, %v1980_v35  ;;  %v6945_v62 = vld [vmem:[#allocation34_spill] sm:$0xff] }
 0x831   : > { %v3068_v59 = vpop.xlane.xlu0 %3067  ;;  %v2949_v27 = vpop.xlane.xlu1 %2948  ;;  %v3553_v4 = vsel %vm3545_vm7, %v3536_v1, %v2540_v30  ;;  %v3489_v1 = vsel %vm3477_vm4, %v6945_v62, %v6944_v18  ;;  %v6946_v30 = vld [vmem:[#allocation69_spill] sm:$0xff] }
 0x832   : > { %v3100_v28 = vsub.f32 0.0, %v3068_v59  ;;  %v3505_v39 = vsel %vm3494_vm3, %v3488_v36, %v2949_v27  ;;  %v1984_v59 = vsub.f32 0.0, %v6946_v30 }
 0x833   : > { %v3522_v31 = vsel %vm3511_vm5, %v3505_v39, %v3381_v51  ;;  %v3469_v51 = vsub.f32 0.0, %v3439_v60 }
 0x834   : > { %v3570_v44 = vsel %vm3562_vm8, %v3553_v4, %v3100_v28  ;;  %v3539_v9 = vsel %vm3528_vm6, %v3522_v31, %v1983_v23  ;;  %v6947_v28 = vld [vmem:[#allocation2_spill] sm:$0xff] }
 0x835   : > { %v3587_v21 = vsel %vm3579_vm9, %v3570_v44, %v3468_v37  ;;  %v6484_v47 = vpop.xlane.xlu0 %3447  ;;  %v3077_v11 = vpop.xlane.xlu1 %3076  ;;  %v3556_v34 = vsel %vm3545_vm7, %v3539_v9, %v2543_v16  ;;  %v2544_v39 = vsub.f32 0.0, %v6947_v28  ;;  %v6948_v16 = vld [vmem:[#allocation4_spill] sm:$0xff]  ;;  %v6960_v28 = vld [vmem:[#allocation57_spill] sm:$0xff] }
 0x836   : > { %3604 = vst.msk [vmem:[%s6371_s16 + $0x38] sm:$0xff] %vm3596_vm10, %v3587_v21  ;;  %v3103_v50 = vsub.f32 0.0, %v3077_v11  ;;  %v3472_v44 = vsub.f32 0.0, %v6484_v47  ;;  %v6949_v21 = vld [vmem:[#allocation72_spill] sm:$0xff] }
 0x837   : > { %v3492_v11 = vsel %vm3477_vm4, %v6949_v21, %v6948_v16  ;;  %v6964_v21 = vld [vmem:[#allocation29_spill] sm:$0xff] }
 0x838   : > { %v3573_v52 = vsel %vm3562_vm8, %v3556_v34, %v3103_v50 }
 0x839   : > { %v3590_v12 = vsel %vm3579_vm9, %v3573_v52, %v3471_v10  ;;  %v2934_v6 = vpop.xlane.xlu0 %2933  ;;  %v2943_v40 = vpop.xlane.xlu1 %2942  ;;  %v6950_v10 = vld [vmem:[#allocation60_spill] sm:$0xff]  ;;  %v6952_v52 = vld [vmem:[#allocation3_spill] sm:$0xff] }
 0x83a   : > { %3607 = vst.msk [vmem:[%s6371_s16 + $0x50] sm:$0xff] %vm3596_vm10, %v3590_v12  ;;  %v3500_v25 = vsel %vm3494_vm3, %v3483_v61, %v2934_v6  ;;  %v3503_v19 = vsel %vm3494_vm3, %v3486_v49, %v2943_v40  ;;  %v3487_v49 = vsel %vm3477_vm4, %v6953_v45, %v6952_v52  ;;  %v6954_v6 = vld [vmem:[#allocation78_spill] sm:$0xff]  ;;  %v6965_v52 = vld [vmem:[#allocation77_spill] sm:$0xff] }
 0x83b   : > { %v3517_v56 = vsel %vm3511_vm5, %v3500_v25, %v6398_v33  ;;  %v3520_v15 = vsel %vm3511_vm5, %v3503_v19, %v3375_v5  ;;  %v1985_v40 = vsub.f32 0.0, %v6954_v6  ;;  %v1988_v45 = vsub.f32 0.0, %v6965_v52 }
 0x83c   : > { %v3534_v46 = vsel %vm3528_vm6, %v3517_v56, %v1978_v48  ;;  %v3537_v22 = vsel %vm3528_vm6, %v3520_v15, %v1981_v14  ;;  %v1982_v14 = vsub.f32 0.0, %v6955_v55 }
 0x83d   : > { %v3062_v26 = vpop.xlane.xlu0 %3061  ;;  %v3071_v2 = vpop.xlane.xlu1 %3070  ;;  %v3551_v33 = vsel %vm3545_vm7, %v3534_v46, %v2538_v7  ;;  %v3554_v5 = vsel %vm3545_vm7, %v3537_v22, %v2541_v58  ;;  %v6956_v22 = vld [vmem:[#allocation74_spill] sm:$0xff]  ;;  %v6957_v7 = vld [vmem:[#allocation55_spill] sm:$0xff] }
 0x83e   : > { %v3098_v24 = vsub.f32 0.0, %v3062_v26  ;;  %v3101_v57 = vsub.f32 0.0, %v3071_v2  ;;  %v1987_v58 = vsub.f32 0.0, %v6956_v22  ;;  %v2545_v26 = vsub.f32 0.0, %v6957_v7  ;;  %v6958_v2 = vld [vmem:[#allocation47_spill] sm:$0xff] }
 0x840   : > { %v3568_v0 = vsel %vm3562_vm8, %v3551_v33, %v3098_v24  ;;  %v3571_v63 = vsel %vm3562_vm8, %v3554_v5, %v3101_v57  ;;  %v2542_v24 = vsub.f32 0.0, %v6958_v2 }
 0x841   : > { %v3585_v38 = vsel %vm3579_vm9, %v3568_v0, %v3466_v20  ;;  %v3588_v42 = vsel %vm3579_vm9, %v3571_v63, %v3469_v51  ;;  %v3442_v53 = vpop.xlane.xlu0 %3441  ;;  %v3451_v32 = vpop.xlane.xlu1 %3450 }
 0x842   : > { %3602 = vst.msk [vmem:[%s6371_s16 + $0x28] sm:$0xff] %vm3596_vm10, %v3585_v38  ;;  %3605 = vst.msk [vmem:[%s6371_s16 + $0x40] sm:$0xff] %vm3596_vm10, %v3588_v42  ;;  %v3470_v51 = vsub.f32 0.0, %v3442_v53  ;;  %v3473_v33 = vsub.f32 0.0, %v3451_v32 }
 0x845   : > { %v3393_v43 = vpop.xlane.xlu0 %3392  ;;  %v6522_v60 = vpop.xlane.xlu1 %3395 }
 0x849   : > { %v3387_v3 = vpop.xlane.xlu0 %3386  ;;  %v6524_v35 = vpop.xlane.xlu1 %3389 }
 0x84d   : > { %v2952_v8 = vpop.xlane.xlu0 %2951  ;;  %v2961_v36 = vpop.xlane.xlu1 %2960 }
 0x84e   : > { %v3506_v27 = vsel %vm3494_vm3, %v3489_v1, %v2952_v8  ;;  %v3509_v41 = vsel %vm3494_vm3, %v3492_v11, %v2961_v36  ;;  %v1986_v11 = vsub.f32 0.0, %v6964_v21 }
 0x84f   : > { %v3523_v13 = vsel %vm3511_vm5, %v3506_v27, %v6459_v29  ;;  %v6951_v29 = vld [vmem:[#allocation76_spill] sm:$0xff]  ;;  %v3526_v56 = vsel %vm3511_vm5, %v3509_v41, %v3393_v43  ;;  %v6959_v43 = vld [vmem:[#allocation51_spill] sm:$0xff] }
 0x850   : > { %v3540_v23 = vsel %vm3528_vm6, %v3523_v13, %v1984_v59  ;;  %v3490_v34 = vsel %vm3477_vm4, %v6951_v29, %v6950_v10  ;;  %v3543_v0 = vsel %vm3528_vm6, %v3526_v56, %v1987_v58 }
 0x851   : > { %v3080_v37 = vpop.xlane.xlu0 %3079  ;;  %v3089_v4 = vpop.xlane.xlu1 %3088  ;;  %v3557_v9 = vsel %vm3545_vm7, %v3540_v23, %v2544_v39  ;;  %v6961_v39 = vld [vmem:[#allocation75_spill] sm:$0xff] }
 0x852   : > { %v3104_v31 = vsub.f32 0.0, %v3080_v37  ;;  %v3107_v63 = vsub.f32 0.0, %v3089_v4  ;;  %v3493_v37 = vsel %vm3477_vm4, %v6961_v39, %v6960_v28  ;;  %v6962_v4 = vld [vmem:[#allocation52_spill] sm:$0xff] }
 0x854   : > { %v3574_v50 = vsel %vm3562_vm8, %v3557_v9, %v3104_v31  ;;  %v6963_v31 = vld [vmem:[#allocation25_spill] sm:$0xff] }
 0x855   : > { %v3591_v47 = vsel %vm3579_vm9, %v3574_v50, %v3472_v44  ;;  %v2946_v61 = vpop.xlane.xlu0 %2945  ;;  %v2955_v12 = vpop.xlane.xlu1 %2954  ;;  %v3491_v44 = vsel %vm3477_vm4, %v6963_v31, %v6962_v4 }
 0x856   : > { %3608 = vst.msk [vmem:[%s6371_s16 + $0x58] sm:$0xff] %vm3596_vm10, %v3591_v47  ;;  %v3504_v54 = vsel %vm3494_vm3, %v3487_v49, %v2946_v61  ;;  %v3507_v48 = vsel %vm3494_vm3, %v3490_v34, %v2955_v12  ;;  %v6966_v49 = vld [vmem:[#allocation46_spill] sm:$0xff] }
 0x857   : > { %v3521_v25 = vsel %vm3511_vm5, %v3504_v54, %v6464_v17  ;;  %v3524_v19 = vsel %vm3511_vm5, %v3507_v48, %v3387_v3  ;;  %v2547_v3 = vsub.f32 0.0, %v6959_v43  ;;  %v2546_v41 = vsub.f32 0.0, %v6966_v49 }
 0x858   : > { %v3538_v15 = vsel %vm3528_vm6, %v3521_v25, %v1982_v14  ;;  %v3541_v46 = vsel %vm3528_vm6, %v3524_v19, %v1985_v40 }
 0x859   : > { %v3074_v57 = vpop.xlane.xlu0 %3073  ;;  %v3083_v20 = vpop.xlane.xlu1 %3082  ;;  %v3555_v38 = vsel %vm3545_vm7, %v3538_v15, %v2542_v24  ;;  %v3558_v42 = vsel %vm3545_vm7, %v3541_v46, %v2545_v26  ;;  %v3560_v36 = vsel %vm3545_vm7, %v3543_v0, %v2547_v3 }
 0x85a   : > { %v3102_v17 = vsub.f32 0.0, %v3074_v57  ;;  %v3105_v5 = vsub.f32 0.0, %v3083_v20  ;;  %v3577_v59 = vsel %vm3562_vm8, %v3560_v36, %v3107_v63 }
 0x85c   : > { %v3572_v18 = vsel %vm3562_vm8, %v3555_v38, %v3102_v17  ;;  %v3575_v62 = vsel %vm3562_vm8, %v3558_v42, %v3105_v5 }
 0x85d   : > { %v3589_v53 = vsel %vm3579_vm9, %v3572_v18, %v3470_v51  ;;  %v3592_v32 = vsel %vm3579_vm9, %v3575_v62, %v3473_v33  ;;  %v3454_v1 = vpop.xlane.xlu0 %3453  ;;  %v3457_v8 = vpop.xlane.xlu1 %3456 }
 0x85e   : > { %3606 = vst.msk [vmem:[%s6371_s16 + $0x48] sm:$0xff] %vm3596_vm10, %v3589_v53  ;;  %3609 = vst.msk [vmem:[%s6371_s16 + $0x60] sm:$0xff] %vm3596_vm10, %v3592_v32  ;;  %v3475_v30 = vsub.f32 0.0, %v3457_v8  ;;  %v3474_v12 = vsub.f32 0.0, %v3454_v1 }
 0x860   : > { %v3594_v27 = vsel %vm3579_vm9, %v3577_v59, %v3475_v30 }
 0x861   : > { %3611 = vst.msk [vmem:[%s6371_s16 + $0x70] sm:$0xff] %vm3596_vm10, %v3594_v27  ;;  %v2964_v13 = vpop.xlane.xlu0 %2963 }
 0x862   : > { %v3510_v9 = vsel %vm3494_vm3, %v3493_v37, %v2964_v13 }
 0x863   : > { %v3527_v29 = vsel %vm3511_vm5, %v3510_v9, %v6522_v60 }
 0x864   : > { %v3544_v6 = vsel %vm3528_vm6, %v3527_v29, %v1988_v45 }
 0x865   : > { %v3092_v23 = vpop.xlane.xlu0 %3091 }
 0x866   : > { %v3108_v40 = vsub.f32 0.0, %v3092_v23 }
 0x869   : > { %v2958_v16 = vpop.xlane.xlu0 %2957 }
 0x86a   : > { %v3508_v50 = vsel %vm3494_vm3, %v3491_v44, %v2958_v16 }
 0x86b   : > { %v3525_v10 = vsel %vm3511_vm5, %v3508_v50, %v6524_v35  ;;  %v6967_v35 = vld [vmem:[#allocation48_spill] sm:$0xff] }
 0x86c   : > { %v3542_v34 = vsel %vm3528_vm6, %v3525_v10, %v1986_v11  ;;  %v2548_v14 = vsub.f32 0.0, %v6967_v35 }
 0x86d   : > { %v3086_v47 = vpop.xlane.xlu0 %3085  ;;  %v3559_v55 = vsel %vm3545_vm7, %v3542_v34, %v2546_v41 }
 0x86e   : > { %v3106_v61 = vsub.f32 0.0, %v3086_v47  ;;  %v3561_v25 = vsel %vm3545_vm7, %v3544_v6, %v2548_v14 }
 0x86f   : > { %v3578_v56 = vsel %vm3562_vm8, %v3561_v25, %v3108_v40 }
 0x870   : > { %v3576_v54 = vsel %vm3562_vm8, %v3559_v55, %v3106_v61 }
 0x871   : > { %v3593_v60 = vsel %vm3579_vm9, %v3576_v54, %v3474_v12  ;;  %v3460_v48 = vpop.xlane.xlu0 %3459 }
 0x872   : > { %3610 = vst.msk [vmem:[%s6371_s16 + $0x68] sm:$0xff] %vm3596_vm10, %v3593_v60  ;;  %v3476_v19 = vsub.f32 0.0, %v3460_v48 }
 0x874   : > { %v3595_v15 = vsel %vm3579_vm9, %v3578_v56, %v3476_v19 }
 0x875   : > { %3612 = vst.msk [vmem:[%s6371_s16 + $0x78] sm:$0xff] %vm3596_vm10, %v3595_v15 }
 0x876 PF: > { %s22_s21 = sadd.s32 1, %s4348_s21  }
 0x877   : > { %p19_p4 = scmp.ge.s32.totalorder %s22_s21, 4  }
 0x879   :  { %21 = sbr.rel (!%p19_p4) target bundleno = 1 (0x1), region = 101 }

</bundles_post_ra>
